<compile_context>
chip_gen: v7x
topology: tpu7x:2x2x1
jax: 0.10.0
libtpu: 0.0.40
codegen_flags: <defaults>
</compile_context>

<pallas_src>
import functools

import jax
import jax.numpy as jnp
from jax import lax
from jax.experimental import pallas as pl
from jax.experimental.pallas import tpu as pltpu


def _round_up(x, m):
    return (x + m - 1) // m * m


# -----------------------------------------------------------------------------
# Pallas kernels
# -----------------------------------------------------------------------------
def _matmul_bias_lrelu_kernel(x_ref, w_ref, b_ref, o_ref, *, slope):
    """o = leaky_relu(x @ w + b, slope) for one (TM, K) x (K, N) tile."""
    acc = jnp.dot(x_ref[...], w_ref[...], preferred_element_type=jnp.float32)
    acc = acc + b_ref[...]                       # (1, N) bias broadcasts over rows
    o_ref[...] = jnp.where(acc > 0, acc, slope * acc).astype(o_ref.dtype)


def _dense_gather_kernel(x_ref, w_ref, b_ref, y_ref, o_ref):
    """logits = x @ w + b ;  o[i, 0] = logits[i, y[i]]  (per M tile)."""
    logits = jnp.dot(x_ref[...], w_ref[...], preferred_element_type=jnp.float32)
    logits = logits + b_ref[...]
    m, n = logits.shape
    col = lax.broadcasted_iota(jnp.int32, (m, n), 1)
    mask = col == y_ref[...]                     # y_ref is (TM, 1) int32
    o_ref[...] = jnp.sum(jnp.where(mask, logits, 0.0), axis=1, keepdims=True)


_PARALLEL_M = pltpu.CompilerParams(dimension_semantics=("parallel",))


def matmul_bias_lrelu(x, w, b, *, slope=0.2, out_dtype=jnp.bfloat16, tm=512):
    """M-tiled fused matmul + bias + LeakyReLU.  Weight/bias stay resident."""
    m, k = x.shape
    _, n = w.shape
    tm_eff = min(tm, _round_up(m, 16))           # 16: safe sublane multiple for bf16
    m_pad = _round_up(m, tm_eff)
    if m_pad != m:
        x = jnp.pad(x, ((0, m_pad - m), (0, 0)))
    out = pl.pallas_call(
        functools.partial(_matmul_bias_lrelu_kernel, slope=slope),
        out_shape=jax.ShapeDtypeStruct((m_pad, n), out_dtype),
        grid=(m_pad // tm_eff,),
        in_specs=[
            pl.BlockSpec((tm_eff, k), lambda i: (i, 0)),   # X_col tile, pipelined
            pl.BlockSpec((k, n), lambda i: (0, 0)),        # weight, resident
            pl.BlockSpec((1, n), lambda i: (0, 0)),        # bias, resident
        ],
        out_specs=pl.BlockSpec((tm_eff, n), lambda i: (i, 0)),
        compiler_params=_PARALLEL_M,
    )(x, w, b)
    return out[:m] if m_pad != m else out


def dense_gather(x, w, b, y, *, tm=512):
    """out[i] = (x @ w + b)[i, y[i]], M-tiled."""
    m, k = x.shape
    _, n = w.shape
    tm_eff = min(tm, _round_up(m, 16))
    m_pad = _round_up(m, tm_eff)
    if m_pad != m:
        x = jnp.pad(x, ((0, m_pad - m), (0, 0)))
        y = jnp.pad(y, (0, m_pad - m))
    y2 = y.reshape(m_pad, 1).astype(jnp.int32)
    out = pl.pallas_call(
        _dense_gather_kernel,
        out_shape=jax.ShapeDtypeStruct((m_pad, 1), jnp.float32),
        grid=(m_pad // tm_eff,),
        in_specs=[
            pl.BlockSpec((tm_eff, k), lambda i: (i, 0)),
            pl.BlockSpec((k, n), lambda i: (0, 0)),
            pl.BlockSpec((1, n), lambda i: (0, 0)),
            pl.BlockSpec((tm_eff, 1), lambda i: (i, 0)),
        ],
        out_specs=pl.BlockSpec((tm_eff, 1), lambda i: (i, 0)),
        compiler_params=_PARALLEL_M,
    )(x, w, b, y2)
    return out[:m, 0]


# -----------------------------------------------------------------------------
# Glue: channels-last im2col for k=4, s=2, p=1 convs (no transposes)
# -----------------------------------------------------------------------------
def im2col_nhwc(x_nhwc, k=4, s=2, p=1):
    b, h, w, c = x_nhwc.shape
    xp = jnp.pad(x_nhwc, ((0, 0), (p, p), (p, p), (0, 0)))
    ho = (h + 2 * p - k) // s + 1
    wo = (w + 2 * p - k) // s + 1
    patches = [xp[:, i:i + s * ho:s, j:j + s * wo:s, :]      # [B, Ho, Wo, C]
               for i in range(k) for j in range(k)]
    col = jnp.stack(patches, axis=3)                         # [B, Ho, Wo, k*k, C]
    col = col.reshape(b * ho * wo, k * k * c)                # free flatten, (kh,kw,c) cols
    return col, ho, wo


def conv4x4_s2_p1_nhwc(x_nhwc, weight_oihw, bias, slope=0.2):
    """Conv2d(k=4, s=2, p=1) + LeakyReLU, NHWC in/out, via im2col + Pallas matmul."""
    b = x_nhwc.shape[0]
    cout, cin, kh, kw = weight_oihw.shape
    col, ho, wo = im2col_nhwc(x_nhwc, k=kh, s=2, p=1)
    # rows ordered (kh, kw, cin) to match the NHWC patch layout
    w_col = weight_oihw.transpose(2, 3, 1, 0).reshape(kh * kw * cin, cout)
    out = matmul_bias_lrelu(
        col.astype(jnp.bfloat16),
        w_col.astype(jnp.bfloat16),
        bias.reshape(1, cout).astype(jnp.float32),
        slope=slope,
        out_dtype=jnp.bfloat16,
    )
    return out.reshape(b, ho, wo, cout)                      # NHWC, free reshape


# -----------------------------------------------------------------------------
# Discriminator forward
# -----------------------------------------------------------------------------
def init_params(key, nlabels):
    ks = jax.random.split(key, 8)

    def w(k, shape, scale=0.05):
        return (scale * jax.random.normal(k, shape)).astype(jnp.float32)

    return {
        "w1": w(ks[0], (64, 3, 4, 4)),    "b1": w(ks[1], (64,)),
        "w2": w(ks[2], (128, 64, 4, 4)),  "b2": w(ks[3], (128,)),
        "w3": w(ks[4], (256, 128, 4, 4)), "b3": w(ks[5], (256,)),
        "wd": w(ks[6], (nlabels, 256 * 4 * 4), scale=0.02),
        "bd": w(ks[7], (nlabels,)),
    }


def discriminator_forward(params, x, y):
    assert x.shape[0] == y.shape[0]
    b = x.shape[0]
    # one NCHW -> NHWC transpose at the boundary; everything else stays NHWC
    h = jnp.transpose(x, (0, 2, 3, 1)).astype(jnp.bfloat16)
    h = conv4x4_s2_p1_nhwc(h, params["w1"], params["b1"])    # [B, 16, 16,  64]
    h = conv4x4_s2_p1_nhwc(h, params["w2"], params["b2"])    # [B,  8,  8, 128]
    h = conv4x4_s2_p1_nhwc(h, params["w3"], params["b3"])    # [B,  4,  4, 256]
    flat = h.reshape(b, 4 * 4 * 256)                         # (h, w, c) flatten, free

    # Permute dense-weight columns from PyTorch's NCHW flatten order (c,h,w)
    # to our NHWC flatten order (h,w,c).  Trace-time, tiny.
    wd = params["wd"]
    nlabels = wd.shape[0]
    wd_hwc = wd.reshape(nlabels, 256, 4, 4).transpose(0, 2, 3, 1).reshape(nlabels, -1)

    return dense_gather(
        flat,
        wd_hwc.T.astype(jnp.bfloat16),
        params["bd"].reshape(1, -1).astype(jnp.float32),
        y,
    )                                                        # [B]


# Pure-JAX reference (PyTorch semantics in NCHW, with matched bf16 matmul inputs).
def reference_forward(params, x, y):
    def conv(xi, wi, bi):
        o = lax.conv_general_dilated(
            xi.astype(jnp.bfloat16), wi.astype(jnp.bfloat16),
            window_strides=(2, 2), padding=((1, 1), (1, 1)),
            dimension_numbers=("NCHW", "OIHW", "NCHW"),
            preferred_element_type=jnp.float32)
        o = o + bi.reshape(1, -1, 1, 1)
        return jnp.where(o > 0, o, 0.2 * o)

    h = conv(x, params["w1"], params["b1"])
    h = conv(h, params["w2"], params["b2"])
    h = conv(h, params["w3"], params["b3"])
    flat = h.reshape(x.shape[0], -1)                         # NCHW flatten (c,h,w)
    logits = jnp.dot(flat.astype(jnp.bfloat16),
                     params["wd"].T.astype(jnp.bfloat16),
                     preferred_element_type=jnp.float32) + params["bd"]
    return logits[jnp.arange(x.shape[0]), y]


if __name__ == "__main__":
    nlabels = 10
    batch = 2
    key = jax.random.PRNGKey(0)
    kp, kx, ky = jax.random.split(key, 3)

    params = init_params(kp, nlabels)
    x = jax.random.normal(kx, (batch, 3, 32, 32), dtype=jnp.float32)  # NCHW like PyTorch
    y = jax.random.randint(ky, (batch,), 0, nlabels, dtype=jnp.int32)

    out = jax.jit(discriminator_forward)(params, x, y)
    out = jax.block_until_ready(out)

    ref = reference_forward(params, x, y)
    assert out.shape == (batch,)
    assert jnp.allclose(out, ref, atol=2e-2, rtol=2e-2), (out, ref)

    print("KERNEL_OK")
</pallas_src>

<mosaic_0001>
module attributes {stable_mosaic.version = 11 : i64} {
  func.func @_matmul_bias_lrelu_kernel(%arg0: i32, %arg1: memref<512x48xbf16, #tpu.memory_space<vmem>>, %arg2: memref<48x64xbf16, #tpu.memory_space<vmem>>, %arg3: memref<1x64xf32, #tpu.memory_space<vmem>>, %arg4: memref<512x64xbf16, #tpu.memory_space<vmem>>) attributes {dimension_semantics = [#tpu.dimension_semantics<parallel>], iteration_bounds = array<i64: 1>, scalar_prefetch = 0 : i64, scratch_operands = 0 : i64, tpu.core_type = #tpu.core_type<tc>, window_params = [{transform_indices = @transform_0, window_bounds = array<i64: 512, 48>}, {pipeline_mode = #tpu.pipeline_mode<synchronous>, transform_indices = @transform_1, window_bounds = array<i64: 48, 64>}, {pipeline_mode = #tpu.pipeline_mode<synchronous>, transform_indices = @transform_2, window_bounds = array<i64: 1, 64>}, {transform_indices = @transform_3, window_bounds = array<i64: 512, 64>}]} {
    %c0 = arith.constant 0 : index
    %c0_0 = arith.constant 0 : index
    %0 = vector.load %arg1[%c0, %c0_0] : memref<512x48xbf16, #tpu.memory_space<vmem>>, vector<512x48xbf16>
    %c0_1 = arith.constant 0 : index
    %c0_2 = arith.constant 0 : index
    %1 = vector.load %arg2[%c0_1, %c0_2] : memref<48x64xbf16, #tpu.memory_space<vmem>>, vector<48x64xbf16>
    %cst = arith.constant dense<0.000000e+00> : vector<512x64xf32>
    %2 = tpu.matmul %0, %1, %cst {dimension_numbers = #tpu.dot_dimension_numbers<[1], [0], [0], [1], [0, 0, 1, 1], [], []>} : vector<512x48xbf16>, vector<48x64xbf16>, vector<512x64xf32> -> vector<512x64xf32>
    %c0_3 = arith.constant 0 : index
    %c0_4 = arith.constant 0 : index
    %3 = vector.load %arg3[%c0_3, %c0_4] : memref<1x64xf32, #tpu.memory_space<vmem>>, vector<1x64xf32>
    %4 = vector.broadcast %3 : vector<1x64xf32> to vector<512x64xf32>
    %5 = arith.addf %2, %4 : vector<512x64xf32>
    %cst_5 = arith.constant 0.000000e+00 : f32
    %6 = vector.broadcast %cst_5 : f32 to vector<512x64xf32>
    %7 = arith.cmpf ogt, %5, %6 : vector<512x64xf32>
    %cst_6 = arith.constant 2.000000e-01 : f32
    %8 = vector.broadcast %cst_6 : f32 to vector<512x64xf32>
    %9 = arith.mulf %8, %5 : vector<512x64xf32>
    %10 = arith.select %7, %5, %9 : vector<512x64xi1>, vector<512x64xf32>
    %11 = arith.truncf %10 : vector<512x64xf32> to vector<512x64xbf16>
    %c0_7 = arith.constant 0 : index
    %c0_8 = arith.constant 0 : index
    %12 = vector.load %arg4[%c0_7, %c0_8] : memref<512x64xbf16, #tpu.memory_space<vmem>>, vector<512x64xbf16>
    tpu.vector_store %arg4[%c0_7, %c0_8], %11 {strides = array<i32>} : memref<512x64xbf16, #tpu.memory_space<vmem>>, vector<512x64xbf16>,
    return
  }
  func.func @transform_0(%arg0: i32) -> (i32, i32) {
    %c0_i32 = arith.constant 0 : i32
    %c0_i32_0 = arith.constant 0 : i32
    return %arg0, %c0_i32 : i32, i32
  }
  func.func @transform_1(%arg0: i32) -> (i32, i32) {
    %c0_i32 = arith.constant 0 : i32
    %c0_i32_0 = arith.constant 0 : i32
    %c0_i32_1 = arith.constant 0 : i32
    return %c0_i32, %c0_i32_0 : i32, i32
  }
  func.func @transform_2(%arg0: i32) -> (i32, i32) {
    %c0_i32 = arith.constant 0 : i32
    %c0_i32_0 = arith.constant 0 : i32
    %c0_i32_1 = arith.constant 0 : i32
    return %c0_i32, %c0_i32_0 : i32, i32
  }
  func.func @transform_3(%arg0: i32) -> (i32, i32) {
    %c0_i32 = arith.constant 0 : i32
    %c0_i32_0 = arith.constant 0 : i32
    return %arg0, %c0_i32 : i32, i32
  }
}

module attributes {stable_mosaic.version = 11 : i64} {
  func.func @_matmul_bias_lrelu_kernel(%arg0: i32, %arg1: memref<128x1024xbf16, #tpu.memory_space<vmem>>, %arg2: memref<1024x128xbf16, #tpu.memory_space<vmem>>, %arg3: memref<1x128xf32, #tpu.memory_space<vmem>>, %arg4: memref<128x128xbf16, #tpu.memory_space<vmem>>) attributes {dimension_semantics = [#tpu.dimension_semantics<parallel>], iteration_bounds = array<i64: 1>, scalar_prefetch = 0 : i64, scratch_operands = 0 : i64, tpu.core_type = #tpu.core_type<tc>, window_params = [{transform_indices = @transform_0, window_bounds = array<i64: 128, 1024>}, {pipeline_mode = #tpu.pipeline_mode<synchronous>, transform_indices = @transform_1, window_bounds = array<i64: 1024, 128>}, {pipeline_mode = #tpu.pipeline_mode<synchronous>, transform_indices = @transform_2, window_bounds = array<i64: 1, 128>}, {transform_indices = @transform_3, window_bounds = array<i64: 128, 128>}]} {
    %c0 = arith.constant 0 : index
    %c0_0 = arith.constant 0 : index
    %0 = vector.load %arg1[%c0, %c0_0] : memref<128x1024xbf16, #tpu.memory_space<vmem>>, vector<128x1024xbf16>
    %c0_1 = arith.constant 0 : index
    %c0_2 = arith.constant 0 : index
    %1 = vector.load %arg2[%c0_1, %c0_2] : memref<1024x128xbf16, #tpu.memory_space<vmem>>, vector<1024x128xbf16>
    %cst = arith.constant dense<0.000000e+00> : vector<128x128xf32>
    %2 = tpu.matmul %0, %1, %cst {dimension_numbers = #tpu.dot_dimension_numbers<[1], [0], [0], [1], [0, 0, 1, 1], [], []>} : vector<128x1024xbf16>, vector<1024x128xbf16>, vector<128x128xf32> -> vector<128x128xf32>
    %c0_3 = arith.constant 0 : index
    %c0_4 = arith.constant 0 : index
    %3 = vector.load %arg3[%c0_3, %c0_4] : memref<1x128xf32, #tpu.memory_space<vmem>>, vector<1x128xf32>
    %4 = vector.broadcast %3 : vector<1x128xf32> to vector<128x128xf32>
    %5 = arith.addf %2, %4 : vector<128x128xf32>
    %cst_5 = arith.constant 0.000000e+00 : f32
    %6 = vector.broadcast %cst_5 : f32 to vector<128x128xf32>
    %7 = arith.cmpf ogt, %5, %6 : vector<128x128xf32>
    %cst_6 = arith.constant 2.000000e-01 : f32
    %8 = vector.broadcast %cst_6 : f32 to vector<128x128xf32>
    %9 = arith.mulf %8, %5 : vector<128x128xf32>
    %10 = arith.select %7, %5, %9 : vector<128x128xi1>, vector<128x128xf32>
    %11 = arith.truncf %10 : vector<128x128xf32> to vector<128x128xbf16>
    %c0_7 = arith.constant 0 : index
    %c0_8 = arith.constant 0 : index
    %12 = vector.load %arg4[%c0_7, %c0_8] : memref<128x128xbf16, #tpu.memory_space<vmem>>, vector<128x128xbf16>
    tpu.vector_store %arg4[%c0_7, %c0_8], %11 {strides = array<i32>} : memref<128x128xbf16, #tpu.memory_space<vmem>>, vector<128x128xbf16>,
    return
  }
  func.func @transform_0(%arg0: i32) -> (i32, i32) {
    %c0_i32 = arith.constant 0 : i32
    %c0_i32_0 = arith.constant 0 : i32
    return %arg0, %c0_i32 : i32, i32
  }
  func.func @transform_1(%arg0: i32) -> (i32, i32) {
    %c0_i32 = arith.constant 0 : i32
    %c0_i32_0 = arith.constant 0 : i32
    %c0_i32_1 = arith.constant 0 : i32
    return %c0_i32, %c0_i32_0 : i32, i32
  }
  func.func @transform_2(%arg0: i32) -> (i32, i32) {
    %c0_i32 = arith.constant 0 : i32
    %c0_i32_0 = arith.constant 0 : i32
    %c0_i32_1 = arith.constant 0 : i32
    return %c0_i32, %c0_i32_0 : i32, i32
  }
  func.func @transform_3(%arg0: i32) -> (i32, i32) {
    %c0_i32 = arith.constant 0 : i32
    %c0_i32_0 = arith.constant 0 : i32
    return %arg0, %c0_i32 : i32, i32
  }
}

module attributes {stable_mosaic.version = 11 : i64} {
  func.func @_matmul_bias_lrelu_kernel(%arg0: i32, %arg1: memref<32x2048xbf16, #tpu.memory_space<vmem>>, %arg2: memref<2048x256xbf16, #tpu.memory_space<vmem>>, %arg3: memref<1x256xf32, #tpu.memory_space<vmem>>, %arg4: memref<32x256xbf16, #tpu.memory_space<vmem>>) attributes {dimension_semantics = [#tpu.dimension_semantics<parallel>], iteration_bounds = array<i64: 1>, scalar_prefetch = 0 : i64, scratch_operands = 0 : i64, tpu.core_type = #tpu.core_type<tc>, window_params = [{transform_indices = @transform_0, window_bounds = array<i64: 32, 2048>}, {pipeline_mode = #tpu.pipeline_mode<synchronous>, transform_indices = @transform_1, window_bounds = array<i64: 2048, 256>}, {pipeline_mode = #tpu.pipeline_mode<synchronous>, transform_indices = @transform_2, window_bounds = array<i64: 1, 256>}, {transform_indices = @transform_3, window_bounds = array<i64: 32, 256>}]} {
    %c0 = arith.constant 0 : index
    %c0_0 = arith.constant 0 : index
    %0 = vector.load %arg1[%c0, %c0_0] : memref<32x2048xbf16, #tpu.memory_space<vmem>>, vector<32x2048xbf16>
    %c0_1 = arith.constant 0 : index
    %c0_2 = arith.constant 0 : index
    %1 = vector.load %arg2[%c0_1, %c0_2] : memref<2048x256xbf16, #tpu.memory_space<vmem>>, vector<2048x256xbf16>
    %cst = arith.constant dense<0.000000e+00> : vector<32x256xf32>
    %2 = tpu.matmul %0, %1, %cst {dimension_numbers = #tpu.dot_dimension_numbers<[1], [0], [0], [1], [0, 0, 1, 1], [], []>} : vector<32x2048xbf16>, vector<2048x256xbf16>, vector<32x256xf32> -> vector<32x256xf32>
    %c0_3 = arith.constant 0 : index
    %c0_4 = arith.constant 0 : index
    %3 = vector.load %arg3[%c0_3, %c0_4] : memref<1x256xf32, #tpu.memory_space<vmem>>, vector<1x256xf32>
    %4 = vector.broadcast %3 : vector<1x256xf32> to vector<32x256xf32>
    %5 = arith.addf %2, %4 : vector<32x256xf32>
    %cst_5 = arith.constant 0.000000e+00 : f32
    %6 = vector.broadcast %cst_5 : f32 to vector<32x256xf32>
    %7 = arith.cmpf ogt, %5, %6 : vector<32x256xf32>
    %cst_6 = arith.constant 2.000000e-01 : f32
    %8 = vector.broadcast %cst_6 : f32 to vector<32x256xf32>
    %9 = arith.mulf %8, %5 : vector<32x256xf32>
    %10 = arith.select %7, %5, %9 : vector<32x256xi1>, vector<32x256xf32>
    %11 = arith.truncf %10 : vector<32x256xf32> to vector<32x256xbf16>
    %c0_7 = arith.constant 0 : index
    %c0_8 = arith.constant 0 : index
    %12 = vector.load %arg4[%c0_7, %c0_8] : memref<32x256xbf16, #tpu.memory_space<vmem>>, vector<32x256xbf16>
    tpu.vector_store %arg4[%c0_7, %c0_8], %11 {strides = array<i32>} : memref<32x256xbf16, #tpu.memory_space<vmem>>, vector<32x256xbf16>,
    return
  }
  func.func @transform_0(%arg0: i32) -> (i32, i32) {
    %c0_i32 = arith.constant 0 : i32
    %c0_i32_0 = arith.constant 0 : i32
    return %arg0, %c0_i32 : i32, i32
  }
  func.func @transform_1(%arg0: i32) -> (i32, i32) {
    %c0_i32 = arith.constant 0 : i32
    %c0_i32_0 = arith.constant 0 : i32
    %c0_i32_1 = arith.constant 0 : i32
    return %c0_i32, %c0_i32_0 : i32, i32
  }
  func.func @transform_2(%arg0: i32) -> (i32, i32) {
    %c0_i32 = arith.constant 0 : i32
    %c0_i32_0 = arith.constant 0 : i32
    %c0_i32_1 = arith.constant 0 : i32
    return %c0_i32, %c0_i32_0 : i32, i32
  }
  func.func @transform_3(%arg0: i32) -> (i32, i32) {
    %c0_i32 = arith.constant 0 : i32
    %c0_i32_0 = arith.constant 0 : i32
    return %arg0, %c0_i32 : i32, i32
  }
}

module attributes {stable_mosaic.version = 11 : i64} {
  func.func @_dense_gather_kernel(%arg0: i32, %arg1: memref<16x4096xbf16, #tpu.memory_space<vmem>>, %arg2: memref<4096x10xbf16, #tpu.memory_space<vmem>>, %arg3: memref<1x10xf32, #tpu.memory_space<vmem>>, %arg4: memref<16x1xi32, #tpu.memory_space<vmem>>, %arg5: memref<16x1xf32, #tpu.memory_space<vmem>>) attributes {dimension_semantics = [#tpu.dimension_semantics<parallel>], iteration_bounds = array<i64: 1>, scalar_prefetch = 0 : i64, scratch_operands = 0 : i64, tpu.core_type = #tpu.core_type<tc>, window_params = [{transform_indices = @transform_0, window_bounds = array<i64: 16, 4096>}, {pipeline_mode = #tpu.pipeline_mode<synchronous>, transform_indices = @transform_1, window_bounds = array<i64: 4096, 10>}, {pipeline_mode = #tpu.pipeline_mode<synchronous>, transform_indices = @transform_2, window_bounds = array<i64: 1, 10>}, {transform_indices = @transform_3, window_bounds = array<i64: 16, 1>}, {transform_indices = @transform_4, window_bounds = array<i64: 16, 1>}]} {
    %c0 = arith.constant 0 : index
    %c0_0 = arith.constant 0 : index
    %0 = vector.load %arg1[%c0, %c0_0] : memref<16x4096xbf16, #tpu.memory_space<vmem>>, vector<16x4096xbf16>
    %c0_1 = arith.constant 0 : index
    %c0_2 = arith.constant 0 : index
    %1 = vector.load %arg2[%c0_1, %c0_2] : memref<4096x10xbf16, #tpu.memory_space<vmem>>, vector<4096x10xbf16>
    %cst = arith.constant dense<0.000000e+00> : vector<16x10xf32>
    %2 = tpu.matmul %0, %1, %cst {dimension_numbers = #tpu.dot_dimension_numbers<[1], [0], [0], [1], [0, 0, 1, 1], [], []>} : vector<16x4096xbf16>, vector<4096x10xbf16>, vector<16x10xf32> -> vector<16x10xf32>
    %c0_3 = arith.constant 0 : index
    %c0_4 = arith.constant 0 : index
    %3 = vector.load %arg3[%c0_3, %c0_4] : memref<1x10xf32, #tpu.memory_space<vmem>>, vector<1x10xf32>
    %4 = vector.broadcast %3 : vector<1x10xf32> to vector<16x10xf32>
    %5 = arith.addf %2, %4 : vector<16x10xf32>
    %6 = tpu.iota {dimensions = array<i32: 1>} : vector<16x10xi32>
    %c0_5 = arith.constant 0 : index
    %c0_6 = arith.constant 0 : index
    %7 = vector.load %arg4[%c0_5, %c0_6] : memref<16x1xi32, #tpu.memory_space<vmem>>, vector<16x1xi32>
    %8 = vector.broadcast %7 : vector<16x1xi32> to vector<16x10xi32>
    %9 = arith.cmpi eq, %6, %8 : vector<16x10xi32>
    %cst_7 = arith.constant 0.000000e+00 : f32
    %10 = vector.broadcast %cst_7 : f32 to vector<16x10xf32>
    %11 = arith.select %9, %5, %10 : vector<16x10xi1>, vector<16x10xf32>
    %cst_8 = arith.constant dense<0.000000e+00> : vector<16xf32>
    %12 = vector.multi_reduction <add>, %11, %cst_8 [1] : vector<16x10xf32> to vector<16xf32>
    %13 = vector.shape_cast %12 : vector<16xf32> to vector<16x1xf32>
    %c0_9 = arith.constant 0 : index
    %c0_10 = arith.constant 0 : index
    %14 = vector.load %arg5[%c0_9, %c0_10] : memref<16x1xf32, #tpu.memory_space<vmem>>, vector<16x1xf32>
    tpu.vector_store %arg5[%c0_9, %c0_10], %13 {strides = array<i32>} : memref<16x1xf32, #tpu.memory_space<vmem>>, vector<16x1xf32>,
    return
  }
  func.func @transform_0(%arg0: i32) -> (i32, i32) {
    %c0_i32 = arith.constant 0 : i32
    %c0_i32_0 = arith.constant 0 : i32
    return %arg0, %c0_i32 : i32, i32
  }
  func.func @transform_1(%arg0: i32) -> (i32, i32) {
    %c0_i32 = arith.constant 0 : i32
    %c0_i32_0 = arith.constant 0 : i32
    %c0_i32_1 = arith.constant 0 : i32
    return %c0_i32, %c0_i32_0 : i32, i32
  }
  func.func @transform_2(%arg0: i32) -> (i32, i32) {
    %c0_i32 = arith.constant 0 : i32
    %c0_i32_0 = arith.constant 0 : i32
    %c0_i32_1 = arith.constant 0 : i32
    return %c0_i32, %c0_i32_0 : i32, i32
  }
  func.func @transform_3(%arg0: i32) -> (i32, i32) {
    %c0_i32 = arith.constant 0 : i32
    %c0_i32_0 = arith.constant 0 : i32
    return %arg0, %c0_i32 : i32, i32
  }
  func.func @transform_4(%arg0: i32) -> (i32, i32) {
    %c0_i32 = arith.constant 0 : i32
    %c0_i32_0 = arith.constant 0 : i32
    return %arg0, %c0_i32 : i32, i32
  }
}

</mosaic_0001>

<bundles_post_ra>
// kernel: discriminator_forward.4
= control target key start
LH: loop header
LB: loop body
LE: loop exit
PB: predicated region body
PF: predicated region fallthrough
CT: control target
= control target key end

     0   :  { %vm270_vm0 = vcmask 392192   ;;  %vm1104_vm1 = vcmask 519168   ;;  %s2076_s1 = inlined_call_operand.vmem [shape: bf16[48,64], index: 1, kind: input, shape index: {}]   ;;  %s2077_s0 = inlined_call_operand.vmem [shape: bf16[512,48], index: 0, kind: input, shape index: {}]   ;;  %s2078_s2 = inlined_call_operand.vmem [shape: f32[1,64], index: 2, kind: input, shape index: {}]   ;;  %s2079_s3 = inlined_call_operand.vmem [shape: bf16[512,64], index: 3, kind: output, shape index: {}]  }
   0x1   :  { %v1480_v0 = vld [vmem:[%s2076_s1] sm:$0xff]   ;;  %v1481_v1 = vld [vmem:[%s2076_s1 + $0x8] sm:$0xff]   ;;  %v1482_v2 = vld [vmem:[%s2076_s1 + $0x10] sm:$0xff]  }
   0x2   :  { %1404 = vmatprep.subr.bf16.mxu0 %v1480_v0  ;;  %1474 = vmatprep.subr.bf16.mxu1 %v1480_v0  ;;  %v1483_v3 = vld [vmem:[%s2077_s0] sm:$0xff]   ;;  %v1485_v5 = vld [vmem:[%s2077_s0 + $0x8] sm:$0xff]   ;;  %v1487_v7 = vld [vmem:[%s2077_s0 + $0x10] sm:$0xff]  }
   0x3   :  { %1405 = vmatpush3.bf16.msra.mxu0 %v1480_v0  ;;  %1477 = vmatpush3.bf16.msra.mxu1 %v1480_v0  ;;  %v1484_v4 = vld [vmem:[%s2077_s0 + $0x80] sm:$0xff]   ;;  %v1486_v6 = vld [vmem:[%s2077_s0 + $0x88] sm:$0xff]   ;;  %v1488_v8 = vld [vmem:[%s2077_s0 + $0x90] sm:$0xff]  }
   0x4   :  { %1406 = vmatprep.subr.bf16.mxu0 %v1481_v1  ;;  %1475 = vmatprep.subr.bf16.mxu1 %v1481_v1  ;;  %v1489_v9 = vld [vmem:[%s2077_s0 + $0x18] sm:$0xff]   ;;  %v1491_v11 = vld [vmem:[%s2077_s0 + $0x20] sm:$0xff]   ;;  %v1493_v13 = vld [vmem:[%s2077_s0 + $0x28] sm:$0xff]  }
   0x5   :  { %1410 = vmatprep.mubr.msk.bf16.mxu0 %vm270_vm0, %v1483_v3  ;;  %1442 = vmatprep.mubr.msk.bf16.mxu1 %vm270_vm0, %v1484_v4  ;;  %v1490_v10 = vld [vmem:[%s2077_s0 + $0x98] sm:$0xff]   ;;  %v1492_v12 = vld [vmem:[%s2077_s0 + $0xa0] sm:$0xff]   ;;  %v1494_v14 = vld [vmem:[%s2077_s0 + $0xa8] sm:$0xff]  }
   0x6   :  { %v1495_v15 = vld [vmem:[%s2077_s0 + $0x30] sm:$0xff]   ;;  %v1497_v17 = vld [vmem:[%s2077_s0 + $0x38] sm:$0xff]   ;;  %v1499_v19 = vld [vmem:[%s2077_s0 + $0x40] sm:$0xff]  }
   0x7   :  { %1407 = vmatpush3.bf16.msra.mxu0 %v1481_v1  ;;  %1478 = vmatpush3.bf16.msra.mxu1 %v1481_v1  ;;  %v1496_v16 = vld [vmem:[%s2077_s0 + $0xb0] sm:$0xff]   ;;  %v1498_v18 = vld [vmem:[%s2077_s0 + $0xb8] sm:$0xff]   ;;  %v1500_v20 = vld [vmem:[%s2077_s0 + $0xc0] sm:$0xff]  }
   0x8   :  { %1408 = vmatprep.subr.bf16.mxu0 %v1482_v2  ;;  %1476 = vmatprep.subr.bf16.mxu1 %v1482_v2  ;;  %v1501_v21 = vld [vmem:[%s2077_s0 + $0x48] sm:$0xff]   ;;  %v1503_v23 = vld [vmem:[%s2077_s0 + $0x50] sm:$0xff]   ;;  %v1505_v25 = vld [vmem:[%s2077_s0 + $0x58] sm:$0xff]  }
   0x9   :  { %v1502_v22 = vld [vmem:[%s2077_s0 + $0xc8] sm:$0xff]   ;;  %v1504_v24 = vld [vmem:[%s2077_s0 + $0xd0] sm:$0xff]   ;;  %v1506_v26 = vld [vmem:[%s2077_s0 + $0xd8] sm:$0xff]  }
   0xa   :  { %v1507_v27 = vld [vmem:[%s2077_s0 + $0x60] sm:$0xff]   ;;  %v1509_v29 = vld [vmem:[%s2077_s0 + $0x68] sm:$0xff]   ;;  %v1511_v31 = vld [vmem:[%s2077_s0 + $0x70] sm:$0xff]  }
   0xb   :  { %1409 = vmatpush3.bf16.msra.mxu0 %v1482_v2  ;;  %1479 = vmatpush3.bf16.msra.mxu1 %v1482_v2  ;;  %v1508_v28 = vld [vmem:[%s2077_s0 + $0xe0] sm:$0xff]   ;;  %v1510_v30 = vld [vmem:[%s2077_s0 + $0xe8] sm:$0xff]   ;;  %v1512_v32 = vld [vmem:[%s2077_s0 + $0xf0] sm:$0xff]  }
   0xc   :  { %v1513_v33 = vld [vmem:[%s2077_s0 + $0x78] sm:$0xff]   ;;  %v1675_v35 = vld [vmem:[%s2078_s2] ss:$0 sm:$0xff] }
   0xd   :  { %v1514_v34 = vld [vmem:[%s2077_s0 + $0xf8] sm:$0xff]  }
   0xe   :  { %1411 = vmatmul.mubr.msk.bf16.vlgmr.msra.gmra.mrb[0].mxu0 %vm270_vm0, %v1485_v5  ;;  %1443 = vmatmul.mubr.msk.bf16.vlgmr.msra.gmra.mrb[0].mxu1 %vm270_vm0, %v1486_v6 }
   0xf   :  { %1414 = vmatprep.mubr.msk.bf16.mxu0 %vm270_vm0, %v1487_v7  ;;  %1446 = vmatprep.mubr.msk.bf16.mxu1 %vm270_vm0, %v1488_v8 }
  0x16   :  { %1415 = vmatmul.mubr.msk.bf16.gmra.mrb[4].mxu0 %vm270_vm0, %v1489_v9  ;;  %1447 = vmatmul.mubr.msk.bf16.gmra.mrb[4].mxu1 %vm270_vm0, %v1490_v10 }
  0x17   :  { %1418 = vmatprep.mubr.msk.bf16.mxu0 %vm270_vm0, %v1491_v11  ;;  %1450 = vmatprep.mubr.msk.bf16.mxu1 %vm270_vm0, %v1492_v12 }
  0x1e   :  { %1419 = vmatmul.mubr.msk.bf16.gmra.mrb[8].mxu0 %vm270_vm0, %v1493_v13  ;;  %1451 = vmatmul.mubr.msk.bf16.gmra.mrb[8].mxu1 %vm270_vm0, %v1494_v14 }
  0x1f   :  { %1422 = vmatprep.mubr.msk.bf16.mxu0 %vm270_vm0, %v1495_v15  ;;  %1454 = vmatprep.mubr.msk.bf16.mxu1 %vm270_vm0, %v1496_v16 }
  0x26   :  { %1423 = vmatmul.mubr.msk.bf16.gmra.mrb[12].mxu0 %vm270_vm0, %v1497_v17  ;;  %1455 = vmatmul.mubr.msk.bf16.gmra.mrb[12].mxu1 %vm270_vm0, %v1498_v18 }
  0x27   :  { %1426 = vmatprep.mubr.msk.bf16.mxu0 %vm270_vm0, %v1499_v19  ;;  %1458 = vmatprep.mubr.msk.bf16.mxu1 %vm270_vm0, %v1500_v20 }
  0x2e   :  { %1427 = vmatmul.mubr.msk.bf16.gmra.mrb[16].mxu0 %vm270_vm0, %v1501_v21  ;;  %1459 = vmatmul.mubr.msk.bf16.gmra.mrb[16].mxu1 %vm270_vm0, %v1502_v22 }
  0x2f   :  { %1430 = vmatprep.mubr.msk.bf16.mxu0 %vm270_vm0, %v1503_v23  ;;  %1462 = vmatprep.mubr.msk.bf16.mxu1 %vm270_vm0, %v1504_v24 }
  0x36   :  { %1431 = vmatmul.mubr.msk.bf16.gmra.mrb[20].mxu0 %vm270_vm0, %v1505_v25  ;;  %1463 = vmatmul.mubr.msk.bf16.gmra.mrb[20].mxu1 %vm270_vm0, %v1506_v26 }
  0x37   :  { %1434 = vmatprep.mubr.msk.bf16.mxu0 %vm270_vm0, %v1507_v27  ;;  %1466 = vmatprep.mubr.msk.bf16.mxu1 %vm270_vm0, %v1508_v28 }
  0x3e   :  { %1435 = vmatmul.mubr.msk.bf16.gmra.mrb[24].mxu0 %vm270_vm0, %v1509_v29  ;;  %1467 = vmatmul.mubr.msk.bf16.gmra.mrb[24].mxu1 %vm270_vm0, %v1510_v30 }
  0x3f   :  { %1438 = vmatprep.mubr.msk.bf16.mxu0 %vm270_vm0, %v1511_v31  ;;  %1470 = vmatprep.mubr.msk.bf16.mxu1 %vm270_vm0, %v1512_v32 }
  0x46   :  { %1439 = vmatmul.mubr.msk.bf16.gmra.mrb[28].mxu0 %vm270_vm0, %v1513_v33  ;;  %1471 = vmatmul.mubr.msk.bf16.gmra.mrb[28].mxu1 %vm270_vm0, %v1514_v34 }
  0xe1   :  { %v1412_v36 = vpop.f32.mrb[0].mxu0  ;;  %v1444_v37 = vpop.f32.mrb[0].mxu1 }
  0xe2   :  { %v410_v38 = vadd.f32 %v1412_v36, %v1675_v35  ;;  %v538_v39 = vadd.f32 %v1444_v37, %v1675_v35  ;;  %v401_v40 = vpop.f32.mrb[1].mxu0  ;;  %v529_v41 = vpop.f32.mrb[1].mxu1 }
  0xe3   :  { %v402_v42 = vadd.f32 %v1675_v35, %v401_v40  ;;  %v530_v43 = vadd.f32 %v1675_v35, %v529_v41  ;;  %v1413_v44 = vpop.f32.mrb[2].mxu0  ;;  %v1445_v45 = vpop.f32.mrb[2].mxu1 }
  0xe4   :  { %vm658_vm2 = vcmp.gt.f32.partialorder %v410_v38, 0.0  ;;  %v722_v46 = vmul.f32 0.2, %v410_v38  ;;  %vm690_vm3 = vcmp.gt.f32.partialorder %v538_v39, 0.0  ;;  %v754_v47 = vmul.f32 0.2, %v538_v39 }
  0xe5   :  { %vm656_vm4 = vcmp.gt.f32.partialorder %v402_v42, 0.0  ;;  %v720_v48 = vmul.f32 0.2, %v402_v42  ;;  %vm688_vm5 = vcmp.gt.f32.partialorder %v530_v43, 0.0  ;;  %v752_v49 = vmul.f32 0.2, %v530_v43 }
  0xe6   :  { %v786_v50 = vsel %vm658_vm2, %v410_v38, %v722_v46  ;;  %v818_v51 = vsel %vm690_vm3, %v538_v39, %v754_v47  ;;  %v413_v52 = vadd.f32 %v1413_v44, %v1675_v35  ;;  %v541_v53 = vadd.f32 %v1445_v45, %v1675_v35  ;;  %v404_v54 = vpop.f32.mrb[3].mxu0  ;;  %v532_v55 = vpop.f32.mrb[3].mxu1 }
  0xe7   :  { %v1307_v56 = vpack.c.bf16 %v786_v50, %v786_v50  ;;  %v1339_v57 = vpack.c.bf16 %v818_v51, %v818_v51  ;;  %v784_v58 = vsel %vm656_vm4, %v402_v42, %v720_v48  ;;  %v816_v59 = vsel %vm688_vm5, %v530_v43, %v752_v49 }
  0xe8   :  { %v1305_v60 = vpack.c.bf16 %v784_v58, %v784_v58  ;;  %v1337_v61 = vpack.c.bf16 %v816_v59, %v816_v59  ;;  %vm659_vm6 = vcmp.gt.f32.partialorder %v413_v52, 0.0  ;;  %v723_v62 = vmul.f32 0.2, %v413_v52 }
  0xe9   :  { %1107 = vst.msk [vmem:[%s2079_s3 + $0x8] sm:$0xf] %vm1104_vm1, %v1307_v56  ;;  %1139 = vst.msk [vmem:[%s2079_s3 + $0x88] sm:$0xf] %vm1104_vm1, %v1339_v57  ;;  %vm691_vm7 = vcmp.gt.f32.partialorder %v541_v53, 0.0  ;;  %v405_v0 = vadd.f32 %v1675_v35, %v404_v54  ;;  %v533_v1 = vadd.f32 %v1675_v35, %v532_v55  ;;  %v1416_v2 = vpop.f32.mrb[4].mxu0 }
  0xea   :  { %v755_v63 = vmul.f32 0.2, %v541_v53  ;;  %v1448_v3 = vpop.f32.mrb[4].mxu1  ;;  %1105 = vst.msk [vmem:[%s2079_s3] sm:$0xf] %vm1104_vm1, %v1305_v60  ;;  %v787_v4 = vsel %vm659_vm6, %v413_v52, %v723_v62  ;;  %v426_v5 = vadd.f32 %v1416_v2, %v1675_v35  ;;  %v417_v7 = vpop.f32.mrb[5].mxu0 }
  0xeb   :  { %1137 = vst.msk [vmem:[%s2079_s3 + $0x80] sm:$0xf] %vm1104_vm1, %v1337_v61  ;;  %v554_v6 = vadd.f32 %v1448_v3, %v1675_v35  ;;  %v545_v8 = vpop.f32.mrb[5].mxu1  ;;  %v1308_v9 = vpack.c.bf16 %v787_v4, %v787_v4  ;;  %vm657_vm8 = vcmp.gt.f32.partialorder %v405_v0, 0.0  ;;  %v721_v11 = vmul.f32 0.2, %v405_v0 }
  0xec   :  { %v819_v10 = vsel %vm691_vm7, %v541_v53, %v755_v63  ;;  %v1417_v12 = vpop.f32.mrb[6].mxu0  ;;  %v1449_v13 = vpop.f32.mrb[6].mxu1  ;;  %vm689_vm9 = vcmp.gt.f32.partialorder %v533_v1, 0.0  ;;  %v753_v15 = vmul.f32 0.2, %v533_v1  ;;  %vm662_vm10 = vcmp.gt.f32.partialorder %v426_v5, 0.0 }
  0xed   :  { %v1340_v14 = vpack.c.bf16 %v819_v10, %v819_v10  ;;  %v420_v16 = vpop.f32.mrb[7].mxu0  ;;  %v548_v17 = vpop.f32.mrb[7].mxu1  ;;  %1108 = vst.msk [vmem:[%s2079_s3 + $0xc] sm:$0xf] %vm1104_vm1, %v1308_v9  ;;  %v785_v18 = vsel %vm657_vm8, %v405_v0, %v721_v11  ;;  %v726_v19 = vmul.f32 0.2, %v426_v5  ;;  %v418_v23 = vadd.f32 %v1675_v35, %v417_v7 }
  0xee   :  { %vm694_vm11 = vcmp.gt.f32.partialorder %v554_v6, 0.0  ;;  %v758_v20 = vmul.f32 0.2, %v554_v6  ;;  %v1306_v21 = vpack.c.bf16 %v785_v18, %v785_v18  ;;  %v817_v22 = vsel %vm689_vm9, %v533_v1, %v753_v15 }
  0xef   :  { %1140 = vst.msk [vmem:[%s2079_s3 + $0x8c] sm:$0xf] %vm1104_vm1, %v1340_v14  ;;  %v546_v24 = vadd.f32 %v1675_v35, %v545_v8  ;;  %v1338_v25 = vpack.c.bf16 %v817_v22, %v817_v22  ;;  %v790_v26 = vsel %vm662_vm10, %v426_v5, %v726_v19  ;;  %v429_v28 = vadd.f32 %v1417_v12, %v1675_v35 }
  0xf0   :  { %v822_v27 = vsel %vm694_vm11, %v554_v6, %v758_v20  ;;  %1106 = vst.msk [vmem:[%s2079_s3 + $0x4] sm:$0xf] %vm1104_vm1, %v1306_v21  ;;  %v1311_v29 = vpack.c.bf16 %v790_v26, %v790_v26  ;;  %vm660_vm12 = vcmp.gt.f32.partialorder %v418_v23, 0.0  ;;  %v724_v31 = vmul.f32 0.2, %v418_v23 }
  0xf1   :  { %v1343_v30 = vpack.c.bf16 %v822_v27, %v822_v27  ;;  %1138 = vst.msk [vmem:[%s2079_s3 + $0x84] sm:$0xf] %vm1104_vm1, %v1338_v25  ;;  %vm692_vm13 = vcmp.gt.f32.partialorder %v546_v24, 0.0  ;;  %v756_v32 = vmul.f32 0.2, %v546_v24  ;;  %vm663_vm14 = vcmp.gt.f32.partialorder %v429_v28, 0.0 }
  0xf2   :  { %v727_v33 = vmul.f32 0.2, %v429_v28  ;;  %1111 = vst.msk [vmem:[%s2079_s3 + $0x18] sm:$0xf] %vm1104_vm1, %v1311_v29  ;;  %v788_v34 = vsel %vm660_vm12, %v418_v23, %v724_v31  ;;  %v557_v36 = vadd.f32 %v1449_v13, %v1675_v35  ;;  %v421_v37 = vadd.f32 %v1675_v35, %v420_v16  ;;  %v1420_v39 = vpop.f32.mrb[8].mxu0  ;;  %v1452_v40 = vpop.f32.mrb[8].mxu1 }
  0xf3   :  { %1143 = vst.msk [vmem:[%s2079_s3 + $0x98] sm:$0xf] %vm1104_vm1, %v1343_v30  ;;  %v549_v38 = vadd.f32 %v1675_v35, %v548_v17  ;;  %v1309_v41 = vpack.c.bf16 %v788_v34, %v788_v34  ;;  %v820_v42 = vsel %vm692_vm13, %v546_v24, %v756_v32  ;;  %v442_v44 = vadd.f32 %v1420_v39, %v1675_v35  ;;  %v433_v45 = vpop.f32.mrb[9].mxu0  ;;  %v561_v46 = vpop.f32.mrb[9].mxu1 }
  0xf4   :  { %v791_v43 = vsel %vm663_vm14, %v429_v28, %v727_v33  ;;  %v1341_v47 = vpack.c.bf16 %v820_v42, %v820_v42  ;;  %vm695_vm15 = vcmp.gt.f32.partialorder %v557_v36, 0.0  ;;  %v759_v49 = vmul.f32 0.2, %v557_v36  ;;  %v1421_v50 = vpop.f32.mrb[10].mxu0  ;;  %v1453_v51 = vpop.f32.mrb[10].mxu1 }
  0xf5   :  { %v1312_v48 = vpack.c.bf16 %v791_v43, %v791_v43  ;;  %1109 = vst.msk [vmem:[%s2079_s3 + $0x10] sm:$0xf] %vm1104_vm1, %v1309_v41  ;;  %vm661_vm0 = vcmp.gt.f32.partialorder %v421_v37, 0.0  ;;  %v725_v52 = vmul.f32 0.2, %v421_v37  ;;  %vm693_vm2 = vcmp.gt.f32.partialorder %v549_v38, 0.0 }
  0xf6   :  { %v757_v53 = vmul.f32 0.2, %v549_v38  ;;  %1141 = vst.msk [vmem:[%s2079_s3 + $0x90] sm:$0xf] %vm1104_vm1, %v1341_v47  ;;  %v823_v54 = vsel %vm695_vm15, %v557_v36, %v759_v49  ;;  %vm666_vm3 = vcmp.gt.f32.partialorder %v442_v44, 0.0  ;;  %v570_v56 = vadd.f32 %v1452_v40, %v1675_v35  ;;  %v436_v57 = vpop.f32.mrb[11].mxu0 }
  0xf7   :  { %1112 = vst.msk [vmem:[%s2079_s3 + $0x1c] sm:$0xf] %vm1104_vm1, %v1312_v48  ;;  %v730_v55 = vmul.f32 0.2, %v442_v44  ;;  %v564_v58 = vpop.f32.mrb[11].mxu1  ;;  %v1344_v59 = vpack.c.bf16 %v823_v54, %v823_v54  ;;  %v789_v60 = vsel %vm661_vm0, %v421_v37, %v725_v52  ;;  %v434_v62 = vadd.f32 %v1675_v35, %v433_v45 }
  0xf8   :  { %v821_v61 = vsel %vm693_vm2, %v549_v38, %v757_v53  ;;  %v1310_v63 = vpack.c.bf16 %v789_v60, %v789_v60  ;;  %vm698_vm4 = vcmp.gt.f32.partialorder %v570_v56, 0.0  ;;  %v762_v3 = vmul.f32 0.2, %v570_v56 }
  0xf9   :  { %v1342_v0 = vpack.c.bf16 %v821_v61, %v821_v61  ;;  %v794_v1 = vsel %vm666_vm3, %v442_v44, %v730_v55  ;;  %1144 = vst.msk [vmem:[%s2079_s3 + $0x9c] sm:$0xf] %vm1104_vm1, %v1344_v59  ;;  %vm664_vm5 = vcmp.gt.f32.partialorder %v434_v62, 0.0  ;;  %v728_v4 = vmul.f32 0.2, %v434_v62  ;;  %v1424_v5 = vpop.f32.mrb[12].mxu0 }
  0xfa   :  { %v1315_v2 = vpack.c.bf16 %v794_v1, %v794_v1  ;;  %1110 = vst.msk [vmem:[%s2079_s3 + $0x14] sm:$0xf] %vm1104_vm1, %v1310_v63  ;;  %v562_v6 = vadd.f32 %v1675_v35, %v561_v46  ;;  %v445_v7 = vadd.f32 %v1421_v50, %v1675_v35  ;;  %v573_v8 = vadd.f32 %v1453_v51, %v1675_v35  ;;  %v1456_v10 = vpop.f32.mrb[12].mxu1  ;;  %v449_v11 = vpop.f32.mrb[13].mxu0 }
  0xfb   :  { %1142 = vst.msk [vmem:[%s2079_s3 + $0x94] sm:$0xf] %vm1104_vm1, %v1342_v0  ;;  %v437_v9 = vadd.f32 %v1675_v35, %v436_v57  ;;  %v826_v12 = vsel %vm698_vm4, %v570_v56, %v762_v3  ;;  %v792_v13 = vsel %vm664_vm5, %v434_v62, %v728_v4  ;;  %v565_v14 = vadd.f32 %v1675_v35, %v564_v58  ;;  %v577_v16 = vpop.f32.mrb[13].mxu1  ;;  %v1425_v17 = vpop.f32.mrb[14].mxu0 }
  0xfc   :  { %1115 = vst.msk [vmem:[%s2079_s3 + $0x28] sm:$0xf] %vm1104_vm1, %v1315_v2  ;;  %v458_v15 = vadd.f32 %v1424_v5, %v1675_v35  ;;  %v1347_v18 = vpack.c.bf16 %v826_v12, %v826_v12  ;;  %v1313_v19 = vpack.c.bf16 %v792_v13, %v792_v13  ;;  %vm696_vm6 = vcmp.gt.f32.partialorder %v562_v6, 0.0  ;;  %v1457_v21 = vpop.f32.mrb[14].mxu1  ;;  %v452_v22 = vpop.f32.mrb[15].mxu0 }
  0xfd   :  { %v760_v20 = vmul.f32 0.2, %v562_v6  ;;  %vm667_vm7 = vcmp.gt.f32.partialorder %v445_v7, 0.0  ;;  %v731_v23 = vmul.f32 0.2, %v445_v7  ;;  %vm699_vm8 = vcmp.gt.f32.partialorder %v573_v8, 0.0 }
  0xfe   :  { %v763_v24 = vmul.f32 0.2, %v573_v8  ;;  %1147 = vst.msk [vmem:[%s2079_s3 + $0xa8] sm:$0xf] %vm1104_vm1, %v1347_v18  ;;  %1113 = vst.msk [vmem:[%s2079_s3 + $0x20] sm:$0xf] %vm1104_vm1, %v1313_v19  ;;  %v586_v39 = vadd.f32 %v1456_v10, %v1675_v35  ;;  %v450_v43 = vadd.f32 %v1675_v35, %v449_v11  ;;  %v578_v44 = vadd.f32 %v1675_v35, %v577_v16 }
  0xff   :  { %v824_v25 = vsel %vm696_vm6, %v562_v6, %v760_v20  ;;  %vm665_vm9 = vcmp.gt.f32.partialorder %v437_v9, 0.0  ;;  %v729_v26 = vmul.f32 0.2, %v437_v9  ;;  %vm697_vm10 = vcmp.gt.f32.partialorder %v565_v14, 0.0  ;;  %v580_v27 = vpop.f32.mrb[15].mxu1 }
 0x100   :  { %v1345_v28 = vpack.c.bf16 %v824_v25, %v824_v25  ;;  %v795_v29 = vsel %vm667_vm7, %v445_v7, %v731_v23  ;;  %v827_v30 = vsel %vm699_vm8, %v573_v8, %v763_v24  ;;  %v761_v31 = vmul.f32 0.2, %v565_v14 }
 0x101   :  { %v1316_v32 = vpack.c.bf16 %v795_v29, %v795_v29  ;;  %v1348_v33 = vpack.c.bf16 %v827_v30, %v827_v30  ;;  %v793_v34 = vsel %vm665_vm9, %v437_v9, %v729_v26  ;;  %vm670_vm11 = vcmp.gt.f32.partialorder %v458_v15, 0.0  ;;  %v1428_v40 = vpop.f32.mrb[16].mxu0  ;;  %v1460_v41 = vpop.f32.mrb[16].mxu1 }
 0x102   :  { %1145 = vst.msk [vmem:[%s2079_s3 + $0xa0] sm:$0xf] %vm1104_vm1, %v1345_v28  ;;  %v1314_v36 = vpack.c.bf16 %v793_v34, %v793_v34  ;;  %v825_v37 = vsel %vm697_vm10, %v565_v14, %v761_v31  ;;  %v734_v38 = vmul.f32 0.2, %v458_v15  ;;  %v461_v45 = vadd.f32 %v1425_v17, %v1675_v35  ;;  %v465_v46 = vpop.f32.mrb[17].mxu0  ;;  %v593_v47 = vpop.f32.mrb[17].mxu1 }
 0x103   :  { %1116 = vst.msk [vmem:[%s2079_s3 + $0x2c] sm:$0xf] %vm1104_vm1, %v1316_v32  ;;  %1148 = vst.msk [vmem:[%s2079_s3 + $0xac] sm:$0xf] %vm1104_vm1, %v1348_v33  ;;  %v1346_v42 = vpack.c.bf16 %v825_v37, %v825_v37  ;;  %vm702_vm12 = vcmp.gt.f32.partialorder %v586_v39, 0.0  ;;  %v589_v50 = vadd.f32 %v1457_v21, %v1675_v35  ;;  %v1801_v51 = vpop.f32.mrb[18].mxu0  ;;  %v453_v2 = vadd.f32 %v1675_v35, %v452_v22 }
 0x104   :  { %1114 = vst.msk [vmem:[%s2079_s3 + $0x24] sm:$0xf] %vm1104_vm1, %v1314_v36  ;;  %v798_v48 = vsel %vm670_vm11, %v458_v15, %v734_v38  ;;  %v766_v49 = vmul.f32 0.2, %v586_v39  ;;  %v1803_v52 = vpop.f32.mrb[18].mxu1  ;;  %vm668_vm13 = vcmp.gt.f32.partialorder %v450_v43, 0.0  ;;  %v581_v6 = vadd.f32 %v1675_v35, %v580_v27 }
 0x105   :  { %1146 = vst.msk [vmem:[%s2079_s3 + $0xa4] sm:$0xf] %vm1104_vm1, %v1346_v42  ;;  %v1319_v53 = vpack.c.bf16 %v798_v48, %v798_v48  ;;  %v732_v54 = vmul.f32 0.2, %v450_v43  ;;  %vm700_vm14 = vcmp.gt.f32.partialorder %v578_v44, 0.0  ;;  %v1809_v55 = vpop.f32.mrb[19].mxu0  ;;  %v474_v9 = vadd.f32 %v1428_v40, %v1675_v35 }
 0x106   :  { %v1811_v56 = vpop.f32.mrb[19].mxu1  ;;  %v830_v57 = vsel %vm702_vm12, %v586_v39, %v766_v49  ;;  %v764_v58 = vmul.f32 0.2, %v578_v44  ;;  %vm671_vm15 = vcmp.gt.f32.partialorder %v461_v45, 0.0  ;;  %v735_v59 = vmul.f32 0.2, %v461_v45 }
 0x107   :  { %1119 = vst.msk [vmem:[%s2079_s3 + $0x38] sm:$0xf] %vm1104_vm1, %v1319_v53  ;;  %v1351_v60 = vpack.c.bf16 %v830_v57, %v830_v57  ;;  %v796_v61 = vsel %vm668_vm13, %v450_v43, %v732_v54  ;;  %vm703_vm0 = vcmp.gt.f32.partialorder %v589_v50, 0.0  ;;  %v767_v62 = vmul.f32 0.2, %v589_v50 }
 0x108   :  { %v1317_v63 = vpack.c.bf16 %v796_v61, %v796_v61  ;;  %v828_v0 = vsel %vm700_vm14, %v578_v44, %v764_v58  ;;  %v799_v1 = vsel %vm671_vm15, %v461_v45, %v735_v59  ;;  %vm669_vm2 = vcmp.gt.f32.partialorder %v453_v2, 0.0 }
 0x109   :  { %1151 = vst.msk [vmem:[%s2079_s3 + $0xb8] sm:$0xf] %vm1104_vm1, %v1351_v60  ;;  %v1349_v3 = vpack.c.bf16 %v828_v0, %v828_v0  ;;  %v1320_v4 = vpack.c.bf16 %v799_v1, %v799_v1  ;;  %v831_v5 = vsel %vm703_vm0, %v589_v50, %v767_v62  ;;  %v733_v8 = vmul.f32 0.2, %v453_v2  ;;  %v1432_v10 = vpop.f32.mrb[20].mxu0  ;;  %v1464_v11 = vpop.f32.mrb[20].mxu1 }
 0x10a   :  { %1117 = vst.msk [vmem:[%s2079_s3 + $0x30] sm:$0xf] %vm1104_vm1, %v1317_v63  ;;  %v1352_v7 = vpack.c.bf16 %v831_v5, %v831_v5  ;;  %vm701_vm3 = vcmp.gt.f32.partialorder %v581_v6, 0.0  ;;  %v765_v12 = vmul.f32 0.2, %v581_v6  ;;  %v602_v13 = vadd.f32 %v1460_v41, %v1675_v35  ;;  %v481_v15 = vpop.f32.mrb[21].mxu0 }
 0x10b   :  { %1149 = vst.msk [vmem:[%s2079_s3 + $0xb0] sm:$0xf] %vm1104_vm1, %v1349_v3  ;;  %1120 = vst.msk [vmem:[%s2079_s3 + $0x3c] sm:$0xf] %vm1104_vm1, %v1320_v4  ;;  %v466_v14 = vadd.f32 %v1675_v35, %v465_v46  ;;  %v1838_v16 = vpop.f32.mrb[21].mxu1  ;;  %v797_v17 = vsel %vm669_vm2, %v453_v2, %v733_v8  ;;  %vm674_vm4 = vcmp.gt.f32.partialorder %v474_v9, 0.0  ;;  %v594_v19 = vadd.f32 %v1675_v35, %v593_v47 }
 0x10c   :  { %1152 = vst.msk [vmem:[%s2079_s3 + $0xbc] sm:$0xf] %vm1104_vm1, %v1352_v7  ;;  %v738_v18 = vmul.f32 0.2, %v474_v9  ;;  %v1845_v20 = vpop.f32.mrb[22].mxu0  ;;  %v1847_v21 = vpop.f32.mrb[22].mxu1  ;;  %v1318_v22 = vpack.c.bf16 %v797_v17, %v797_v17  ;;  %v829_v23 = vsel %vm701_vm3, %v581_v6, %v765_v12  ;;  %v477_v36 = vadd.f32 %v1801_v51, %v1675_v35 }
 0x10d   :  { %vm706_vm5 = vcmp.gt.f32.partialorder %v602_v13, 0.0  ;;  %v770_v24 = vmul.f32 0.2, %v602_v13  ;;  %v1849_v25 = vpop.f32.mrb[23].mxu0  ;;  %v1851_v26 = vpop.f32.mrb[23].mxu1  ;;  %v1350_v27 = vpack.c.bf16 %v829_v23, %v829_v23  ;;  %vm672_vm6 = vcmp.gt.f32.partialorder %v466_v14, 0.0 }
 0x10e   :  { %v802_v28 = vsel %vm674_vm4, %v474_v9, %v738_v18  ;;  %v736_v29 = vmul.f32 0.2, %v466_v14  ;;  %1118 = vst.msk [vmem:[%s2079_s3 + $0x34] sm:$0xf] %vm1104_vm1, %v1318_v22  ;;  %vm704_vm7 = vcmp.gt.f32.partialorder %v594_v19, 0.0  ;;  %v605_v37 = vadd.f32 %v1803_v52, %v1675_v35 }
 0x10f   :  { %v1323_v30 = vpack.c.bf16 %v802_v28, %v802_v28  ;;  %v834_v31 = vsel %vm706_vm5, %v602_v13, %v770_v24  ;;  %v768_v32 = vmul.f32 0.2, %v594_v19  ;;  %1150 = vst.msk [vmem:[%s2079_s3 + $0xb4] sm:$0xf] %vm1104_vm1, %v1350_v27  ;;  %v469_v40 = vadd.f32 %v1675_v35, %v1809_v55 }
 0x110   :  { %v1355_v33 = vpack.c.bf16 %v834_v31, %v834_v31  ;;  %v800_v34 = vsel %vm672_vm6, %v466_v14, %v736_v29  ;;  %v597_v41 = vadd.f32 %v1675_v35, %v1811_v56  ;;  %vm675_vm8 = vcmp.gt.f32.partialorder %v477_v36, 0.0 }
 0x111   :  { %1123 = vst.msk [vmem:[%s2079_s3 + $0x48] sm:$0xf] %vm1104_vm1, %v1323_v30  ;;  %v1321_v38 = vpack.c.bf16 %v800_v34, %v800_v34  ;;  %v832_v39 = vsel %vm704_vm7, %v594_v19, %v768_v32  ;;  %v739_v43 = vmul.f32 0.2, %v477_v36  ;;  %vm707_vm9 = vcmp.gt.f32.partialorder %v605_v37, 0.0  ;;  %v1877_v44 = vpop.f32.mrb[24].mxu0 }
 0x112   :  { %1155 = vst.msk [vmem:[%s2079_s3 + $0xc8] sm:$0xf] %vm1104_vm1, %v1355_v33  ;;  %v1353_v42 = vpack.c.bf16 %v832_v39, %v832_v39  ;;  %v1879_v45 = vpop.f32.mrb[24].mxu1  ;;  %v771_v46 = vmul.f32 0.2, %v605_v37  ;;  %vm673_vm10 = vcmp.gt.f32.partialorder %v469_v40, 0.0  ;;  %v490_v50 = vadd.f32 %v1432_v10, %v1675_v35 }
 0x113   :  { %1121 = vst.msk [vmem:[%s2079_s3 + $0x40] sm:$0xf] %vm1104_vm1, %v1321_v38  ;;  %v737_v47 = vmul.f32 0.2, %v469_v40  ;;  %vm705_vm11 = vcmp.gt.f32.partialorder %v597_v41, 0.0  ;;  %v803_v48 = vsel %vm675_vm8, %v477_v36, %v739_v43  ;;  %v618_v51 = vadd.f32 %v1464_v11, %v1675_v35  ;;  %v1891_v52 = vpop.f32.mrb[25].mxu0 }
 0x114   :  { %1153 = vst.msk [vmem:[%s2079_s3 + $0xc0] sm:$0xf] %vm1104_vm1, %v1353_v42  ;;  %v769_v49 = vmul.f32 0.2, %v597_v41  ;;  %v1893_v53 = vpop.f32.mrb[25].mxu1  ;;  %v1324_v54 = vpack.c.bf16 %v803_v48, %v803_v48  ;;  %v835_v55 = vsel %vm707_vm9, %v605_v37, %v771_v46  ;;  %v482_v57 = vadd.f32 %v1675_v35, %v481_v15  ;;  %v1897_v58 = vpop.f32.mrb[26].mxu0 }
 0x115   :  { %v801_v56 = vsel %vm673_vm10, %v469_v40, %v737_v47  ;;  %v1899_v59 = vpop.f32.mrb[26].mxu1  ;;  %v1356_v60 = vpack.c.bf16 %v835_v55, %v835_v55  ;;  %vm678_vm12 = vcmp.gt.f32.partialorder %v490_v50, 0.0  ;;  %v1902_v63 = vpop.f32.mrb[27].mxu0  ;;  %v742_v2 = vmul.f32 0.2, %v490_v50 }
 0x116   :  { %v1322_v61 = vpack.c.bf16 %v801_v56, %v801_v56  ;;  %v833_v62 = vsel %vm705_vm11, %v597_v41, %v769_v49  ;;  %v1904_v0 = vpop.f32.mrb[27].mxu1  ;;  %1124 = vst.msk [vmem:[%s2079_s3 + $0x4c] sm:$0xf] %vm1104_vm1, %v1324_v54  ;;  %vm710_vm13 = vcmp.gt.f32.partialorder %v618_v51, 0.0  ;;  %v774_v3 = vmul.f32 0.2, %v618_v51 }
 0x117   :  { %v1354_v1 = vpack.c.bf16 %v833_v62, %v833_v62  ;;  %1156 = vst.msk [vmem:[%s2079_s3 + $0xcc] sm:$0xf] %vm1104_vm1, %v1356_v60  ;;  %vm676_vm14 = vcmp.gt.f32.partialorder %v482_v57, 0.0  ;;  %v740_v4 = vmul.f32 0.2, %v482_v57  ;;  %v610_v5 = vadd.f32 %v1675_v35, %v1838_v16 }
 0x118   :  { %1122 = vst.msk [vmem:[%s2079_s3 + $0x44] sm:$0xf] %vm1104_vm1, %v1322_v61  ;;  %v493_v6 = vadd.f32 %v1845_v20, %v1675_v35  ;;  %v806_v7 = vsel %vm678_vm12, %v490_v50, %v742_v2  ;;  %v838_v8 = vsel %vm710_vm13, %v618_v51, %v774_v3  ;;  %v621_v9 = vadd.f32 %v1847_v21, %v1675_v35 }
 0x119   :  { %1154 = vst.msk [vmem:[%s2079_s3 + $0xc4] sm:$0xf] %vm1104_vm1, %v1354_v1  ;;  %v485_v10 = vadd.f32 %v1675_v35, %v1849_v25  ;;  %v1327_v11 = vpack.c.bf16 %v806_v7, %v806_v7  ;;  %v1359_v12 = vpack.c.bf16 %v838_v8, %v838_v8  ;;  %v804_v13 = vsel %vm676_vm14, %v482_v57, %v740_v4  ;;  %v1930_v14 = vpop.f32.mrb[28].mxu0  ;;  %v1932_v15 = vpop.f32.mrb[28].mxu1 }
 0x11a   :  { %vm708_vm15 = vcmp.gt.f32.partialorder %v610_v5, 0.0  ;;  %v1325_v16 = vpack.c.bf16 %v804_v13, %v804_v13  ;;  %v772_v17 = vmul.f32 0.2, %v610_v5  ;;  %vm679_vm0 = vcmp.gt.f32.partialorder %v493_v6, 0.0  ;;  %v1934_v19 = vpop.f32.mrb[29].mxu0  ;;  %v1952_v27 = vpop.f32.mrb[29].mxu1 }
 0x11b   :  { %v743_v18 = vmul.f32 0.2, %v493_v6  ;;  %1127 = vst.msk [vmem:[%s2079_s3 + $0x58] sm:$0xf] %vm1104_vm1, %v1327_v11  ;;  %1159 = vst.msk [vmem:[%s2079_s3 + $0xd8] sm:$0xf] %vm1104_vm1, %v1359_v12  ;;  %v613_v24 = vadd.f32 %v1675_v35, %v1851_v26  ;;  %v506_v25 = vadd.f32 %v1877_v44, %v1675_v35  ;;  %v634_v40 = vadd.f32 %v1879_v45, %v1675_v35 }
 0x11c   :  { %vm711_vm2 = vcmp.gt.f32.partialorder %v621_v9, 0.0  ;;  %v775_v20 = vmul.f32 0.2, %v621_v9  ;;  %vm677_vm3 = vcmp.gt.f32.partialorder %v485_v10, 0.0  ;;  %v741_v21 = vmul.f32 0.2, %v485_v10 }
 0x11d   :  { %1125 = vst.msk [vmem:[%s2079_s3 + $0x50] sm:$0xf] %vm1104_vm1, %v1325_v16  ;;  %v836_v22 = vsel %vm708_vm15, %v610_v5, %v772_v17  ;;  %v807_v23 = vsel %vm679_vm0, %v493_v6, %v743_v18  ;;  %v1954_v28 = vpop.f32.mrb[30].mxu0  ;;  %v1956_v33 = vpop.f32.mrb[30].mxu1  ;;  %vm709_vm4 = vcmp.gt.f32.partialorder %v613_v24, 0.0  ;;  %vm682_vm5 = vcmp.gt.f32.partialorder %v506_v25, 0.0 }
 0x11e   :  { %v1357_v29 = vpack.c.bf16 %v836_v22, %v836_v22  ;;  %v1328_v30 = vpack.c.bf16 %v807_v23, %v807_v23  ;;  %v839_v31 = vsel %vm711_vm2, %v621_v9, %v775_v20  ;;  %v805_v32 = vsel %vm677_vm3, %v485_v10, %v741_v21  ;;  %v1958_v34 = vpop.f32.mrb[31].mxu0  ;;  %v1960_v26 = vpop.f32.mrb[31].mxu1 }
 0x11f   :  { %v1360_v36 = vpack.c.bf16 %v839_v31, %v839_v31  ;;  %v1326_v37 = vpack.c.bf16 %v805_v32, %v805_v32  ;;  %v773_v38 = vmul.f32 0.2, %v613_v24  ;;  %v746_v39 = vmul.f32 0.2, %v506_v25 }
 0x120   :  { %1157 = vst.msk [vmem:[%s2079_s3 + $0xd0] sm:$0xf] %vm1104_vm1, %v1357_v29  ;;  %1128 = vst.msk [vmem:[%s2079_s3 + $0x5c] sm:$0xf] %vm1104_vm1, %v1328_v30  ;;  %v498_v41 = vadd.f32 %v1675_v35, %v1891_v52  ;;  %v626_v43 = vadd.f32 %v1675_v35, %v1893_v53  ;;  %v509_v44 = vadd.f32 %v1897_v58, %v1675_v35  ;;  %vm714_vm6 = vcmp.gt.f32.partialorder %v634_v40, 0.0 }
 0x121   :  { %1160 = vst.msk [vmem:[%s2079_s3 + $0xdc] sm:$0xf] %vm1104_vm1, %v1360_v36  ;;  %1126 = vst.msk [vmem:[%s2079_s3 + $0x54] sm:$0xf] %vm1104_vm1, %v1326_v37  ;;  %v837_v42 = vsel %vm709_vm4, %v613_v24, %v773_v38  ;;  %v637_v45 = vadd.f32 %v1899_v59, %v1675_v35  ;;  %v810_v47 = vsel %vm682_vm5, %v506_v25, %v746_v39  ;;  %v778_v48 = vmul.f32 0.2, %v634_v40 }
 0x122   :  { %v1358_v46 = vpack.c.bf16 %v837_v42, %v837_v42  ;;  %v1331_v49 = vpack.c.bf16 %v810_v47, %v810_v47  ;;  %vm680_vm7 = vcmp.gt.f32.partialorder %v498_v41, 0.0  ;;  %v744_v50 = vmul.f32 0.2, %v498_v41 }
 0x123   :  { %vm712_vm8 = vcmp.gt.f32.partialorder %v626_v43, 0.0  ;;  %v842_v51 = vsel %vm714_vm6, %v634_v40, %v778_v48  ;;  %v776_v52 = vmul.f32 0.2, %v626_v43  ;;  %vm683_vm9 = vcmp.gt.f32.partialorder %v509_v44, 0.0 }
 0x124   :  { %1158 = vst.msk [vmem:[%s2079_s3 + $0xd4] sm:$0xf] %vm1104_vm1, %v1358_v46  ;;  %v747_v53 = vmul.f32 0.2, %v509_v44  ;;  %1131 = vst.msk [vmem:[%s2079_s3 + $0x68] sm:$0xf] %vm1104_vm1, %v1331_v49  ;;  %v1363_v54 = vpack.c.bf16 %v842_v51, %v842_v51  ;;  %v808_v55 = vsel %vm680_vm7, %v498_v41, %v744_v50  ;;  %v501_v60 = vadd.f32 %v1675_v35, %v1902_v63 }
 0x125   :  { %vm715_vm10 = vcmp.gt.f32.partialorder %v637_v45, 0.0  ;;  %v779_v56 = vmul.f32 0.2, %v637_v45  ;;  %v1329_v57 = vpack.c.bf16 %v808_v55, %v808_v55  ;;  %v840_v58 = vsel %vm712_vm8, %v626_v43, %v776_v52 }
 0x126   :  { %v811_v59 = vsel %vm683_vm9, %v509_v44, %v747_v53  ;;  %1163 = vst.msk [vmem:[%s2079_s3 + $0xe8] sm:$0xf] %vm1104_vm1, %v1363_v54  ;;  %v1361_v61 = vpack.c.bf16 %v840_v58, %v840_v58  ;;  %v629_v2 = vadd.f32 %v1675_v35, %v1904_v0  ;;  %vm681_vm11 = vcmp.gt.f32.partialorder %v501_v60, 0.0 }
 0x127   :  { %v1332_v62 = vpack.c.bf16 %v811_v59, %v811_v59  ;;  %v843_v1 = vsel %vm715_vm10, %v637_v45, %v779_v56  ;;  %1129 = vst.msk [vmem:[%s2079_s3 + $0x60] sm:$0xf] %vm1104_vm1, %v1329_v57  ;;  %v745_v4 = vmul.f32 0.2, %v501_v60  ;;  %v522_v63 = vadd.f32 %v1930_v14, %v1675_v35 }
 0x128   :  { %v1364_v3 = vpack.c.bf16 %v843_v1, %v843_v1  ;;  %1161 = vst.msk [vmem:[%s2079_s3 + $0xe0] sm:$0xf] %vm1104_vm1, %v1361_v61  ;;  %vm713_vm12 = vcmp.gt.f32.partialorder %v629_v2, 0.0  ;;  %v777_v0 = vmul.f32 0.2, %v629_v2  ;;  %v650_v5 = vadd.f32 %v1932_v15, %v1675_v35 }
 0x129   :  { %1132 = vst.msk [vmem:[%s2079_s3 + $0x6c] sm:$0xf] %vm1104_vm1, %v1332_v62  ;;  %v514_v6 = vadd.f32 %v1675_v35, %v1934_v19  ;;  %v809_v7 = vsel %vm681_vm11, %v501_v60, %v745_v4  ;;  %vm686_vm13 = vcmp.gt.f32.partialorder %v522_v63, 0.0  ;;  %v750_v8 = vmul.f32 0.2, %v522_v63 }
 0x12a   :  { %1164 = vst.msk [vmem:[%s2079_s3 + $0xec] sm:$0xf] %vm1104_vm1, %v1364_v3  ;;  %v642_v9 = vadd.f32 %v1675_v35, %v1952_v27  ;;  %v1330_v10 = vpack.c.bf16 %v809_v7, %v809_v7  ;;  %v841_v11 = vsel %vm713_vm12, %v629_v2, %v777_v0  ;;  %vm718_vm14 = vcmp.gt.f32.partialorder %v650_v5, 0.0 }
 0x12b   :  { %v782_v12 = vmul.f32 0.2, %v650_v5  ;;  %v1362_v13 = vpack.c.bf16 %v841_v11, %v841_v11  ;;  %v814_v14 = vsel %vm686_vm13, %v522_v63, %v750_v8  ;;  %vm684_vm15 = vcmp.gt.f32.partialorder %v514_v6, 0.0 }
 0x12c   :  { %v748_v15 = vmul.f32 0.2, %v514_v6  ;;  %1130 = vst.msk [vmem:[%s2079_s3 + $0x64] sm:$0xf] %vm1104_vm1, %v1330_v10  ;;  %v1335_v16 = vpack.c.bf16 %v814_v14, %v814_v14  ;;  %vm716_vm0 = vcmp.gt.f32.partialorder %v642_v9, 0.0  ;;  %v525_v21 = vadd.f32 %v1954_v28, %v1675_v35 }
 0x12d   :  { %v846_v17 = vsel %vm718_vm14, %v650_v5, %v782_v12  ;;  %v780_v18 = vmul.f32 0.2, %v642_v9  ;;  %1162 = vst.msk [vmem:[%s2079_s3 + $0xe4] sm:$0xf] %vm1104_vm1, %v1362_v13  ;;  %v653_v22 = vadd.f32 %v1956_v33, %v1675_v35  ;;  %v517_v25 = vadd.f32 %v1675_v35, %v1958_v34 }
 0x12e   :  { %v1367_v19 = vpack.c.bf16 %v846_v17, %v846_v17  ;;  %v812_v20 = vsel %vm684_vm15, %v514_v6, %v748_v15  ;;  %1135 = vst.msk [vmem:[%s2079_s3 + $0x78] sm:$0xf] %vm1104_vm1, %v1335_v16  ;;  %v645_v27 = vadd.f32 %v1675_v35, %v1960_v26  ;;  %vm687_vm2 = vcmp.gt.f32.partialorder %v525_v21, 0.0 }
 0x12f   :  { %v1333_v23 = vpack.c.bf16 %v812_v20, %v812_v20  ;;  %v844_v24 = vsel %vm716_vm0, %v642_v9, %v780_v18  ;;  %v751_v29 = vmul.f32 0.2, %v525_v21  ;;  %vm719_vm3 = vcmp.gt.f32.partialorder %v653_v22, 0.0 }
 0x130   :  { %1167 = vst.msk [vmem:[%s2079_s3 + $0xf8] sm:$0xf] %vm1104_vm1, %v1367_v19  ;;  %v1365_v28 = vpack.c.bf16 %v844_v24, %v844_v24  ;;  %v783_v30 = vmul.f32 0.2, %v653_v22  ;;  %vm685_vm4 = vcmp.gt.f32.partialorder %v517_v25, 0.0  ;;  %vm717_vm5 = vcmp.gt.f32.partialorder %v645_v27, 0.0 }
 0x131   :  { %1133 = vst.msk [vmem:[%s2079_s3 + $0x70] sm:$0xf] %vm1104_vm1, %v1333_v23  ;;  %v749_v31 = vmul.f32 0.2, %v517_v25  ;;  %v815_v35 = vsel %vm687_vm2, %v525_v21, %v751_v29  ;;  %v781_v32 = vmul.f32 0.2, %v645_v27 }
 0x132   :  { %1165 = vst.msk [vmem:[%s2079_s3 + $0xf0] sm:$0xf] %vm1104_vm1, %v1365_v28  ;;  %v1336_v33 = vpack.c.bf16 %v815_v35, %v815_v35  ;;  %v847_v34 = vsel %vm719_vm3, %v653_v22, %v783_v30 }
 0x133   :  { %v813_v36 = vsel %vm685_vm4, %v517_v25, %v749_v31  ;;  %v1368_v37 = vpack.c.bf16 %v847_v34, %v847_v34  ;;  %v845_v26 = vsel %vm717_vm5, %v645_v27, %v781_v32 }
 0x134   :  { %v1334_v38 = vpack.c.bf16 %v813_v36, %v813_v36  ;;  %1136 = vst.msk [vmem:[%s2079_s3 + $0x7c] sm:$0xf] %vm1104_vm1, %v1336_v33  ;;  %v1366_v39 = vpack.c.bf16 %v845_v26, %v845_v26 }
 0x135   :  { %1168 = vst.msk [vmem:[%s2079_s3 + $0xfc] sm:$0xf] %vm1104_vm1, %v1368_v37 }
 0x136   :  { %1134 = vst.msk [vmem:[%s2079_s3 + $0x74] sm:$0xf] %vm1104_vm1, %v1334_v38  ;;  %1166 = vst.msk [vmem:[%s2079_s3 + $0xf4] sm:$0xf] %vm1104_vm1, %v1366_v39 }

// kernel: discriminator_forward.5
= control target key start
LH: loop header
LB: loop body
LE: loop exit
PB: predicated region body
PF: predicated region fallthrough
CT: control target
= control target key end

     0   :  { %s2463_s1 = inlined_call_operand.vmem [shape: bf16[1024,128], index: 1, kind: input, shape index: {}]   ;;  %s2464_s0 = inlined_call_operand.vmem [shape: bf16[128,1024], index: 0, kind: input, shape index: {}]   ;;  %s2465_s2 = inlined_call_operand.vmem [shape: f32[1,128], index: 2, kind: input, shape index: {}]   ;;  %s2466_s3 = inlined_call_operand.vmem [shape: bf16[128,128], index: 3, kind: output, shape index: {}]  }
   0x1   :  { %v1902_v0 = vld [vmem:[%s2463_s1 + $0x40] sm:$0xff]   ;;  %v1906_v4 = vld [vmem:[%s2463_s1 + $0x48] sm:$0xff]   ;;  %v1910_v8 = vld [vmem:[%s2463_s1 + $0x50] sm:$0xff]  }
   0x2   :  { %v1903_v1 = vld [vmem:[%s2463_s1 + $0xc0] sm:$0xff]   ;;  %1646 = vmatprep.subr.bf16.mxu0 %v1902_v0  ;;  %v1907_v5 = vld [vmem:[%s2463_s1 + $0xc8] sm:$0xff]   ;;  %v1911_v9 = vld [vmem:[%s2463_s1 + $0xd0] sm:$0xff]  }
   0x3   :  { %v1904_v2 = vld [vmem:[%s2463_s1] sm:$0xff]   ;;  %1710 = vmatprep.subr.bf16.mxu1 %v1903_v1  ;;  %v1908_v6 = vld [vmem:[%s2463_s1 + $0x8] sm:$0xff]   ;;  %v1912_v10 = vld [vmem:[%s2463_s1 + $0x10] sm:$0xff]  }
   0x4   :  { %v1905_v3 = vld [vmem:[%s2463_s1 + $0x80] sm:$0xff]   ;;  %1647 = vmatpush3.bf16.msra.mxu0 %v1904_v2  ;;  %v1909_v7 = vld [vmem:[%s2463_s1 + $0x88] sm:$0xff]   ;;  %v1913_v11 = vld [vmem:[%s2463_s1 + $0x90] sm:$0xff]  }
   0x5   :  { %1711 = vmatpush3.bf16.msra.mxu1 %v1905_v3  ;;  %1648 = vmatprep.subr.bf16.mxu0 %v1906_v4  ;;  %v1914_v12 = vld [vmem:[%s2463_s1 + $0x58] sm:$0xff]   ;;  %v1918_v16 = vld [vmem:[%s2463_s1 + $0x60] sm:$0xff]   ;;  %v1922_v20 = vld [vmem:[%s2463_s1 + $0x68] sm:$0xff]  }
   0x6   :  { %1712 = vmatprep.subr.bf16.mxu1 %v1907_v5  ;;  %v1915_v13 = vld [vmem:[%s2463_s1 + $0xd8] sm:$0xff]   ;;  %v1919_v17 = vld [vmem:[%s2463_s1 + $0xe0] sm:$0xff]   ;;  %v1923_v21 = vld [vmem:[%s2463_s1 + $0xe8] sm:$0xff]  }
   0x7   :  { %v1916_v14 = vld [vmem:[%s2463_s1 + $0x18] sm:$0xff]   ;;  %v1920_v18 = vld [vmem:[%s2463_s1 + $0x20] sm:$0xff]   ;;  %v1924_v22 = vld [vmem:[%s2463_s1 + $0x28] sm:$0xff]  }
   0x8   :  { %1649 = vmatpush3.bf16.msra.mxu0 %v1908_v6  ;;  %v1917_v15 = vld [vmem:[%s2463_s1 + $0x98] sm:$0xff]   ;;  %v1921_v19 = vld [vmem:[%s2463_s1 + $0xa0] sm:$0xff]   ;;  %v1925_v23 = vld [vmem:[%s2463_s1 + $0xa8] sm:$0xff]  }
   0x9   :  { %1713 = vmatpush3.bf16.msra.mxu1 %v1909_v7  ;;  %1650 = vmatprep.subr.bf16.mxu0 %v1910_v8  ;;  %v1926_v24 = vld [vmem:[%s2463_s1 + $0x70] sm:$0xff]   ;;  %v1930_v28 = vld [vmem:[%s2463_s1 + $0x78] sm:$0xff]   ;;  %v15_v32 = vld [vmem:[%s2464_s0] sm:$0xff] }
   0xa   :  { %1714 = vmatprep.subr.bf16.mxu1 %v1911_v9  ;;  %v1927_v25 = vld [vmem:[%s2463_s1 + $0xf0] sm:$0xff]   ;;  %v1931_v29 = vld [vmem:[%s2463_s1 + $0xf8] sm:$0xff]   ;;  %v19_v33 = vld [vmem:[%s2464_s0 + $0x20] sm:$0xff] }
   0xb   :  { %v1928_v26 = vld [vmem:[%s2463_s1 + $0x30] sm:$0xff]   ;;  %v1932_v30 = vld [vmem:[%s2463_s1 + $0x38] sm:$0xff]   ;;  %v16_v34 = vld [vmem:[%s2464_s0 + $0x8] sm:$0xff]  ;;  %v1439_v35 = vcombine.low %v15_v32, %v19_v33  ;;  %v1440_v36 = vcombine.high %v15_v32, %v19_v33 }
   0xc   :  { %1651 = vmatpush3.bf16.msra.mxu0 %v1912_v10  ;;  %v1929_v27 = vld [vmem:[%s2463_s1 + $0xb0] sm:$0xff]   ;;  %v1933_v31 = vld [vmem:[%s2463_s1 + $0xb8] sm:$0xff]   ;;  %v20_v37 = vld [vmem:[%s2464_s0 + $0x28] sm:$0xff] }
   0xd   :  { %1715 = vmatpush3.bf16.msra.mxu1 %v1913_v11  ;;  %1652 = vmatprep.subr.bf16.mxu0 %v1914_v12  ;;  %v1441_v38 = vcombine.low %v16_v34, %v20_v37  ;;  %v1442_v39 = vcombine.high %v16_v34, %v20_v37  ;;  %v1934_v40 = vld [vmem:[%s2463_s1 + $0x140] sm:$0xff]   ;;  %v24_v47 = vld [vmem:[%s2464_s0 + $0x48] sm:$0xff]  ;;  %v1942_v62 = vld [vmem:[%s2463_s1 + $0x150] sm:$0xff]  }
   0xe   :  { %1716 = vmatprep.subr.bf16.mxu1 %v1915_v13  ;;  %950 = vmatprep.mubr.bf16.mxu0 %v1440_v36  ;;  %v1935_v41 = vld [vmem:[%s2463_s1 + $0x100] sm:$0xff]   ;;  %v28_v48 = vld [vmem:[%s2464_s0 + $0x68] sm:$0xff]  ;;  %v1943_v63 = vld [vmem:[%s2463_s1 + $0x110] sm:$0xff]  }
   0xf   :  { %1047 = vmatprep.mubr.bf16.mxu1 %v1442_v39  ;;  %v1936_v42 = vld [vmem:[%s2463_s1 + $0x1c0] sm:$0xff]   ;;  %v1450_v49 = vcombine.high %v24_v47, %v28_v48  ;;  %v1938_v50 = vld [vmem:[%s2463_s1 + $0x148] sm:$0xff]   ;;  %v1449_v53 = vcombine.low %v24_v47, %v28_v48  ;;  %v1944_v0 = vld [vmem:[%s2463_s1 + $0x1d0] sm:$0xff]  }
  0x10   :  { %1653 = vmatpush3.bf16.msra.mxu0 %v1916_v14  ;;  %v1937_v43 = vld [vmem:[%s2463_s1 + $0x180] sm:$0xff]   ;;  %v1939_v52 = vld [vmem:[%s2463_s1 + $0x108] sm:$0xff]   ;;  %v1945_v1 = vld [vmem:[%s2463_s1 + $0x190] sm:$0xff]  }
  0x11   :  { %1717 = vmatpush3.bf16.msra.mxu1 %v1917_v15  ;;  %1654 = vmatprep.subr.bf16.mxu0 %v1918_v16  ;;  %v23_v44 = vld [vmem:[%s2464_s0 + $0x40] sm:$0xff]  ;;  %v1940_v54 = vld [vmem:[%s2463_s1 + $0x1c8] sm:$0xff]   ;;  %v1946_v10 = vld [vmem:[%s2463_s1 + $0x158] sm:$0xff]  }
  0x12   :  { %1718 = vmatprep.subr.bf16.mxu1 %v1919_v17  ;;  %v27_v45 = vld [vmem:[%s2464_s0 + $0x60] sm:$0xff]  ;;  %v1941_v55 = vld [vmem:[%s2463_s1 + $0x188] sm:$0xff]   ;;  %v1947_v11 = vld [vmem:[%s2463_s1 + $0x118] sm:$0xff]  }
  0x13   :  { %v1448_v46 = vcombine.high %v23_v44, %v27_v45  ;;  %v1447_v51 = vcombine.low %v23_v44, %v27_v45  ;;  %v31_v56 = vld [vmem:[%s2464_s0 + $0x80] sm:$0xff]  ;;  %v32_v58 = vld [vmem:[%s2464_s0 + $0x88] sm:$0xff]  ;;  %v1948_v12 = vld [vmem:[%s2463_s1 + $0x1d8] sm:$0xff]  }
  0x14   :  { %1655 = vmatpush3.bf16.msra.mxu0 %v1920_v18  ;;  %v35_v57 = vld [vmem:[%s2464_s0 + $0xa0] sm:$0xff]  ;;  %v36_v59 = vld [vmem:[%s2464_s0 + $0xa8] sm:$0xff]  ;;  %v1949_v13 = vld [vmem:[%s2463_s1 + $0x198] sm:$0xff]  }
  0x15   :  { %1719 = vmatpush3.bf16.msra.mxu1 %v1921_v19  ;;  %1656 = vmatprep.subr.bf16.mxu0 %v1922_v20  ;;  %v1456_v60 = vcombine.high %v31_v56, %v35_v57  ;;  %v1458_v61 = vcombine.high %v32_v58, %v36_v59  ;;  %v1455_v2 = vcombine.low %v31_v56, %v35_v57  ;;  %v39_v3 = vld [vmem:[%s2464_s0 + $0xc0] sm:$0xff]  ;;  %v40_v5 = vld [vmem:[%s2464_s0 + $0xc8] sm:$0xff]  ;;  %v1959_v39 = vld [vmem:[%s2463_s1 + $0x130] sm:$0xff]  }
  0x16   :  { %1720 = vmatprep.subr.bf16.mxu1 %v1923_v21  ;;  %v43_v4 = vld [vmem:[%s2464_s0 + $0xe0] sm:$0xff]  ;;  %v1457_v6 = vcombine.low %v32_v58, %v36_v59  ;;  %v44_v8 = vld [vmem:[%s2464_s0 + $0xe8] sm:$0xff]  ;;  %v1963_v48 = vld [vmem:[%s2463_s1 + $0x138] sm:$0xff]  }
  0x17   :  { %v1464_v7 = vcombine.high %v39_v3, %v43_v4  ;;  %v1466_v9 = vcombine.high %v40_v5, %v44_v8  ;;  %v47_v14 = vld [vmem:[%s2464_s0 + $0x100] sm:$0xff]  ;;  %v48_v16 = vld [vmem:[%s2464_s0 + $0x108] sm:$0xff]  ;;  %v1463_v19 = vcombine.low %v39_v3, %v43_v4  ;;  %v1465_v21 = vcombine.low %v40_v5, %v44_v8  ;;  %v26_v8 = vld [vmem:[%s2464_s0 + $0x58] sm:$0xff] }
  0x18   :  { %1657 = vmatpush3.bf16.msra.mxu0 %v1924_v22  ;;  %v51_v15 = vld [vmem:[%s2464_s0 + $0x120] sm:$0xff]  ;;  %v52_v17 = vld [vmem:[%s2464_s0 + $0x128] sm:$0xff] }
  0x19   :  { %1721 = vmatpush3.bf16.msra.mxu1 %v1925_v23  ;;  %1658 = vmatprep.subr.bf16.mxu0 %v1926_v24  ;;  %v1950_v18 = vld [vmem:[%s2463_s1 + $0x160] sm:$0xff]   ;;  %v1472_v22 = vcombine.high %v47_v14, %v51_v15  ;;  %v1474_v24 = vcombine.high %v48_v16, %v52_v17  ;;  %v1956_v32 = vld [vmem:[%s2463_s1 + $0x1e8] sm:$0xff]   ;;  %v1471_v34 = vcombine.low %v47_v14, %v51_v15  ;;  %v33_v14 = vld [vmem:[%s2464_s0 + $0x90] sm:$0xff] }
  0x1a   :  { %1722 = vmatprep.subr.bf16.mxu1 %v1927_v25  ;;  %v1951_v20 = vld [vmem:[%s2463_s1 + $0x120] sm:$0xff]   ;;  %v1957_v33 = vld [vmem:[%s2463_s1 + $0x1a8] sm:$0xff]   ;;  %v37_v15 = vld [vmem:[%s2464_s0 + $0xb0] sm:$0xff] }
  0x1b   :  { %v1952_v23 = vld [vmem:[%s2463_s1 + $0x1e0] sm:$0xff]   ;;  %v64_v44 = vld [vmem:[%s2464_s0 + $0x188] sm:$0xff] }
  0x1c   :  { %1659 = vmatpush3.bf16.msra.mxu0 %v1928_v26  ;;  %v1953_v25 = vld [vmem:[%s2463_s1 + $0x1a0] sm:$0xff]   ;;  %v68_v45 = vld [vmem:[%s2464_s0 + $0x1a8] sm:$0xff] }
  0x1d   :  { %1723 = vmatpush3.bf16.msra.mxu1 %v1929_v27  ;;  %1660 = vmatprep.subr.bf16.mxu0 %v1930_v28  ;;  %v55_v26 = vld [vmem:[%s2464_s0 + $0x140] sm:$0xff]  ;;  %v1954_v28 = vld [vmem:[%s2463_s1 + $0x168] sm:$0xff]   ;;  %v1489_v59 = vcombine.low %v64_v44, %v68_v45 }
  0x1e   :  { %1724 = vmatprep.subr.bf16.mxu1 %v1931_v29  ;;  %v59_v27 = vld [vmem:[%s2464_s0 + $0x160] sm:$0xff]  ;;  %v56_v29 = vld [vmem:[%s2464_s0 + $0x148] sm:$0xff] }
  0x1f   :  { %v1480_v36 = vcombine.high %v55_v26, %v59_v27  ;;  %v1479_v47 = vcombine.low %v55_v26, %v59_v27  ;;  %v72_v56 = vld [vmem:[%s2464_s0 + $0x1c8] sm:$0xff]  ;;  %v1459_v26 = vcombine.low %v33_v14, %v37_v15 }
  0x20   :  { %1661 = vmatpush3.bf16.msra.mxu0 %v1932_v30  ;;  %v60_v30 = vld [vmem:[%s2464_s0 + $0x168] sm:$0xff] }
  0x21   :  { %1725 = vmatpush3.bf16.msra.mxu1 %v1933_v31  ;;  %1774 = vmatprep.subr.bf16.mxu0 %v1934_v40  ;;  %v1955_v31 = vld [vmem:[%s2463_s1 + $0x128] sm:$0xff]   ;;  %v1482_v37 = vcombine.high %v56_v29, %v60_v30  ;;  %v1960_v40 = vld [vmem:[%s2463_s1 + $0x1f0] sm:$0xff]  }
  0x22   :  { %1838 = vmatprep.subr.bf16.mxu1 %v1936_v42  ;;  %v67_v42 = vld [vmem:[%s2464_s0 + $0x1a0] sm:$0xff]  ;;  %v76_v57 = vld [vmem:[%s2464_s0 + $0x1e8] sm:$0xff] }
  0x23   :  { %951 = vmatmul.mubr.bf16.vlgmr.msra.gmra.mrb[0].mxu0 %v1439_v35  ;;  %v1473_v35 = vcombine.low %v48_v16, %v52_v17  ;;  %v1497_v3 = vcombine.low %v72_v56, %v76_v57  ;;  %v34_v16 = vld [vmem:[%s2464_s0 + $0x98] sm:$0xff] }
  0x24   :  { %1048 = vmatmul.mubr.bf16.vlgmr.msra.gmra.mrb[0].mxu1 %v1441_v38  ;;  %1775 = vmatpush3.bf16.msra.mxu0 %v1935_v41  ;;  %v1958_v38 = vld [vmem:[%s2463_s1 + $0x170] sm:$0xff]   ;;  %v63_v41 = vld [vmem:[%s2464_s0 + $0x180] sm:$0xff]  ;;  %v38_v17 = vld [vmem:[%s2464_s0 + $0xb8] sm:$0xff] }
  0x25   :  { %1839 = vmatpush3.bf16.msra.mxu1 %v1937_v43  ;;  %958 = vmatprep.mubr.bf16.mxu0 %v1448_v46  ;;  %v1961_v43 = vld [vmem:[%s2463_s1 + $0x1b0] sm:$0xff]   ;;  %v1962_v46 = vld [vmem:[%s2463_s1 + $0x178] sm:$0xff]   ;;  %v1487_v58 = vcombine.low %v63_v41, %v67_v42  ;;  %v1461_v27 = vcombine.low %v34_v16, %v38_v17 }
  0x26   :  { %1055 = vmatprep.mubr.bf16.mxu1 %v1450_v49  ;;  %1776 = vmatprep.subr.bf16.mxu0 %v1938_v50  ;;  %v1481_v49 = vcombine.low %v56_v29, %v60_v30  ;;  %v1488_v50 = vcombine.high %v63_v41, %v67_v42  ;;  %v49_v30 = vld [vmem:[%s2464_s0 + $0x110] sm:$0xff]  ;;  %v62_v41 = vld [vmem:[%s2464_s0 + $0x178] sm:$0xff] }
  0x27   :  { %1840 = vmatprep.subr.bf16.mxu1 %v1940_v54  ;;  %v71_v54 = vld [vmem:[%s2464_s0 + $0x1c0] sm:$0xff] }
  0x28   :  { %1777 = vmatpush3.bf16.msra.mxu0 %v1939_v52  ;;  %v1490_v52 = vcombine.high %v64_v44, %v68_v45 }
  0x29   :  { %1841 = vmatpush3.bf16.msra.mxu1 %v1941_v55  ;;  %1778 = vmatprep.subr.bf16.mxu0 %v1942_v62  ;;  %v75_v55 = vld [vmem:[%s2464_s0 + $0x1e0] sm:$0xff]  ;;  %v17_v62 = vld [vmem:[%s2464_s0 + $0x10] sm:$0xff] }
  0x2a   :  { %1842 = vmatprep.subr.bf16.mxu1 %v1944_v0  ;;  %v18_v0 = vld [vmem:[%s2464_s0 + $0x18] sm:$0xff] }
  0x2b   :  { %959 = vmatmul.mubr.bf16.gmra.mrb[4].mxu0 %v1447_v51  ;;  %v1964_v51 = vld [vmem:[%s2463_s1 + $0x1f8] sm:$0xff]  }
  0x2c   :  { %1056 = vmatmul.mubr.bf16.gmra.mrb[4].mxu1 %v1449_v53  ;;  %966 = vmatprep.mubr.bf16.mxu0 %v1456_v60  ;;  %v1965_v53 = vld [vmem:[%s2463_s1 + $0x1b8] sm:$0xff]   ;;  %v1496_v60 = vcombine.high %v71_v54, %v75_v55 }
  0x2d   :  { %1063 = vmatprep.mubr.bf16.mxu1 %v1458_v61  ;;  %1779 = vmatpush3.bf16.msra.mxu0 %v1943_v63  ;;  %v1498_v61 = vcombine.high %v72_v56, %v76_v57  ;;  %v21_v63 = vld [vmem:[%s2464_s0 + $0x30] sm:$0xff]  ;;  %v74_v56 = vld [vmem:[%s2464_s0 + $0x1d8] sm:$0xff] }
  0x2e   :  { %1843 = vmatpush3.bf16.msra.mxu1 %v1945_v1  ;;  %1780 = vmatprep.subr.bf16.mxu0 %v1946_v10  ;;  %v22_v1 = vld [vmem:[%s2464_s0 + $0x38] sm:$0xff]  ;;  %v1444_v4 = vcombine.high %v17_v62, %v21_v63  ;;  %v1443_v10 = vcombine.low %v17_v62, %v21_v63 }
  0x2f   :  { %1844 = vmatprep.subr.bf16.mxu1 %v1948_v12  ;;  %v1446_v5 = vcombine.high %v18_v0, %v22_v1  ;;  %v78_v57 = vld [vmem:[%s2464_s0 + $0x1f8] sm:$0xff] }
  0x30   :  { %v1501_v63 = vcombine.low %v74_v56, %v78_v57 }
  0x31   :  { %1781 = vmatpush3.bf16.msra.mxu0 %v1947_v11  ;;  %v1445_v11 = vcombine.low %v18_v0, %v22_v1 }
  0x32   :  { %1845 = vmatpush3.bf16.msra.mxu1 %v1949_v13  ;;  %1782 = vmatprep.subr.bf16.mxu0 %v1950_v18 }
  0x33   :  { %967 = vmatmul.mubr.bf16.gmra.mrb[8].mxu0 %v1455_v2  ;;  %1846 = vmatprep.subr.bf16.mxu1 %v1952_v23  ;;  %v1495_v2 = vcombine.low %v71_v54, %v75_v55  ;;  %v45_v23 = vld [vmem:[%s2464_s0 + $0xf0] sm:$0xff] }
  0x34   :  { %1064 = vmatmul.mubr.bf16.gmra.mrb[8].mxu1 %v1457_v6  ;;  %974 = vmatprep.mubr.bf16.mxu0 %v1464_v7  ;;  %v25_v6 = vld [vmem:[%s2464_s0 + $0x50] sm:$0xff] }
  0x35   :  { %1071 = vmatprep.mubr.bf16.mxu1 %v1466_v9  ;;  %1783 = vmatpush3.bf16.msra.mxu0 %v1951_v20  ;;  %v29_v7 = vld [vmem:[%s2464_s0 + $0x70] sm:$0xff]  ;;  %v30_v9 = vld [vmem:[%s2464_s0 + $0x78] sm:$0xff]  ;;  %v1460_v20 = vcombine.high %v33_v14, %v37_v15 }
  0x36   :  { %1847 = vmatpush3.bf16.msra.mxu1 %v1953_v25  ;;  %1784 = vmatprep.subr.bf16.mxu0 %v1954_v28  ;;  %v1452_v12 = vcombine.high %v25_v6, %v29_v7  ;;  %v1454_v13 = vcombine.high %v26_v8, %v30_v9  ;;  %v1451_v18 = vcombine.low %v25_v6, %v29_v7  ;;  %v46_v25 = vld [vmem:[%s2464_s0 + $0xf8] sm:$0xff]  ;;  %v73_v54 = vld [vmem:[%s2464_s0 + $0x1d0] sm:$0xff] }
  0x37   :  { %1848 = vmatprep.subr.bf16.mxu1 %v1956_v32  ;;  %v50_v32 = vld [vmem:[%s2464_s0 + $0x118] sm:$0xff]  ;;  %v77_v55 = vld [vmem:[%s2464_s0 + $0x1f0] sm:$0xff] }
  0x38   :  { %v1499_v62 = vcombine.low %v73_v54, %v77_v55 }
  0x39   :  { %1785 = vmatpush3.bf16.msra.mxu0 %v1955_v31  ;;  %v53_v31 = vld [vmem:[%s2464_s0 + $0x130] sm:$0xff] }
  0x3a   :  { %1849 = vmatpush3.bf16.msra.mxu1 %v1957_v33  ;;  %1786 = vmatprep.subr.bf16.mxu0 %v1958_v38  ;;  %v54_v33 = vld [vmem:[%s2464_s0 + $0x138] sm:$0xff]  ;;  %v57_v38 = vld [vmem:[%s2464_s0 + $0x150] sm:$0xff]  ;;  %v1475_v42 = vcombine.low %v49_v30, %v53_v31 }
  0x3b   :  { %975 = vmatmul.mubr.bf16.gmra.mrb[12].mxu0 %v1463_v19  ;;  %1850 = vmatprep.subr.bf16.mxu1 %v1960_v40  ;;  %v1453_v19 = vcombine.low %v26_v8, %v30_v9  ;;  %v58_v40 = vld [vmem:[%s2464_s0 + $0x158] sm:$0xff] }
  0x3c   :  { %1072 = vmatmul.mubr.bf16.gmra.mrb[12].mxu1 %v1465_v21  ;;  %982 = vmatprep.mubr.bf16.mxu0 %v1472_v22  ;;  %v1462_v21 = vcombine.high %v34_v16, %v38_v17  ;;  %v41_v22 = vld [vmem:[%s2464_s0 + $0xd0] sm:$0xff]  ;;  %v1486_v45 = vcombine.high %v58_v40, %v62_v41 }
  0x3d   :  { %1079 = vmatprep.mubr.bf16.mxu1 %v1474_v24  ;;  %1787 = vmatpush3.bf16.msra.mxu0 %v1959_v39  ;;  %v42_v24 = vld [vmem:[%s2464_s0 + $0xd8] sm:$0xff]  ;;  %v1468_v28 = vcombine.high %v41_v22, %v45_v23  ;;  %v61_v39 = vld [vmem:[%s2464_s0 + $0x170] sm:$0xff] }
  0x3e   :  { %1851 = vmatpush3.bf16.msra.mxu1 %v1961_v43  ;;  %1788 = vmatprep.subr.bf16.mxu0 %v1962_v46  ;;  %v1470_v29 = vcombine.high %v42_v24, %v46_v25  ;;  %v1477_v43 = vcombine.low %v50_v32, %v54_v33  ;;  %v1484_v44 = vcombine.high %v57_v38, %v61_v39  ;;  %v65_v46 = vld [vmem:[%s2464_s0 + $0x190] sm:$0xff] }
  0x3f   :  { %1852 = vmatprep.subr.bf16.mxu1 %v1964_v51  ;;  %v1485_v51 = vcombine.low %v58_v40, %v62_v41 }
  0x41   :  { %1789 = vmatpush3.bf16.msra.mxu0 %v1963_v48  ;;  %v66_v48 = vld [vmem:[%s2464_s0 + $0x198] sm:$0xff] }
  0x42   :  { %1853 = vmatpush3.bf16.msra.mxu1 %v1965_v53 }
  0x43   :  { %983 = vmatmul.mubr.bf16.gmra.mrb[16].mxu0 %v1471_v34  ;;  %v1467_v34 = vcombine.low %v41_v22, %v45_v23 }
  0x44   :  { %1080 = vmatmul.mubr.bf16.gmra.mrb[16].mxu1 %v1473_v35  ;;  %990 = vmatprep.mubr.bf16.mxu0 %v1480_v36  ;;  %v1469_v35 = vcombine.low %v42_v24, %v46_v25  ;;  %v1476_v36 = vcombine.high %v49_v30, %v53_v31 }
  0x45   :  { %1087 = vmatprep.mubr.bf16.mxu1 %v1482_v37  ;;  %v1478_v37 = vcombine.high %v50_v32, %v54_v33 }
  0x4b   :  { %991 = vmatmul.mubr.bf16.gmra.mrb[20].mxu0 %v1479_v47  ;;  %v69_v47 = vld [vmem:[%s2464_s0 + $0x1b0] sm:$0xff] }
  0x4c   :  { %1088 = vmatmul.mubr.bf16.gmra.mrb[20].mxu1 %v1481_v49  ;;  %998 = vmatprep.mubr.bf16.mxu0 %v1488_v50  ;;  %v70_v49 = vld [vmem:[%s2464_s0 + $0x1b8] sm:$0xff]  ;;  %v1483_v50 = vcombine.low %v57_v38, %v61_v39 }
  0x4d   :  { %1095 = vmatprep.mubr.bf16.mxu1 %v1490_v52  ;;  %v1492_v52 = vcombine.high %v65_v46, %v69_v47  ;;  %v1494_v53 = vcombine.high %v66_v48, %v70_v49 }
  0x53   :  { %999 = vmatmul.mubr.bf16.gmra.mrb[24].mxu0 %v1487_v58  ;;  %v1491_v58 = vcombine.low %v65_v46, %v69_v47 }
  0x54   :  { %1096 = vmatmul.mubr.bf16.gmra.mrb[24].mxu1 %v1489_v59  ;;  %1006 = vmatprep.mubr.bf16.mxu0 %v1496_v60  ;;  %v1493_v59 = vcombine.low %v66_v48, %v70_v49  ;;  %v1500_v60 = vcombine.high %v73_v54, %v77_v55 }
  0x55   :  { %1103 = vmatprep.mubr.bf16.mxu1 %v1498_v61  ;;  %v1502_v61 = vcombine.high %v74_v56, %v78_v57 }
  0x5b   :  { %1007 = vmatmul.mubr.bf16.gmra.mrb[28].mxu0 %v1495_v2  ;;  %v2373_v2 = vld [vmem:[%s2465_s2] ss:$0 sm:$0xff] }
  0x5c   :  { %1104 = vmatmul.mubr.bf16.gmra.mrb[28].mxu1 %v1497_v3  ;;  %1144 = vmatprep.mubr.bf16.mxu0 %v1444_v4 }
  0x5d   :  { %1241 = vmatprep.mubr.bf16.mxu1 %v1446_v5 }
  0x63   :  { %1145 = vmatmul.mubr.bf16.vlgmr.msra.gmra.mrb[32].mxu0 %v1443_v10 }
  0x64   :  { %1242 = vmatmul.mubr.bf16.vlgmr.msra.gmra.mrb[32].mxu1 %v1445_v11  ;;  %1152 = vmatprep.mubr.bf16.mxu0 %v1452_v12 }
  0x65   :  { %1249 = vmatprep.mubr.bf16.mxu1 %v1454_v13 }
  0x6b   :  { %1153 = vmatmul.mubr.bf16.gmra.mrb[36].mxu0 %v1451_v18 }
  0x6c   :  { %1250 = vmatmul.mubr.bf16.gmra.mrb[36].mxu1 %v1453_v19  ;;  %1160 = vmatprep.mubr.bf16.mxu0 %v1460_v20 }
  0x6d   :  { %1257 = vmatprep.mubr.bf16.mxu1 %v1462_v21 }
  0x73   :  { %1161 = vmatmul.mubr.bf16.gmra.mrb[40].mxu0 %v1459_v26 }
  0x74   :  { %1258 = vmatmul.mubr.bf16.gmra.mrb[40].mxu1 %v1461_v27  ;;  %1168 = vmatprep.mubr.bf16.mxu0 %v1468_v28 }
  0x75   :  { %1265 = vmatprep.mubr.bf16.mxu1 %v1470_v29 }
  0x7b   :  { %1169 = vmatmul.mubr.bf16.gmra.mrb[44].mxu0 %v1467_v34 }
  0x7c   :  { %1266 = vmatmul.mubr.bf16.gmra.mrb[44].mxu1 %v1469_v35  ;;  %1176 = vmatprep.mubr.bf16.mxu0 %v1476_v36 }
  0x7d   :  { %1273 = vmatprep.mubr.bf16.mxu1 %v1478_v37 }
  0x83   :  { %1177 = vmatmul.mubr.bf16.gmra.mrb[48].mxu0 %v1475_v42 }
  0x84   :  { %1274 = vmatmul.mubr.bf16.gmra.mrb[48].mxu1 %v1477_v43  ;;  %1184 = vmatprep.mubr.bf16.mxu0 %v1484_v44 }
  0x85   :  { %1281 = vmatprep.mubr.bf16.mxu1 %v1486_v45 }
  0x8b   :  { %1185 = vmatmul.mubr.bf16.gmra.mrb[52].mxu0 %v1483_v50 }
  0x8c   :  { %1282 = vmatmul.mubr.bf16.gmra.mrb[52].mxu1 %v1485_v51  ;;  %1192 = vmatprep.mubr.bf16.mxu0 %v1492_v52 }
  0x8d   :  { %1289 = vmatprep.mubr.bf16.mxu1 %v1494_v53 }
  0x93   :  { %1193 = vmatmul.mubr.bf16.gmra.mrb[56].mxu0 %v1491_v58 }
  0x94   :  { %1290 = vmatmul.mubr.bf16.gmra.mrb[56].mxu1 %v1493_v59  ;;  %1200 = vmatprep.mubr.bf16.mxu0 %v1500_v60 }
  0x95   :  { %1297 = vmatprep.mubr.bf16.mxu1 %v1502_v61 }
  0x9b   :  { %1201 = vmatmul.mubr.bf16.gmra.mrb[60].mxu0 %v1499_v62 }
  0x9c   :  { %1298 = vmatmul.mubr.bf16.gmra.mrb[60].mxu1 %v1501_v63 }
  0xf6   :  { %v1662_v0 = vpop.f32.mrb[0].mxu0 }
  0xf7   :  { %v1726_v1 = vpop.f32.mrb[0].mxu1  ;;  %v1663_v3 = vpop.f32.mrb[1].mxu0 }
  0xf8   :  { %v1664_v4 = vadd.f32 %v1663_v3, %v1662_v0  ;;  %v1727_v5 = vpop.f32.mrb[1].mxu1  ;;  %v1665_v6 = vpop.f32.mrb[2].mxu0 }
  0xf9   :  { %v1728_v7 = vadd.f32 %v1727_v5, %v1726_v1  ;;  %v1729_v8 = vpop.f32.mrb[2].mxu1  ;;  %v1666_v9 = vpop.f32.mrb[3].mxu0 }
  0xfa   :  { %v953_v10 = vadd.f32 %v1664_v4, %v2373_v2  ;;  %v1667_v11 = vadd.f32 %v1666_v9, %v1665_v6  ;;  %v1730_v12 = vpop.f32.mrb[3].mxu1 }
  0xfb   :  { %v1731_v13 = vadd.f32 %v1730_v12, %v1729_v8 }
  0xfc   :  { %v2376_v14 = vadd.f32 %v1728_v7, %v953_v10  ;;  %v956_v15 = vadd.f32 %v1667_v11, %v2373_v2 }
  0xfe   :  { %v2379_v16 = vadd.f32 %v1731_v13, %v956_v15  ;;  %v1668_v17 = vpop.f32.mrb[4].mxu0 }
  0xff   :  { %v1732_v18 = vpop.f32.mrb[4].mxu1  ;;  %v1669_v19 = vpop.f32.mrb[5].mxu0 }
 0x100   :  { %v1670_v20 = vadd.f32 %v1669_v19, %v1668_v17  ;;  %v1733_v21 = vpop.f32.mrb[5].mxu1  ;;  %v1671_v22 = vpop.f32.mrb[6].mxu0 }
 0x101   :  { %v1734_v23 = vadd.f32 %v1733_v21, %v1732_v18  ;;  %v1735_v24 = vpop.f32.mrb[6].mxu1  ;;  %v1672_v25 = vpop.f32.mrb[7].mxu0 }
 0x102   :  { %v961_v26 = vadd.f32 %v1670_v20, %v2373_v2  ;;  %v1673_v27 = vadd.f32 %v1672_v25, %v1671_v22  ;;  %v1736_v28 = vpop.f32.mrb[7].mxu1 }
 0x103   :  { %v1737_v29 = vadd.f32 %v1736_v28, %v1735_v24 }
 0x104   :  { %v2382_v30 = vadd.f32 %v1734_v23, %v961_v26  ;;  %v964_v31 = vadd.f32 %v1673_v27, %v2373_v2 }
 0x106   :  { %v2385_v32 = vadd.f32 %v1737_v29, %v964_v31  ;;  %v1674_v33 = vpop.f32.mrb[8].mxu0 }
 0x107   :  { %v1738_v34 = vpop.f32.mrb[8].mxu1  ;;  %v1675_v35 = vpop.f32.mrb[9].mxu0 }
 0x108   :  { %v1676_v36 = vadd.f32 %v1675_v35, %v1674_v33  ;;  %v1739_v37 = vpop.f32.mrb[9].mxu1  ;;  %v1677_v38 = vpop.f32.mrb[10].mxu0 }
 0x109   :  { %v1740_v39 = vadd.f32 %v1739_v37, %v1738_v34  ;;  %v1741_v40 = vpop.f32.mrb[10].mxu1  ;;  %v1678_v41 = vpop.f32.mrb[11].mxu0 }
 0x10a   :  { %v969_v42 = vadd.f32 %v1676_v36, %v2373_v2  ;;  %v1679_v43 = vadd.f32 %v1678_v41, %v1677_v38  ;;  %v1742_v44 = vpop.f32.mrb[11].mxu1 }
 0x10b   :  { %v1743_v45 = vadd.f32 %v1742_v44, %v1741_v40 }
 0x10c   :  { %v2388_v46 = vadd.f32 %v1740_v39, %v969_v42  ;;  %v972_v47 = vadd.f32 %v1679_v43, %v2373_v2 }
 0x10e   :  { %v2391_v48 = vadd.f32 %v1743_v45, %v972_v47  ;;  %v1680_v49 = vpop.f32.mrb[12].mxu0 }
 0x10f   :  { %v1744_v50 = vpop.f32.mrb[12].mxu1  ;;  %v1681_v51 = vpop.f32.mrb[13].mxu0 }
 0x110   :  { %v1682_v52 = vadd.f32 %v1681_v51, %v1680_v49  ;;  %v1745_v53 = vpop.f32.mrb[13].mxu1  ;;  %v1683_v54 = vpop.f32.mrb[14].mxu0 }
 0x111   :  { %v1746_v55 = vadd.f32 %v1745_v53, %v1744_v50  ;;  %v1747_v56 = vpop.f32.mrb[14].mxu1  ;;  %v1684_v57 = vpop.f32.mrb[15].mxu0 }
 0x112   :  { %v977_v58 = vadd.f32 %v1682_v52, %v2373_v2  ;;  %v1685_v59 = vadd.f32 %v1684_v57, %v1683_v54  ;;  %v1748_v60 = vpop.f32.mrb[15].mxu1 }
 0x113   :  { %v1749_v61 = vadd.f32 %v1748_v60, %v1747_v56 }
 0x114   :  { %v2394_v62 = vadd.f32 %v1746_v55, %v977_v58  ;;  %v980_v63 = vadd.f32 %v1685_v59, %v2373_v2 }
 0x116   :  { %v2397_v0 = vadd.f32 %v1749_v61, %v980_v63  ;;  %v1686_v1 = vpop.f32.mrb[16].mxu0 }
 0x117   :  { %v1750_v3 = vpop.f32.mrb[16].mxu1  ;;  %v1687_v4 = vpop.f32.mrb[17].mxu0 }
 0x118   :  { %v1688_v5 = vadd.f32 %v1687_v4, %v1686_v1  ;;  %v1751_v6 = vpop.f32.mrb[17].mxu1  ;;  %v1689_v7 = vpop.f32.mrb[18].mxu0 }
 0x119   :  { %v1752_v8 = vadd.f32 %v1751_v6, %v1750_v3  ;;  %v1753_v9 = vpop.f32.mrb[18].mxu1  ;;  %v1690_v10 = vpop.f32.mrb[19].mxu0 }
 0x11a   :  { %v985_v11 = vadd.f32 %v1688_v5, %v2373_v2  ;;  %v1691_v12 = vadd.f32 %v1690_v10, %v1689_v7  ;;  %v1754_v13 = vpop.f32.mrb[19].mxu1 }
 0x11b   :  { %v1755_v15 = vadd.f32 %v1754_v13, %v1753_v9 }
 0x11c   :  { %v2400_v17 = vadd.f32 %v1752_v8, %v985_v11  ;;  %v988_v18 = vadd.f32 %v1691_v12, %v2373_v2 }
 0x11e   :  { %v2403_v19 = vadd.f32 %v1755_v15, %v988_v18  ;;  %v1692_v20 = vpop.f32.mrb[20].mxu0 }
 0x11f   :  { %v1756_v21 = vpop.f32.mrb[20].mxu1  ;;  %v1693_v22 = vpop.f32.mrb[21].mxu0 }
 0x120   :  { %v1694_v23 = vadd.f32 %v1693_v22, %v1692_v20  ;;  %v1757_v24 = vpop.f32.mrb[21].mxu1  ;;  %v1695_v25 = vpop.f32.mrb[22].mxu0 }
 0x121   :  { %v1758_v26 = vadd.f32 %v1757_v24, %v1756_v21  ;;  %v1759_v27 = vpop.f32.mrb[22].mxu1  ;;  %v1696_v28 = vpop.f32.mrb[23].mxu0 }
 0x122   :  { %v993_v29 = vadd.f32 %v1694_v23, %v2373_v2  ;;  %v1697_v31 = vadd.f32 %v1696_v28, %v1695_v25  ;;  %v1760_v33 = vpop.f32.mrb[23].mxu1 }
 0x123   :  { %v1761_v34 = vadd.f32 %v1760_v33, %v1759_v27 }
 0x124   :  { %v2406_v35 = vadd.f32 %v1758_v26, %v993_v29  ;;  %v996_v36 = vadd.f32 %v1697_v31, %v2373_v2 }
 0x126   :  { %v2409_v37 = vadd.f32 %v1761_v34, %v996_v36  ;;  %v1698_v38 = vpop.f32.mrb[24].mxu0 }
 0x127   :  { %v1762_v39 = vpop.f32.mrb[24].mxu1  ;;  %v1699_v40 = vpop.f32.mrb[25].mxu0 }
 0x128   :  { %v1700_v41 = vadd.f32 %v1699_v40, %v1698_v38  ;;  %v1763_v42 = vpop.f32.mrb[25].mxu1  ;;  %v1701_v43 = vpop.f32.mrb[26].mxu0 }
 0x129   :  { %v1764_v44 = vadd.f32 %v1763_v42, %v1762_v39  ;;  %v1765_v45 = vpop.f32.mrb[26].mxu1  ;;  %v1702_v47 = vpop.f32.mrb[27].mxu0 }
 0x12a   :  { %v1001_v49 = vadd.f32 %v1700_v41, %v2373_v2  ;;  %v1703_v50 = vadd.f32 %v1702_v47, %v1701_v43  ;;  %v1766_v51 = vpop.f32.mrb[27].mxu1 }
 0x12b   :  { %v1767_v52 = vadd.f32 %v1766_v51, %v1765_v45 }
 0x12c   :  { %v2412_v53 = vadd.f32 %v1764_v44, %v1001_v49  ;;  %v1004_v54 = vadd.f32 %v1703_v50, %v2373_v2 }
 0x12e   :  { %v2415_v55 = vadd.f32 %v1767_v52, %v1004_v54  ;;  %v1704_v56 = vpop.f32.mrb[28].mxu0 }
 0x12f   :  { %v1768_v57 = vpop.f32.mrb[28].mxu1  ;;  %v1705_v58 = vpop.f32.mrb[29].mxu0 }
 0x130   :  { %v1706_v59 = vadd.f32 %v1705_v58, %v1704_v56  ;;  %v1769_v60 = vpop.f32.mrb[29].mxu1  ;;  %v1707_v61 = vpop.f32.mrb[30].mxu0 }
 0x131   :  { %v1770_v63 = vadd.f32 %v1769_v60, %v1768_v57  ;;  %v1771_v1 = vpop.f32.mrb[30].mxu1  ;;  %v1708_v3 = vpop.f32.mrb[31].mxu0 }
 0x132   :  { %v1009_v4 = vadd.f32 %v1706_v59, %v2373_v2  ;;  %v1709_v5 = vadd.f32 %v1708_v3, %v1707_v61  ;;  %v1772_v6 = vpop.f32.mrb[31].mxu1 }
 0x133   :  { %v1773_v7 = vadd.f32 %v1772_v6, %v1771_v1 }
 0x134   :  { %v2418_v8 = vadd.f32 %v1770_v63, %v1009_v4  ;;  %v1012_v9 = vadd.f32 %v1709_v5, %v2373_v2 }
 0x136   :  { %v2421_v10 = vadd.f32 %v1773_v7, %v1012_v9  ;;  %v1790_v11 = vpop.f32.mrb[32].mxu0 }
 0x137   :  { %v1854_v12 = vpop.f32.mrb[32].mxu1  ;;  %v1791_v13 = vpop.f32.mrb[33].mxu0 }
 0x138   :  { %v1792_v15 = vadd.f32 %v1791_v13, %v1790_v11  ;;  %v1855_v18 = vpop.f32.mrb[33].mxu1  ;;  %v1793_v20 = vpop.f32.mrb[34].mxu0 }
 0x139   :  { %v1856_v21 = vadd.f32 %v1855_v18, %v1854_v12  ;;  %v1857_v22 = vpop.f32.mrb[34].mxu1  ;;  %v1794_v23 = vpop.f32.mrb[35].mxu0 }
 0x13a   :  { %v1147_v24 = vadd.f32 %v1792_v15, %v2376_v14  ;;  %v1795_v25 = vadd.f32 %v1794_v23, %v1793_v20  ;;  %v1858_v26 = vpop.f32.mrb[35].mxu1 }
 0x13b   :  { %v1859_v27 = vadd.f32 %v1858_v26, %v1857_v22 }
 0x13c   :  { %v1244_v28 = vadd.f32 %v1856_v21, %v1147_v24  ;;  %v1150_v29 = vadd.f32 %v1795_v25, %v2379_v16 }
 0x13e   :  { %v1322_v2 = vmul.f32 0.2, %v1244_v28  ;;  %v1247_v31 = vadd.f32 %v1859_v27, %v1150_v29  ;;  %v1796_v33 = vpop.f32.mrb[36].mxu0  ;;  %vm1306_vm0 = vcmp.gt.f32.partialorder %v1244_v28, 0.0 }
 0x13f   :  { %v1860_v34 = vpop.f32.mrb[36].mxu1  ;;  %v1797_v36 = vpop.f32.mrb[37].mxu0 }
 0x140   :  { %vm1307_vm1 = vcmp.gt.f32.partialorder %v1247_v31, 0.0  ;;  %v1323_v38 = vmul.f32 0.2, %v1247_v31  ;;  %v1798_v39 = vadd.f32 %v1797_v36, %v1796_v33  ;;  %v1861_v40 = vpop.f32.mrb[37].mxu1  ;;  %v1799_v41 = vpop.f32.mrb[38].mxu0  ;;  %v1338_v44 = vsel %vm1306_vm0, %v1244_v28, %v1322_v2 }
 0x141   :  { %v1862_v42 = vadd.f32 %v1861_v40, %v1860_v34  ;;  %v1863_v43 = vpop.f32.mrb[38].mxu1  ;;  %v1800_v14 = vpop.f32.mrb[39].mxu0 }
 0x142   :  { %v1339_v45 = vsel %vm1307_vm1, %v1247_v31, %v1323_v38  ;;  %v1155_v47 = vadd.f32 %v1798_v39, %v2382_v30  ;;  %v1801_v49 = vadd.f32 %v1800_v14, %v1799_v41  ;;  %v1864_v16 = vpop.f32.mrb[39].mxu1 }
 0x143   :  { %v1602_v50 = vpack.c.bf16 %v1339_v45, %v1338_v44  ;;  %v1865_v51 = vadd.f32 %v1864_v16, %v1863_v43 }
 0x144   :  { %v1252_v52 = vadd.f32 %v1862_v42, %v1155_v47  ;;  %v1158_v54 = vadd.f32 %v1801_v49, %v2385_v32 }
 0x145   :  { %1603 = vst [vmem:[%s2466_s3] sm:$0xff] %v1602_v50  }
 0x146   :  { %v1324_v56 = vmul.f32 0.2, %v1252_v52  ;;  %v1255_v57 = vadd.f32 %v1865_v51, %v1158_v54  ;;  %v1802_v58 = vpop.f32.mrb[40].mxu0  ;;  %vm1308_vm2 = vcmp.gt.f32.partialorder %v1252_v52, 0.0 }
 0x147   :  { %v1866_v59 = vpop.f32.mrb[40].mxu1  ;;  %v1803_v60 = vpop.f32.mrb[41].mxu0 }
 0x148   :  { %vm1309_vm3 = vcmp.gt.f32.partialorder %v1255_v57, 0.0  ;;  %v1325_v61 = vmul.f32 0.2, %v1255_v57  ;;  %v1804_v30 = vadd.f32 %v1803_v60, %v1802_v58  ;;  %v1867_v63 = vpop.f32.mrb[41].mxu1  ;;  %v1805_v1 = vpop.f32.mrb[42].mxu0  ;;  %v1340_v6 = vsel %vm1308_vm2, %v1252_v52, %v1324_v56 }
 0x149   :  { %v1868_v3 = vadd.f32 %v1867_v63, %v1866_v59  ;;  %v1869_v4 = vpop.f32.mrb[42].mxu1  ;;  %v1806_v5 = vpop.f32.mrb[43].mxu0 }
 0x14a   :  { %v1341_v32 = vsel %vm1309_vm3, %v1255_v57, %v1325_v61  ;;  %v1163_v7 = vadd.f32 %v1804_v30, %v2388_v46  ;;  %v1807_v9 = vadd.f32 %v1806_v5, %v1805_v1  ;;  %v1870_v11 = vpop.f32.mrb[43].mxu1 }
 0x14b   :  { %v1607_v12 = vpack.c.bf16 %v1341_v32, %v1340_v6  ;;  %v1871_v13 = vadd.f32 %v1870_v11, %v1869_v4 }
 0x14c   :  { %v1260_v15 = vadd.f32 %v1868_v3, %v1163_v7  ;;  %v1166_v18 = vadd.f32 %v1807_v9, %v2391_v48 }
 0x14d   :  { %1639 = vst [vmem:[%s2466_s3 + $0x8] sm:$0xff] %v1607_v12  }
 0x14e   :  { %v1326_v20 = vmul.f32 0.2, %v1260_v15  ;;  %v1263_v21 = vadd.f32 %v1871_v13, %v1166_v18  ;;  %v1808_v22 = vpop.f32.mrb[44].mxu0  ;;  %vm1310_vm4 = vcmp.gt.f32.partialorder %v1260_v15, 0.0 }
 0x14f   :  { %v1872_v23 = vpop.f32.mrb[44].mxu1  ;;  %v1809_v24 = vpop.f32.mrb[45].mxu0 }
 0x150   :  { %vm1311_vm5 = vcmp.gt.f32.partialorder %v1263_v21, 0.0  ;;  %v1327_v25 = vmul.f32 0.2, %v1263_v21  ;;  %v1810_v46 = vadd.f32 %v1809_v24, %v1808_v22  ;;  %v1873_v26 = vpop.f32.mrb[45].mxu1  ;;  %v1811_v27 = vpop.f32.mrb[46].mxu0  ;;  %v1342_v31 = vsel %vm1310_vm4, %v1260_v15, %v1326_v20 }
 0x151   :  { %v1874_v28 = vadd.f32 %v1873_v26, %v1872_v23  ;;  %v1875_v29 = vpop.f32.mrb[46].mxu1  ;;  %v1812_v2 = vpop.f32.mrb[47].mxu0 }
 0x152   :  { %v1343_v48 = vsel %vm1311_vm5, %v1263_v21, %v1327_v25  ;;  %v1171_v33 = vadd.f32 %v1810_v46, %v2394_v62  ;;  %v1813_v34 = vadd.f32 %v1812_v2, %v1811_v27  ;;  %v1876_v36 = vpop.f32.mrb[47].mxu1 }
 0x153   :  { %v1612_v38 = vpack.c.bf16 %v1343_v48, %v1342_v31  ;;  %v1877_v39 = vadd.f32 %v1876_v36, %v1875_v29 }
 0x154   :  { %v1268_v40 = vadd.f32 %v1874_v28, %v1171_v33  ;;  %v1174_v41 = vadd.f32 %v1813_v34, %v2397_v0 }
 0x155   :  { %1640 = vst [vmem:[%s2466_s3 + $0x10] sm:$0xff] %v1612_v38  }
 0x156   :  { %v1328_v42 = vmul.f32 0.2, %v1268_v40  ;;  %v1271_v43 = vadd.f32 %v1877_v39, %v1174_v41  ;;  %v1814_v14 = vpop.f32.mrb[48].mxu0  ;;  %vm1312_vm6 = vcmp.gt.f32.partialorder %v1268_v40, 0.0 }
 0x157   :  { %v1878_v44 = vpop.f32.mrb[48].mxu1  ;;  %v1815_v45 = vpop.f32.mrb[49].mxu0 }
 0x158   :  { %vm1313_vm7 = vcmp.gt.f32.partialorder %v1271_v43, 0.0  ;;  %v1329_v47 = vmul.f32 0.2, %v1271_v43  ;;  %v1816_v62 = vadd.f32 %v1815_v45, %v1814_v14  ;;  %v1879_v49 = vpop.f32.mrb[49].mxu1  ;;  %v1817_v16 = vpop.f32.mrb[50].mxu0  ;;  %v1344_v54 = vsel %vm1312_vm6, %v1268_v40, %v1328_v42 }
 0x159   :  { %v1880_v50 = vadd.f32 %v1879_v49, %v1878_v44  ;;  %v1881_v51 = vpop.f32.mrb[50].mxu1  ;;  %v1818_v52 = vpop.f32.mrb[51].mxu0 }
 0x15a   :  { %v1345_v0 = vsel %vm1313_vm7, %v1271_v43, %v1329_v47  ;;  %v1179_v56 = vadd.f32 %v1816_v62, %v2400_v17  ;;  %v1819_v57 = vadd.f32 %v1818_v52, %v1817_v16  ;;  %v1882_v58 = vpop.f32.mrb[51].mxu1 }
 0x15b   :  { %v1617_v59 = vpack.c.bf16 %v1345_v0, %v1344_v54  ;;  %v1883_v60 = vadd.f32 %v1882_v58, %v1881_v51 }
 0x15c   :  { %v1276_v61 = vadd.f32 %v1880_v50, %v1179_v56  ;;  %v1182_v30 = vadd.f32 %v1819_v57, %v2403_v19 }
 0x15d   :  { %1641 = vst [vmem:[%s2466_s3 + $0x18] sm:$0xff] %v1617_v59  }
 0x15e   :  { %v1330_v63 = vmul.f32 0.2, %v1276_v61  ;;  %v1279_v1 = vadd.f32 %v1883_v60, %v1182_v30  ;;  %v1820_v3 = vpop.f32.mrb[52].mxu0  ;;  %vm1314_vm8 = vcmp.gt.f32.partialorder %v1276_v61, 0.0 }
 0x15f   :  { %v1884_v4 = vpop.f32.mrb[52].mxu1  ;;  %v1821_v5 = vpop.f32.mrb[53].mxu0 }
 0x160   :  { %vm1315_vm9 = vcmp.gt.f32.partialorder %v1279_v1, 0.0  ;;  %v1331_v6 = vmul.f32 0.2, %v1279_v1  ;;  %v1822_v17 = vadd.f32 %v1821_v5, %v1820_v3  ;;  %v1885_v32 = vpop.f32.mrb[53].mxu1  ;;  %v1823_v7 = vpop.f32.mrb[54].mxu0  ;;  %v1346_v13 = vsel %vm1314_vm8, %v1276_v61, %v1330_v63 }
 0x161   :  { %v1886_v9 = vadd.f32 %v1885_v32, %v1884_v4  ;;  %v1887_v11 = vpop.f32.mrb[54].mxu1  ;;  %v1824_v12 = vpop.f32.mrb[55].mxu0 }
 0x162   :  { %v1347_v19 = vsel %vm1315_vm9, %v1279_v1, %v1331_v6  ;;  %v1187_v15 = vadd.f32 %v1822_v17, %v2406_v35  ;;  %v1825_v18 = vadd.f32 %v1824_v12, %v1823_v7  ;;  %v1888_v20 = vpop.f32.mrb[55].mxu1 }
 0x163   :  { %v1622_v21 = vpack.c.bf16 %v1347_v19, %v1346_v13  ;;  %v1889_v22 = vadd.f32 %v1888_v20, %v1887_v11 }
 0x164   :  { %v1284_v23 = vadd.f32 %v1886_v9, %v1187_v15  ;;  %v1190_v24 = vadd.f32 %v1825_v18, %v2409_v37 }
 0x165   :  { %1642 = vst [vmem:[%s2466_s3 + $0x20] sm:$0xff] %v1622_v21  }
 0x166   :  { %v1332_v25 = vmul.f32 0.2, %v1284_v23  ;;  %v1287_v46 = vadd.f32 %v1889_v22, %v1190_v24  ;;  %v1826_v26 = vpop.f32.mrb[56].mxu0  ;;  %vm1316_vm10 = vcmp.gt.f32.partialorder %v1284_v23, 0.0 }
 0x167   :  { %v1890_v27 = vpop.f32.mrb[56].mxu1  ;;  %v1827_v28 = vpop.f32.mrb[57].mxu0 }
 0x168   :  { %vm1317_vm11 = vcmp.gt.f32.partialorder %v1287_v46, 0.0  ;;  %v1333_v29 = vmul.f32 0.2, %v1287_v46  ;;  %v1828_v35 = vadd.f32 %v1827_v28, %v1826_v26  ;;  %v1891_v2 = vpop.f32.mrb[57].mxu1  ;;  %v1829_v31 = vpop.f32.mrb[58].mxu0  ;;  %v1348_v36 = vsel %vm1316_vm10, %v1284_v23, %v1332_v25 }
 0x169   :  { %v1892_v48 = vadd.f32 %v1891_v2, %v1890_v27  ;;  %v1893_v33 = vpop.f32.mrb[58].mxu1  ;;  %v1830_v34 = vpop.f32.mrb[59].mxu0 }
 0x16a   :  { %v1349_v37 = vsel %vm1317_vm11, %v1287_v46, %v1333_v29  ;;  %v1195_v38 = vadd.f32 %v1828_v35, %v2412_v53  ;;  %v1831_v39 = vadd.f32 %v1830_v34, %v1829_v31  ;;  %v1894_v40 = vpop.f32.mrb[59].mxu1 }
 0x16b   :  { %v1627_v41 = vpack.c.bf16 %v1349_v37, %v1348_v36  ;;  %v1895_v42 = vadd.f32 %v1894_v40, %v1893_v33 }
 0x16c   :  { %v1292_v43 = vadd.f32 %v1892_v48, %v1195_v38  ;;  %v1198_v14 = vadd.f32 %v1831_v39, %v2415_v55 }
 0x16d   :  { %1643 = vst [vmem:[%s2466_s3 + $0x28] sm:$0xff] %v1627_v41  }
 0x16e   :  { %v1334_v44 = vmul.f32 0.2, %v1292_v43  ;;  %v1295_v45 = vadd.f32 %v1895_v42, %v1198_v14  ;;  %v1832_v47 = vpop.f32.mrb[60].mxu0  ;;  %vm1318_vm12 = vcmp.gt.f32.partialorder %v1292_v43, 0.0 }
 0x16f   :  { %v1896_v62 = vpop.f32.mrb[60].mxu1  ;;  %v1833_v49 = vpop.f32.mrb[61].mxu0 }
 0x170   :  { %vm1319_vm13 = vcmp.gt.f32.partialorder %v1295_v45, 0.0  ;;  %v1335_v16 = vmul.f32 0.2, %v1295_v45  ;;  %v1834_v53 = vadd.f32 %v1833_v49, %v1832_v47  ;;  %v1897_v50 = vpop.f32.mrb[61].mxu1  ;;  %v1835_v51 = vpop.f32.mrb[62].mxu0  ;;  %v1350_v56 = vsel %vm1318_vm12, %v1292_v43, %v1334_v44 }
 0x171   :  { %v1898_v52 = vadd.f32 %v1897_v50, %v1896_v62  ;;  %v1899_v54 = vpop.f32.mrb[62].mxu1  ;;  %v1836_v0 = vpop.f32.mrb[63].mxu0 }
 0x172   :  { %v1351_v55 = vsel %vm1319_vm13, %v1295_v45, %v1335_v16  ;;  %v1203_v57 = vadd.f32 %v1834_v53, %v2418_v8  ;;  %v1837_v58 = vadd.f32 %v1836_v0, %v1835_v51  ;;  %v1900_v59 = vpop.f32.mrb[63].mxu1 }
 0x173   :  { %v1632_v60 = vpack.c.bf16 %v1351_v55, %v1350_v56  ;;  %v1901_v61 = vadd.f32 %v1900_v59, %v1899_v54 }
 0x174   :  { %v1300_v30 = vadd.f32 %v1898_v52, %v1203_v57  ;;  %v1206_v63 = vadd.f32 %v1837_v58, %v2421_v10 }
 0x175   :  { %1644 = vst [vmem:[%s2466_s3 + $0x30] sm:$0xff] %v1632_v60  }
 0x176   :  { %v1336_v1 = vmul.f32 0.2, %v1300_v30  ;;  %v1303_v3 = vadd.f32 %v1901_v61, %v1206_v63  ;;  %vm1320_vm14 = vcmp.gt.f32.partialorder %v1300_v30, 0.0 }
 0x178   :  { %vm1321_vm15 = vcmp.gt.f32.partialorder %v1303_v3, 0.0  ;;  %v1337_v4 = vmul.f32 0.2, %v1303_v3  ;;  %v1352_v5 = vsel %vm1320_vm14, %v1300_v30, %v1336_v1 }
 0x17a   :  { %v1353_v6 = vsel %vm1321_vm15, %v1303_v3, %v1337_v4 }
 0x17b   :  { %v1637_v17 = vpack.c.bf16 %v1353_v6, %v1352_v5 }
 0x17d   :  { %1645 = vst [vmem:[%s2466_s3 + $0x38] sm:$0xff] %v1637_v17  }

// kernel: discriminator_forward.6
= control target key start
LH: loop header
LB: loop body
LE: loop exit
PB: predicated region body
PF: predicated region fallthrough
CT: control target
= control target key end

     0   :  { %s3925_s1 = inlined_call_operand.vmem [shape: bf16[2048,256], index: 1, kind: input, shape index: {}]   ;;  %s3926_s0 = inlined_call_operand.vmem [shape: bf16[32,2048], index: 0, kind: input, shape index: {}]   ;;  %s3927_s2 = inlined_call_operand.vmem [shape: f32[1,256], index: 2, kind: input, shape index: {}]   ;;  %s3928_s3 = inlined_call_operand.vmem [shape: bf16[32,256], index: 3, kind: output, shape index: {}]  }
   0x1   :  { %v2594_v0 = vld [vmem:[%s3925_s1 + $0x4] ss:$8 sps:$4 sm:$0xff]   ;;  %v2598_v2 = vld [vmem:[%s3925_s1] ss:$8 sps:$4 sm:$0xff]   ;;  %v2600_v4 = vld [vmem:[%s3925_s1 + $0x14] ss:$8 sps:$4 sm:$0xff]  }
   0x2   :  { %v2596_v1 = vld [vmem:[%s3925_s1 + $0x404] ss:$8 sps:$4 sm:$0xff]   ;;  %1754 = vmatprep.subr.bf16.mxu1 %v2594_v0  ;;  %v2599_v3 = vld [vmem:[%s3925_s1 + $0x400] ss:$8 sps:$4 sm:$0xff]   ;;  %v2602_v5 = vld [vmem:[%s3925_s1 + $0x414] ss:$8 sps:$4 sm:$0xff]  }
   0x3   :  { %1966 = vmatprep.subr.bf16.mxu0 %v2596_v1  ;;  %1755 = vmatpush1.bf16.msra.mxu1 %v2598_v2  ;;  %v2604_v6 = vld [vmem:[%s3925_s1 + $0x10] ss:$8 sps:$4 sm:$0xff]   ;;  %v2606_v8 = vld [vmem:[%s3925_s1 + $0x24] ss:$8 sps:$4 sm:$0xff]   ;;  %v2610_v10 = vld [vmem:[%s3925_s1 + $0x20] ss:$8 sps:$4 sm:$0xff]  }
   0x4   :  { %1967 = vmatpush1.bf16.msra.mxu0 %v2599_v3  ;;  %1756 = vmatprep.subr.bf16.mxu1 %v2600_v4  ;;  %v2605_v7 = vld [vmem:[%s3925_s1 + $0x410] ss:$8 sps:$4 sm:$0xff]   ;;  %v2608_v9 = vld [vmem:[%s3925_s1 + $0x424] ss:$8 sps:$4 sm:$0xff]   ;;  %v2611_v11 = vld [vmem:[%s3925_s1 + $0x420] ss:$8 sps:$4 sm:$0xff]  }
   0x5   :  { %1968 = vmatprep.subr.bf16.mxu0 %v2602_v5  ;;  %v2612_v12 = vld [vmem:[%s3925_s1 + $0x34] ss:$8 sps:$4 sm:$0xff]   ;;  %v2616_v14 = vld [vmem:[%s3925_s1 + $0x30] ss:$8 sps:$4 sm:$0xff]   ;;  %v2618_v16 = vld [vmem:[%s3925_s1 + $0x44] ss:$8 sps:$4 sm:$0xff]  }
   0x6   :  { %v2614_v13 = vld [vmem:[%s3925_s1 + $0x434] ss:$8 sps:$4 sm:$0xff]   ;;  %v2617_v15 = vld [vmem:[%s3925_s1 + $0x430] ss:$8 sps:$4 sm:$0xff]   ;;  %v2620_v17 = vld [vmem:[%s3925_s1 + $0x444] ss:$8 sps:$4 sm:$0xff]  }
   0x7   :  { %1757 = vmatpush1.bf16.msra.mxu1 %v2604_v6  ;;  %v2622_v18 = vld [vmem:[%s3925_s1 + $0x40] ss:$8 sps:$4 sm:$0xff]   ;;  %v2624_v20 = vld [vmem:[%s3925_s1 + $0x54] ss:$8 sps:$4 sm:$0xff]   ;;  %v2628_v22 = vld [vmem:[%s3925_s1 + $0x50] ss:$8 sps:$4 sm:$0xff]  }
   0x8   :  { %1969 = vmatpush1.bf16.msra.mxu0 %v2605_v7  ;;  %1758 = vmatprep.subr.bf16.mxu1 %v2606_v8  ;;  %v2623_v19 = vld [vmem:[%s3925_s1 + $0x440] ss:$8 sps:$4 sm:$0xff]   ;;  %v2626_v21 = vld [vmem:[%s3925_s1 + $0x454] ss:$8 sps:$4 sm:$0xff]   ;;  %v2629_v23 = vld [vmem:[%s3925_s1 + $0x450] ss:$8 sps:$4 sm:$0xff]  }
   0x9   :  { %1970 = vmatprep.subr.bf16.mxu0 %v2608_v9  ;;  %v2630_v24 = vld [vmem:[%s3925_s1 + $0x64] ss:$8 sps:$4 sm:$0xff]   ;;  %v2634_v26 = vld [vmem:[%s3925_s1 + $0x60] ss:$8 sps:$4 sm:$0xff]   ;;  %v2636_v28 = vld [vmem:[%s3925_s1 + $0x74] ss:$8 sps:$4 sm:$0xff]  }
   0xa   :  { %v2632_v25 = vld [vmem:[%s3925_s1 + $0x464] ss:$8 sps:$4 sm:$0xff]   ;;  %v2635_v27 = vld [vmem:[%s3925_s1 + $0x460] ss:$8 sps:$4 sm:$0xff]   ;;  %v2638_v29 = vld [vmem:[%s3925_s1 + $0x474] ss:$8 sps:$4 sm:$0xff]  }
   0xb   :  { %1759 = vmatpush1.bf16.msra.mxu1 %v2610_v10  ;;  %v2640_v30 = vld [vmem:[%s3925_s1 + $0x70] ss:$8 sps:$4 sm:$0xff]   ;;  %v2642_v32 = vld [vmem:[%s3925_s1 + $0x84] ss:$8 sps:$4 sm:$0xff]   ;;  %v2646_v34 = vld [vmem:[%s3925_s1 + $0x80] ss:$8 sps:$4 sm:$0xff]  }
   0xc   :  { %1971 = vmatpush1.bf16.msra.mxu0 %v2611_v11  ;;  %1760 = vmatprep.subr.bf16.mxu1 %v2612_v12  ;;  %v2641_v31 = vld [vmem:[%s3925_s1 + $0x470] ss:$8 sps:$4 sm:$0xff]   ;;  %v2644_v33 = vld [vmem:[%s3925_s1 + $0x484] ss:$8 sps:$4 sm:$0xff]   ;;  %v2647_v35 = vld [vmem:[%s3925_s1 + $0x480] ss:$8 sps:$4 sm:$0xff]  }
   0xd   :  { %1972 = vmatprep.subr.bf16.mxu0 %v2614_v13  ;;  %v2648_v36 = vld [vmem:[%s3925_s1 + $0x94] ss:$8 sps:$4 sm:$0xff]   ;;  %v2652_v38 = vld [vmem:[%s3925_s1 + $0x90] ss:$8 sps:$4 sm:$0xff]   ;;  %v2654_v40 = vld [vmem:[%s3925_s1 + $0xa4] ss:$8 sps:$4 sm:$0xff]  }
   0xe   :  { %v2650_v37 = vld [vmem:[%s3925_s1 + $0x494] ss:$8 sps:$4 sm:$0xff]   ;;  %v2653_v39 = vld [vmem:[%s3925_s1 + $0x490] ss:$8 sps:$4 sm:$0xff]   ;;  %v2656_v41 = vld [vmem:[%s3925_s1 + $0x4a4] ss:$8 sps:$4 sm:$0xff]  }
   0xf   :  { %1761 = vmatpush1.bf16.msra.mxu1 %v2616_v14  ;;  %v2658_v42 = vld [vmem:[%s3925_s1 + $0xa0] ss:$8 sps:$4 sm:$0xff]   ;;  %v2660_v44 = vld [vmem:[%s3925_s1 + $0xb4] ss:$8 sps:$4 sm:$0xff]   ;;  %v2664_v46 = vld [vmem:[%s3925_s1 + $0xb0] ss:$8 sps:$4 sm:$0xff]  }
  0x10   :  { %1973 = vmatpush1.bf16.msra.mxu0 %v2617_v15  ;;  %1762 = vmatprep.subr.bf16.mxu1 %v2618_v16  ;;  %v2659_v43 = vld [vmem:[%s3925_s1 + $0x4a0] ss:$8 sps:$4 sm:$0xff]   ;;  %v2662_v45 = vld [vmem:[%s3925_s1 + $0x4b4] ss:$8 sps:$4 sm:$0xff]   ;;  %v2665_v47 = vld [vmem:[%s3925_s1 + $0x4b0] ss:$8 sps:$4 sm:$0xff]  }
  0x11   :  { %1974 = vmatprep.subr.bf16.mxu0 %v2620_v17  ;;  %v14_v48 = vld [vmem:[%s3926_s0] sm:$0xff]  ;;  %v2672_v58 = vld [vmem:[%s3925_s1 + $0xd4] ss:$8 sps:$4 sm:$0xff]   ;;  %v2676_v60 = vld [vmem:[%s3925_s1 + $0xd0] ss:$8 sps:$4 sm:$0xff]  }
  0x12   :  { %v22_v49 = vld [vmem:[%s3926_s0 + $0x40] sm:$0xff]  ;;  %v2674_v59 = vld [vmem:[%s3925_s1 + $0x4d4] ss:$8 sps:$4 sm:$0xff]   ;;  %v2677_v61 = vld [vmem:[%s3925_s1 + $0x4d0] ss:$8 sps:$4 sm:$0xff]  }
  0x13   :  { %1763 = vmatpush1.bf16.msra.mxu1 %v2622_v18  ;;  %v2666_v50 = vld [vmem:[%s3925_s1 + $0xc4] ss:$8 sps:$4 sm:$0xff]   ;;  %v2235_v52 = vcombine.high %v14_v48, %v22_v49  ;;  %v2670_v56 = vld [vmem:[%s3925_s1 + $0xc0] ss:$8 sps:$4 sm:$0xff]   ;;  %v2684_v2 = vld [vmem:[%s3925_s1 + $0xf4] ss:$8 sps:$4 sm:$0xff]   ;;  %v2234_v8 = vcombine.low %v14_v48, %v22_v49 }
  0x14   :  { %1975 = vmatpush1.bf16.msra.mxu0 %v2623_v19  ;;  %1764 = vmatprep.subr.bf16.mxu1 %v2624_v20  ;;  %v2668_v51 = vld [vmem:[%s3925_s1 + $0x4c4] ss:$8 sps:$4 sm:$0xff]   ;;  %v2671_v57 = vld [vmem:[%s3925_s1 + $0x4c0] ss:$8 sps:$4 sm:$0xff]   ;;  %v2686_v3 = vld [vmem:[%s3925_s1 + $0x4f4] ss:$8 sps:$4 sm:$0xff]  }
  0x15   :  { %1976 = vmatprep.subr.bf16.mxu0 %v2626_v21  ;;  %v18_v53 = vld [vmem:[%s3926_s0 + $0x20] sm:$0xff]  ;;  %1786 = vmatprep.mubr.bf16.mxu1 %v2235_v52  ;;  %v2688_v4 = vld [vmem:[%s3925_s1 + $0xf0] ss:$8 sps:$4 sm:$0xff]   ;;  %v2698_v12 = vld [vmem:[%s3925_s1 + $0x114] ss:$8 sps:$4 sm:$0xff]  }
  0x16   :  { %v26_v54 = vld [vmem:[%s3926_s0 + $0x60] sm:$0xff]  ;;  %v2689_v5 = vld [vmem:[%s3925_s1 + $0x4f0] ss:$8 sps:$4 sm:$0xff]   ;;  %v2701_v13 = vld [vmem:[%s3925_s1 + $0x514] ss:$8 sps:$4 sm:$0xff]  }
  0x17   :  { %1765 = vmatpush1.bf16.msra.mxu1 %v2628_v22  ;;  %v2243_v55 = vcombine.high %v18_v53, %v26_v54  ;;  %v2678_v62 = vld [vmem:[%s3925_s1 + $0xe4] ss:$8 sps:$4 sm:$0xff]   ;;  %v2682_v0 = vld [vmem:[%s3925_s1 + $0xe0] ss:$8 sps:$4 sm:$0xff]   ;;  %v2242_v10 = vcombine.low %v18_v53, %v26_v54  ;;  %v2696_v14 = vld [vmem:[%s3925_s1 + $0x110] ss:$8 sps:$4 sm:$0xff]  }
  0x18   :  { %1977 = vmatpush1.bf16.msra.mxu0 %v2629_v23  ;;  %1766 = vmatprep.subr.bf16.mxu1 %v2630_v24  ;;  %v2680_v63 = vld [vmem:[%s3925_s1 + $0x4e4] ss:$8 sps:$4 sm:$0xff]   ;;  %v2683_v1 = vld [vmem:[%s3925_s1 + $0x4e0] ss:$8 sps:$4 sm:$0xff]   ;;  %v2699_v15 = vld [vmem:[%s3925_s1 + $0x510] ss:$8 sps:$4 sm:$0xff]  }
  0x19   :  { %1978 = vmatprep.subr.bf16.mxu0 %v2632_v25  ;;  %1998 = vmatprep.mubr.bf16.mxu0 %v2243_v55  ;;  %v2692_v6 = vld [vmem:[%s3925_s1 + $0x104] ss:$8 sps:$4 sm:$0xff]   ;;  %v2690_v9 = vld [vmem:[%s3925_s1 + $0x100] ss:$8 sps:$4 sm:$0xff]   ;;  %v2710_v20 = vld [vmem:[%s3925_s1 + $0x134] ss:$8 sps:$4 sm:$0xff]  }
  0x1a   :  { %v2695_v7 = vld [vmem:[%s3925_s1 + $0x504] ss:$8 sps:$4 sm:$0xff]   ;;  %v2693_v11 = vld [vmem:[%s3925_s1 + $0x500] ss:$8 sps:$4 sm:$0xff]   ;;  %v2713_v21 = vld [vmem:[%s3925_s1 + $0x534] ss:$8 sps:$4 sm:$0xff]  }
  0x1b   :  { %1767 = vmatpush1.bf16.msra.mxu1 %v2634_v26  ;;  %v2704_v16 = vld [vmem:[%s3925_s1 + $0x124] ss:$8 sps:$4 sm:$0xff]   ;;  %v2702_v18 = vld [vmem:[%s3925_s1 + $0x120] ss:$8 sps:$4 sm:$0xff]   ;;  %v2708_v22 = vld [vmem:[%s3925_s1 + $0x130] ss:$8 sps:$4 sm:$0xff]  }
  0x1c   :  { %1979 = vmatpush1.bf16.msra.mxu0 %v2635_v27  ;;  %1768 = vmatprep.subr.bf16.mxu1 %v2636_v28  ;;  %v2707_v17 = vld [vmem:[%s3925_s1 + $0x524] ss:$8 sps:$4 sm:$0xff]   ;;  %v2705_v19 = vld [vmem:[%s3925_s1 + $0x520] ss:$8 sps:$4 sm:$0xff]   ;;  %v2711_v23 = vld [vmem:[%s3925_s1 + $0x530] ss:$8 sps:$4 sm:$0xff]  }
  0x1d   :  { %1980 = vmatprep.subr.bf16.mxu0 %v2638_v29  ;;  %v2716_v24 = vld [vmem:[%s3925_s1 + $0x144] ss:$8 sps:$4 sm:$0xff]   ;;  %v2714_v26 = vld [vmem:[%s3925_s1 + $0x140] ss:$8 sps:$4 sm:$0xff]   ;;  %v2722_v28 = vld [vmem:[%s3925_s1 + $0x154] ss:$8 sps:$4 sm:$0xff]  }
  0x1e   :  { %v2719_v25 = vld [vmem:[%s3925_s1 + $0x544] ss:$8 sps:$4 sm:$0xff]   ;;  %v2717_v27 = vld [vmem:[%s3925_s1 + $0x540] ss:$8 sps:$4 sm:$0xff]   ;;  %v2725_v29 = vld [vmem:[%s3925_s1 + $0x554] ss:$8 sps:$4 sm:$0xff]  }
  0x1f   :  { %1769 = vmatpush1.bf16.msra.mxu1 %v2640_v30  ;;  %v30_v30 = vld [vmem:[%s3926_s0 + $0x80] sm:$0xff]  ;;  %v3319_v49 = vld [vmem:[%s3926_s0 + $0x28] sm:$0xff]  ;;  %v2735_v52 = vld [vmem:[%s3925_s1 + $0x570] ss:$8 sps:$4 sm:$0xff]  }
  0x20   :  { %1981 = vmatpush1.bf16.msra.mxu0 %v2641_v31  ;;  %1770 = vmatprep.subr.bf16.mxu1 %v2642_v32  ;;  %v38_v31 = vld [vmem:[%s3926_s0 + $0xc0] sm:$0xff]  ;;  %v2720_v32 = vld [vmem:[%s3925_s1 + $0x150] ss:$8 sps:$4 sm:$0xff]  }
  0x21   :  { %1982 = vmatprep.subr.bf16.mxu0 %v2644_v33  ;;  %v2251_v33 = vcombine.high %v30_v30, %v38_v31  ;;  %v2740_v54 = vld [vmem:[%s3925_s1 + $0x184] ss:$8 sps:$4 sm:$0xff]  }
  0x22   :  { %v2743_v55 = vld [vmem:[%s3925_s1 + $0x584] ss:$8 sps:$4 sm:$0xff]  }
  0x23   :  { %1771 = vmatpush1.bf16.msra.mxu1 %v2646_v34  ;;  %v2723_v34 = vld [vmem:[%s3925_s1 + $0x550] ss:$8 sps:$4 sm:$0xff]  }
  0x24   :  { %1983 = vmatpush1.bf16.msra.mxu0 %v2647_v35  ;;  %1772 = vmatprep.subr.bf16.mxu1 %v2648_v36  ;;  %v34_v35 = vld [vmem:[%s3926_s0 + $0xa0] sm:$0xff] }
  0x25   :  { %1984 = vmatprep.subr.bf16.mxu0 %v2650_v37  ;;  %v42_v36 = vld [vmem:[%s3926_s0 + $0xe0] sm:$0xff]  ;;  %v2250_v37 = vcombine.low %v30_v30, %v38_v31  ;;  %v2794_v30 = vld [vmem:[%s3925_s1 + $0x214] ss:$8 sps:$4 sm:$0xff]  }
  0x26   :  { %v2797_v31 = vld [vmem:[%s3925_s1 + $0x614] ss:$8 sps:$4 sm:$0xff]  }
  0x27   :  { %1773 = vmatpush1.bf16.msra.mxu1 %v2652_v38  ;;  %v2728_v38 = vld [vmem:[%s3925_s1 + $0x164] ss:$8 sps:$4 sm:$0xff]  }
  0x28   :  { %1985 = vmatpush1.bf16.msra.mxu0 %v2653_v39  ;;  %1774 = vmatprep.subr.bf16.mxu1 %v2654_v40  ;;  %v2259_v39 = vcombine.high %v34_v35, %v42_v36  ;;  %v2258_v40 = vcombine.low %v34_v35, %v42_v36  ;;  %v2792_v36 = vld [vmem:[%s3925_s1 + $0x210] ss:$8 sps:$4 sm:$0xff]  }
  0x29   :  { %1986 = vmatprep.subr.bf16.mxu0 %v2656_v41  ;;  %v2731_v41 = vld [vmem:[%s3925_s1 + $0x564] ss:$8 sps:$4 sm:$0xff]  }
  0x2b   :  { %1775 = vmatpush1.bf16.msra.mxu1 %v2658_v42  ;;  %v2726_v42 = vld [vmem:[%s3925_s1 + $0x160] ss:$8 sps:$4 sm:$0xff]  }
  0x2c   :  { %1987 = vmatpush1.bf16.msra.mxu0 %v2659_v43  ;;  %1776 = vmatprep.subr.bf16.mxu1 %v2660_v44  ;;  %v2729_v43 = vld [vmem:[%s3925_s1 + $0x560] ss:$8 sps:$4 sm:$0xff]  }
  0x2d   :  { %1988 = vmatprep.subr.bf16.mxu0 %v2662_v45  ;;  %v3301_v44 = vld [vmem:[%s3926_s0 + $0x8] sm:$0xff] }
  0x2e   :  { %v3306_v45 = vld [vmem:[%s3926_s0 + $0x48] sm:$0xff] }
  0x2f   :  { %1777 = vmatpush1.bf16.msra.mxu1 %v2664_v46  ;;  %v2734_v46 = vld [vmem:[%s3925_s1 + $0x174] ss:$8 sps:$4 sm:$0xff]   ;;  %v2237_v48 = vcombine.high %v3301_v44, %v3306_v45 }
  0x30   :  { %1989 = vmatpush1.bf16.msra.mxu0 %v2665_v47  ;;  %1778 = vmatprep.subr.bf16.mxu1 %v2666_v50  ;;  %v2737_v47 = vld [vmem:[%s3925_s1 + $0x574] ss:$8 sps:$4 sm:$0xff]   ;;  %v3324_v50 = vld [vmem:[%s3926_s0 + $0x68] sm:$0xff] }
  0x31   :  { %1990 = vmatprep.subr.bf16.mxu0 %v2668_v51  ;;  %v2732_v51 = vld [vmem:[%s3925_s1 + $0x170] ss:$8 sps:$4 sm:$0xff]   ;;  %v2245_v53 = vcombine.high %v3319_v49, %v3324_v50 }
  0x33   :  { %1779 = vmatpush1.bf16.msra.mxu1 %v2670_v56  ;;  %v2738_v56 = vld [vmem:[%s3925_s1 + $0x180] ss:$8 sps:$4 sm:$0xff]  }
  0x34   :  { %1991 = vmatpush1.bf16.msra.mxu0 %v2671_v57  ;;  %1780 = vmatprep.subr.bf16.mxu1 %v2672_v58  ;;  %v2741_v57 = vld [vmem:[%s3925_s1 + $0x580] ss:$8 sps:$4 sm:$0xff]   ;;  %v2746_v58 = vld [vmem:[%s3925_s1 + $0x194] ss:$8 sps:$4 sm:$0xff]  }
  0x35   :  { %1992 = vmatprep.subr.bf16.mxu0 %v2674_v59  ;;  %v2749_v59 = vld [vmem:[%s3925_s1 + $0x594] ss:$8 sps:$4 sm:$0xff]  }
  0x37   :  { %1781 = vmatpush1.bf16.msra.mxu1 %v2676_v60  ;;  %v2744_v60 = vld [vmem:[%s3925_s1 + $0x190] ss:$8 sps:$4 sm:$0xff]  }
  0x38   :  { %1993 = vmatpush1.bf16.msra.mxu0 %v2677_v61  ;;  %1782 = vmatprep.subr.bf16.mxu1 %v2678_v62  ;;  %v2747_v61 = vld [vmem:[%s3925_s1 + $0x590] ss:$8 sps:$4 sm:$0xff]   ;;  %v2752_v62 = vld [vmem:[%s3925_s1 + $0x1a4] ss:$8 sps:$4 sm:$0xff]  }
  0x39   :  { %1994 = vmatprep.subr.bf16.mxu0 %v2680_v63  ;;  %v2755_v63 = vld [vmem:[%s3925_s1 + $0x5a4] ss:$8 sps:$4 sm:$0xff]  }
  0x3b   :  { %1783 = vmatpush1.bf16.msra.mxu1 %v2682_v0  ;;  %v2750_v0 = vld [vmem:[%s3925_s1 + $0x1a0] ss:$8 sps:$4 sm:$0xff]  }
  0x3c   :  { %1995 = vmatpush1.bf16.msra.mxu0 %v2683_v1  ;;  %1784 = vmatprep.subr.bf16.mxu1 %v2684_v2  ;;  %v2753_v1 = vld [vmem:[%s3925_s1 + $0x5a0] ss:$8 sps:$4 sm:$0xff]   ;;  %v2758_v2 = vld [vmem:[%s3925_s1 + $0x1b4] ss:$8 sps:$4 sm:$0xff]  }
  0x3d   :  { %1996 = vmatprep.subr.bf16.mxu0 %v2686_v3  ;;  %v2761_v3 = vld [vmem:[%s3925_s1 + $0x5b4] ss:$8 sps:$4 sm:$0xff]  }
  0x3f   :  { %1785 = vmatpush1.bf16.msra.mxu1 %v2688_v4  ;;  %v2756_v4 = vld [vmem:[%s3925_s1 + $0x1b0] ss:$8 sps:$4 sm:$0xff]  }
  0x40   :  { %1997 = vmatpush1.bf16.msra.mxu0 %v2689_v5  ;;  %1807 = vmatprep.subr.bf16.mxu1 %v2692_v6  ;;  %v2759_v5 = vld [vmem:[%s3925_s1 + $0x5b0] ss:$8 sps:$4 sm:$0xff]   ;;  %v2764_v6 = vld [vmem:[%s3925_s1 + $0x1c4] ss:$8 sps:$4 sm:$0xff]  }
  0x41   :  { %2019 = vmatprep.subr.bf16.mxu0 %v2695_v7  ;;  %v2767_v7 = vld [vmem:[%s3925_s1 + $0x5c4] ss:$8 sps:$4 sm:$0xff]  }
  0x42   :  { %1787 = vmatmul.mubr.bf16.vlgmr.msra.gmra.mrb[0].mxu1 %v2234_v8  ;;  %v2762_v8 = vld [vmem:[%s3925_s1 + $0x1c0] ss:$8 sps:$4 sm:$0xff]  }
  0x43   :  { %1999 = vmatmul.mubr.bf16.vlgmr.msra.gmra.mrb[0].mxu0 %v2242_v10  ;;  %1808 = vmatpush1.bf16.msra.mxu1 %v2690_v9  ;;  %v2765_v9 = vld [vmem:[%s3925_s1 + $0x5c0] ss:$8 sps:$4 sm:$0xff]   ;;  %v2770_v10 = vld [vmem:[%s3925_s1 + $0x1d4] ss:$8 sps:$4 sm:$0xff]  }
  0x44   :  { %2020 = vmatpush1.bf16.msra.mxu0 %v2693_v11  ;;  %1809 = vmatprep.subr.bf16.mxu1 %v2698_v12  ;;  %v2773_v11 = vld [vmem:[%s3925_s1 + $0x5d4] ss:$8 sps:$4 sm:$0xff]   ;;  %v2768_v12 = vld [vmem:[%s3925_s1 + $0x1d0] ss:$8 sps:$4 sm:$0xff]  }
  0x45   :  { %2021 = vmatprep.subr.bf16.mxu0 %v2701_v13  ;;  %1796 = vmatprep.mubr.bf16.mxu1 %v2251_v33  ;;  %v2771_v13 = vld [vmem:[%s3925_s1 + $0x5d0] ss:$8 sps:$4 sm:$0xff]   ;;  %v43_v33 = vld [vmem:[%s3926_s0 + $0xe8] sm:$0xff] }
  0x46   :  { %2008 = vmatprep.mubr.bf16.mxu0 %v2259_v39  ;;  %v2803_v39 = vld [vmem:[%s3925_s1 + $0x624] ss:$8 sps:$4 sm:$0xff]  }
  0x47   :  { %1810 = vmatpush1.bf16.msra.mxu1 %v2696_v14  ;;  %v2776_v14 = vld [vmem:[%s3925_s1 + $0x1e4] ss:$8 sps:$4 sm:$0xff]  }
  0x48   :  { %2022 = vmatpush1.bf16.msra.mxu0 %v2699_v15  ;;  %1811 = vmatprep.subr.bf16.mxu1 %v2704_v16  ;;  %v2779_v15 = vld [vmem:[%s3925_s1 + $0x5e4] ss:$8 sps:$4 sm:$0xff]   ;;  %v2774_v16 = vld [vmem:[%s3925_s1 + $0x1e0] ss:$8 sps:$4 sm:$0xff]  }
  0x49   :  { %2023 = vmatprep.subr.bf16.mxu0 %v2707_v17  ;;  %v2777_v17 = vld [vmem:[%s3925_s1 + $0x5e0] ss:$8 sps:$4 sm:$0xff]  }
  0x4a   :  { %1797 = vmatmul.mubr.bf16.gmra.mrb[4].mxu1 %v2250_v37  ;;  %v2795_v37 = vld [vmem:[%s3925_s1 + $0x610] ss:$8 sps:$4 sm:$0xff]  }
  0x4b   :  { %1812 = vmatpush1.bf16.msra.mxu1 %v2702_v18  ;;  %2009 = vmatmul.mubr.bf16.gmra.mrb[4].mxu0 %v2258_v40  ;;  %v2782_v18 = vld [vmem:[%s3925_s1 + $0x1f4] ss:$8 sps:$4 sm:$0xff]   ;;  %v2798_v40 = vld [vmem:[%s3925_s1 + $0x220] ss:$8 sps:$4 sm:$0xff]  }
  0x4c   :  { %2024 = vmatpush1.bf16.msra.mxu0 %v2705_v19  ;;  %1813 = vmatprep.subr.bf16.mxu1 %v2710_v20  ;;  %v2785_v19 = vld [vmem:[%s3925_s1 + $0x5f4] ss:$8 sps:$4 sm:$0xff]   ;;  %v2780_v20 = vld [vmem:[%s3925_s1 + $0x1f0] ss:$8 sps:$4 sm:$0xff]  }
  0x4d   :  { %2025 = vmatprep.subr.bf16.mxu0 %v2713_v21  ;;  %1839 = vmatprep.mubr.bf16.mxu1 %v2237_v48  ;;  %v2783_v21 = vld [vmem:[%s3925_s1 + $0x5f0] ss:$8 sps:$4 sm:$0xff]   ;;  %v2806_v48 = vld [vmem:[%s3925_s1 + $0x234] ss:$8 sps:$4 sm:$0xff]  }
  0x4e   :  { %2051 = vmatprep.mubr.bf16.mxu0 %v2245_v53  ;;  %v2807_v53 = vld [vmem:[%s3925_s1 + $0x630] ss:$8 sps:$4 sm:$0xff]  }
  0x4f   :  { %1814 = vmatpush1.bf16.msra.mxu1 %v2708_v22  ;;  %v2788_v22 = vld [vmem:[%s3925_s1 + $0x204] ss:$8 sps:$4 sm:$0xff]  }
  0x50   :  { %2026 = vmatpush1.bf16.msra.mxu0 %v2711_v23  ;;  %1815 = vmatprep.subr.bf16.mxu1 %v2716_v24  ;;  %v2791_v23 = vld [vmem:[%s3925_s1 + $0x604] ss:$8 sps:$4 sm:$0xff]   ;;  %v2786_v24 = vld [vmem:[%s3925_s1 + $0x200] ss:$8 sps:$4 sm:$0xff]  }
  0x51   :  { %2027 = vmatprep.subr.bf16.mxu0 %v2719_v25  ;;  %v2789_v25 = vld [vmem:[%s3925_s1 + $0x600] ss:$8 sps:$4 sm:$0xff]  }
  0x53   :  { %1816 = vmatpush1.bf16.msra.mxu1 %v2714_v26  ;;  %v31_v26 = vld [vmem:[%s3926_s0 + $0x88] sm:$0xff] }
  0x54   :  { %2028 = vmatpush1.bf16.msra.mxu0 %v2717_v27  ;;  %1817 = vmatprep.subr.bf16.mxu1 %v2722_v28  ;;  %v2236_v27 = vcombine.low %v3301_v44, %v3306_v45  ;;  %v2244_v28 = vcombine.low %v3319_v49, %v3324_v50  ;;  %v3490_v45 = vld [vmem:[%s3926_s0 + $0x50] sm:$0xff] }
  0x55   :  { %2029 = vmatprep.subr.bf16.mxu0 %v2725_v29  ;;  %v39_v29 = vld [vmem:[%s3926_s0 + $0xc8] sm:$0xff]  ;;  %v2809_v49 = vld [vmem:[%s3925_s1 + $0x634] ss:$8 sps:$4 sm:$0xff]  }
  0x57   :  { %1818 = vmatpush1.bf16.msra.mxu1 %v2720_v32  ;;  %v35_v32 = vld [vmem:[%s3926_s0 + $0xa8] sm:$0xff] }
  0x58   :  { %2030 = vmatpush1.bf16.msra.mxu0 %v2723_v34  ;;  %1819 = vmatprep.subr.bf16.mxu1 %v2728_v38  ;;  %v2253_v34 = vcombine.high %v31_v26, %v39_v29  ;;  %v2261_v35 = vcombine.high %v35_v32, %v43_v33  ;;  %v2800_v38 = vld [vmem:[%s3925_s1 + $0x224] ss:$8 sps:$4 sm:$0xff]   ;;  %v2260_v44 = vcombine.low %v35_v32, %v43_v33  ;;  %v2870_v32 = vld [vmem:[%s3925_s1 + $0x2e0] ss:$8 sps:$4 sm:$0xff]  }
  0x59   :  { %2031 = vmatprep.subr.bf16.mxu0 %v2731_v41  ;;  %v2801_v41 = vld [vmem:[%s3925_s1 + $0x620] ss:$8 sps:$4 sm:$0xff]  }
  0x5a   :  { %v2873_v33 = vld [vmem:[%s3925_s1 + $0x6e0] ss:$8 sps:$4 sm:$0xff]  }
  0x5b   :  { %1820 = vmatpush1.bf16.msra.mxu1 %v2726_v42  ;;  %v3485_v42 = vld [vmem:[%s3926_s0 + $0x10] sm:$0xff] }
  0x5c   :  { %2032 = vmatpush1.bf16.msra.mxu0 %v2729_v43  ;;  %1821 = vmatprep.subr.bf16.mxu1 %v2734_v46  ;;  %v2252_v43 = vcombine.low %v31_v26, %v39_v29  ;;  %v3495_v46 = vld [vmem:[%s3926_s0 + $0x30] sm:$0xff]  ;;  %v2239_v50 = vcombine.high %v3485_v42, %v3490_v45 }
  0x5d   :  { %2033 = vmatprep.subr.bf16.mxu0 %v2737_v47  ;;  %v3500_v47 = vld [vmem:[%s3926_s0 + $0x70] sm:$0xff] }
  0x5e   :  { %v2866_v26 = vld [vmem:[%s3925_s1 + $0x2d4] ss:$8 sps:$4 sm:$0xff]   ;;  %v2867_v29 = vld [vmem:[%s3925_s1 + $0x6d0] ss:$8 sps:$4 sm:$0xff]  }
  0x5f   :  { %1822 = vmatpush1.bf16.msra.mxu1 %v2732_v51  ;;  %v2247_v51 = vcombine.high %v3495_v46, %v3500_v47 }
  0x60   :  { %2034 = vmatpush1.bf16.msra.mxu0 %v2735_v52  ;;  %1823 = vmatprep.subr.bf16.mxu1 %v2740_v54  ;;  %v2804_v52 = vld [vmem:[%s3925_s1 + $0x230] ss:$8 sps:$4 sm:$0xff]   ;;  %v2812_v54 = vld [vmem:[%s3925_s1 + $0x244] ss:$8 sps:$4 sm:$0xff]  }
  0x61   :  { %2035 = vmatprep.subr.bf16.mxu0 %v2743_v55  ;;  %v2815_v55 = vld [vmem:[%s3925_s1 + $0x644] ss:$8 sps:$4 sm:$0xff]  }
  0x63   :  { %1824 = vmatpush1.bf16.msra.mxu1 %v2738_v56  ;;  %v2810_v56 = vld [vmem:[%s3925_s1 + $0x240] ss:$8 sps:$4 sm:$0xff]  }
  0x64   :  { %2036 = vmatpush1.bf16.msra.mxu0 %v2741_v57  ;;  %1825 = vmatprep.subr.bf16.mxu1 %v2746_v58  ;;  %v2813_v57 = vld [vmem:[%s3925_s1 + $0x640] ss:$8 sps:$4 sm:$0xff]   ;;  %v2818_v58 = vld [vmem:[%s3925_s1 + $0x254] ss:$8 sps:$4 sm:$0xff]  }
  0x65   :  { %2037 = vmatprep.subr.bf16.mxu0 %v2749_v59  ;;  %v2821_v59 = vld [vmem:[%s3925_s1 + $0x654] ss:$8 sps:$4 sm:$0xff]  }
  0x67   :  { %1826 = vmatpush1.bf16.msra.mxu1 %v2744_v60  ;;  %v2816_v60 = vld [vmem:[%s3925_s1 + $0x250] ss:$8 sps:$4 sm:$0xff]  }
  0x68   :  { %2038 = vmatpush1.bf16.msra.mxu0 %v2747_v61  ;;  %1827 = vmatprep.subr.bf16.mxu1 %v2752_v62  ;;  %v2819_v61 = vld [vmem:[%s3925_s1 + $0x650] ss:$8 sps:$4 sm:$0xff]   ;;  %v2824_v62 = vld [vmem:[%s3925_s1 + $0x264] ss:$8 sps:$4 sm:$0xff]  }
  0x69   :  { %2039 = vmatprep.subr.bf16.mxu0 %v2755_v63  ;;  %v2827_v63 = vld [vmem:[%s3925_s1 + $0x664] ss:$8 sps:$4 sm:$0xff]  }
  0x6b   :  { %1828 = vmatpush1.bf16.msra.mxu1 %v2750_v0  ;;  %v2822_v0 = vld [vmem:[%s3925_s1 + $0x260] ss:$8 sps:$4 sm:$0xff]  }
  0x6c   :  { %2040 = vmatpush1.bf16.msra.mxu0 %v2753_v1  ;;  %1829 = vmatprep.subr.bf16.mxu1 %v2758_v2  ;;  %v2825_v1 = vld [vmem:[%s3925_s1 + $0x660] ss:$8 sps:$4 sm:$0xff]   ;;  %v2830_v2 = vld [vmem:[%s3925_s1 + $0x274] ss:$8 sps:$4 sm:$0xff]  }
  0x6d   :  { %2041 = vmatprep.subr.bf16.mxu0 %v2761_v3  ;;  %v2833_v3 = vld [vmem:[%s3925_s1 + $0x674] ss:$8 sps:$4 sm:$0xff]  }
  0x6f   :  { %1830 = vmatpush1.bf16.msra.mxu1 %v2756_v4  ;;  %v2828_v4 = vld [vmem:[%s3925_s1 + $0x270] ss:$8 sps:$4 sm:$0xff]  }
  0x70   :  { %2042 = vmatpush1.bf16.msra.mxu0 %v2759_v5  ;;  %1831 = vmatprep.subr.bf16.mxu1 %v2764_v6  ;;  %v2831_v5 = vld [vmem:[%s3925_s1 + $0x670] ss:$8 sps:$4 sm:$0xff]   ;;  %v2836_v6 = vld [vmem:[%s3925_s1 + $0x284] ss:$8 sps:$4 sm:$0xff]  }
  0x71   :  { %2043 = vmatprep.subr.bf16.mxu0 %v2767_v7  ;;  %v2839_v7 = vld [vmem:[%s3925_s1 + $0x684] ss:$8 sps:$4 sm:$0xff]  }
  0x73   :  { %1832 = vmatpush1.bf16.msra.mxu1 %v2762_v8  ;;  %v2834_v8 = vld [vmem:[%s3925_s1 + $0x280] ss:$8 sps:$4 sm:$0xff]  }
  0x74   :  { %2044 = vmatpush1.bf16.msra.mxu0 %v2765_v9  ;;  %1833 = vmatprep.subr.bf16.mxu1 %v2770_v10  ;;  %v2837_v9 = vld [vmem:[%s3925_s1 + $0x680] ss:$8 sps:$4 sm:$0xff]   ;;  %v2842_v10 = vld [vmem:[%s3925_s1 + $0x294] ss:$8 sps:$4 sm:$0xff]  }
  0x75   :  { %2045 = vmatprep.subr.bf16.mxu0 %v2773_v11  ;;  %v2845_v11 = vld [vmem:[%s3925_s1 + $0x694] ss:$8 sps:$4 sm:$0xff]  }
  0x77   :  { %1834 = vmatpush1.bf16.msra.mxu1 %v2768_v12  ;;  %v2840_v12 = vld [vmem:[%s3925_s1 + $0x290] ss:$8 sps:$4 sm:$0xff]  }
  0x78   :  { %2046 = vmatpush1.bf16.msra.mxu0 %v2771_v13  ;;  %1835 = vmatprep.subr.bf16.mxu1 %v2776_v14  ;;  %v2843_v13 = vld [vmem:[%s3925_s1 + $0x690] ss:$8 sps:$4 sm:$0xff]   ;;  %v2848_v14 = vld [vmem:[%s3925_s1 + $0x2a4] ss:$8 sps:$4 sm:$0xff]  }
  0x79   :  { %2047 = vmatprep.subr.bf16.mxu0 %v2779_v15  ;;  %v2851_v15 = vld [vmem:[%s3925_s1 + $0x6a4] ss:$8 sps:$4 sm:$0xff]  }
  0x7b   :  { %1836 = vmatpush1.bf16.msra.mxu1 %v2774_v16  ;;  %v2846_v16 = vld [vmem:[%s3925_s1 + $0x2a0] ss:$8 sps:$4 sm:$0xff]  }
  0x7c   :  { %2048 = vmatpush1.bf16.msra.mxu0 %v2777_v17  ;;  %1837 = vmatprep.subr.bf16.mxu1 %v2782_v18  ;;  %v2849_v17 = vld [vmem:[%s3925_s1 + $0x6a0] ss:$8 sps:$4 sm:$0xff]   ;;  %v2854_v18 = vld [vmem:[%s3925_s1 + $0x2b4] ss:$8 sps:$4 sm:$0xff]  }
  0x7d   :  { %2049 = vmatprep.subr.bf16.mxu0 %v2785_v19  ;;  %v2857_v19 = vld [vmem:[%s3925_s1 + $0x6b4] ss:$8 sps:$4 sm:$0xff]  }
  0x7f   :  { %1838 = vmatpush1.bf16.msra.mxu1 %v2780_v20  ;;  %v2852_v20 = vld [vmem:[%s3925_s1 + $0x2b0] ss:$8 sps:$4 sm:$0xff]  }
  0x80   :  { %2050 = vmatpush1.bf16.msra.mxu0 %v2783_v21  ;;  %1860 = vmatprep.subr.bf16.mxu1 %v2788_v22  ;;  %v2855_v21 = vld [vmem:[%s3925_s1 + $0x6b0] ss:$8 sps:$4 sm:$0xff]   ;;  %v2860_v22 = vld [vmem:[%s3925_s1 + $0x2c4] ss:$8 sps:$4 sm:$0xff]  }
  0x81   :  { %2072 = vmatprep.subr.bf16.mxu0 %v2791_v23  ;;  %v2863_v23 = vld [vmem:[%s3925_s1 + $0x6c4] ss:$8 sps:$4 sm:$0xff]  }
  0x82   :  { %1840 = vmatmul.mubr.bf16.vlgmr.msra.gmra.mrb[0].mxu1 %v2236_v27  ;;  %v2869_v27 = vld [vmem:[%s3925_s1 + $0x6d4] ss:$8 sps:$4 sm:$0xff]  }
  0x83   :  { %2052 = vmatmul.mubr.bf16.vlgmr.msra.gmra.mrb[0].mxu0 %v2244_v28  ;;  %1861 = vmatpush1.bf16.msra.mxu1 %v2786_v24  ;;  %v2858_v24 = vld [vmem:[%s3925_s1 + $0x2c0] ss:$8 sps:$4 sm:$0xff]   ;;  %v2864_v28 = vld [vmem:[%s3925_s1 + $0x2d0] ss:$8 sps:$4 sm:$0xff]  }
  0x84   :  { %2073 = vmatpush1.bf16.msra.mxu0 %v2789_v25  ;;  %1862 = vmatprep.subr.bf16.mxu1 %v2794_v30  ;;  %v2861_v25 = vld [vmem:[%s3925_s1 + $0x6c0] ss:$8 sps:$4 sm:$0xff]   ;;  %v2872_v30 = vld [vmem:[%s3925_s1 + $0x2e4] ss:$8 sps:$4 sm:$0xff]  }
  0x85   :  { %2074 = vmatprep.subr.bf16.mxu0 %v2797_v31  ;;  %1849 = vmatprep.mubr.bf16.mxu1 %v2253_v34  ;;  %v2875_v31 = vld [vmem:[%s3925_s1 + $0x6e4] ss:$8 sps:$4 sm:$0xff]   ;;  %v2878_v34 = vld [vmem:[%s3925_s1 + $0x2f4] ss:$8 sps:$4 sm:$0xff]  }
  0x86   :  { %2061 = vmatprep.mubr.bf16.mxu0 %v2261_v35  ;;  %v2881_v35 = vld [vmem:[%s3925_s1 + $0x6f4] ss:$8 sps:$4 sm:$0xff]  }
  0x87   :  { %1863 = vmatpush1.bf16.msra.mxu1 %v2792_v36  ;;  %v2876_v36 = vld [vmem:[%s3925_s1 + $0x2f0] ss:$8 sps:$4 sm:$0xff]  }
  0x88   :  { %2075 = vmatpush1.bf16.msra.mxu0 %v2795_v37  ;;  %1864 = vmatprep.subr.bf16.mxu1 %v2800_v38  ;;  %v2879_v37 = vld [vmem:[%s3925_s1 + $0x6f0] ss:$8 sps:$4 sm:$0xff]   ;;  %v2884_v38 = vld [vmem:[%s3925_s1 + $0x304] ss:$8 sps:$4 sm:$0xff]  }
  0x89   :  { %2076 = vmatprep.subr.bf16.mxu0 %v2803_v39  ;;  %v2887_v39 = vld [vmem:[%s3925_s1 + $0x704] ss:$8 sps:$4 sm:$0xff]  }
  0x8a   :  { %1850 = vmatmul.mubr.bf16.gmra.mrb[4].mxu1 %v2252_v43  ;;  %v2246_v43 = vcombine.low %v3495_v46, %v3500_v47  ;;  %v2890_v46 = vld [vmem:[%s3925_s1 + $0x314] ss:$8 sps:$4 sm:$0xff]  }
  0x8b   :  { %2062 = vmatmul.mubr.bf16.gmra.mrb[4].mxu0 %v2260_v44  ;;  %1865 = vmatpush1.bf16.msra.mxu1 %v2798_v40  ;;  %v32_v40 = vld [vmem:[%s3926_s0 + $0x90] sm:$0xff] }
  0x8c   :  { %2077 = vmatpush1.bf16.msra.mxu0 %v2801_v41  ;;  %1866 = vmatprep.subr.bf16.mxu1 %v2806_v48  ;;  %v2238_v41 = vcombine.low %v3485_v42, %v3490_v45  ;;  %v40_v44 = vld [vmem:[%s3926_s0 + $0xd0] sm:$0xff]  ;;  %v2882_v42 = vld [vmem:[%s3925_s1 + $0x300] ss:$8 sps:$4 sm:$0xff]  }
  0x8d   :  { %2078 = vmatprep.subr.bf16.mxu0 %v2809_v49  ;;  %1892 = vmatprep.mubr.bf16.mxu1 %v2239_v50  ;;  %v36_v48 = vld [vmem:[%s3926_s0 + $0xb0] sm:$0xff]  ;;  %v2885_v45 = vld [vmem:[%s3925_s1 + $0x700] ss:$8 sps:$4 sm:$0xff]   ;;  %v2255_v50 = vcombine.high %v32_v40, %v40_v44 }
  0x8e   :  { %2104 = vmatprep.mubr.bf16.mxu0 %v2247_v51  ;;  %v44_v49 = vld [vmem:[%s3926_s0 + $0xf0] sm:$0xff] }
  0x8f   :  { %1867 = vmatpush1.bf16.msra.mxu1 %v2804_v52  ;;  %v2893_v47 = vld [vmem:[%s3925_s1 + $0x714] ss:$8 sps:$4 sm:$0xff]   ;;  %v2263_v51 = vcombine.high %v36_v48, %v44_v49  ;;  %v2888_v52 = vld [vmem:[%s3925_s1 + $0x310] ss:$8 sps:$4 sm:$0xff]  }
  0x90   :  { %2079 = vmatpush1.bf16.msra.mxu0 %v2807_v53  ;;  %1868 = vmatprep.subr.bf16.mxu1 %v2812_v54  ;;  %v2891_v53 = vld [vmem:[%s3925_s1 + $0x710] ss:$8 sps:$4 sm:$0xff]   ;;  %v2896_v54 = vld [vmem:[%s3925_s1 + $0x324] ss:$8 sps:$4 sm:$0xff]  }
  0x91   :  { %2080 = vmatprep.subr.bf16.mxu0 %v2815_v55  ;;  %v2899_v55 = vld [vmem:[%s3925_s1 + $0x724] ss:$8 sps:$4 sm:$0xff]  }
  0x93   :  { %1869 = vmatpush1.bf16.msra.mxu1 %v2810_v56  ;;  %v3711_v56 = vld [vmem:[%s3926_s0 + $0x18] sm:$0xff] }
  0x94   :  { %2081 = vmatpush1.bf16.msra.mxu0 %v2813_v57  ;;  %1870 = vmatprep.subr.bf16.mxu1 %v2818_v58  ;;  %v2254_v57 = vcombine.low %v32_v40, %v40_v44  ;;  %v2262_v58 = vcombine.low %v36_v48, %v44_v49  ;;  %v2954_v40 = vld [vmem:[%s3925_s1 + $0x3c0] ss:$8 sps:$4 sm:$0xff]   ;;  %v2965_v44 = vld [vmem:[%s3925_s1 + $0x7d4] ss:$8 sps:$4 sm:$0xff]   ;;  %v2960_v48 = vld [vmem:[%s3925_s1 + $0x3d0] ss:$8 sps:$4 sm:$0xff]  }
  0x95   :  { %2082 = vmatprep.subr.bf16.mxu0 %v2821_v59  ;;  %v3716_v59 = vld [vmem:[%s3926_s0 + $0x58] sm:$0xff] }
  0x96   :  { %v2963_v49 = vld [vmem:[%s3925_s1 + $0x7d0] ss:$8 sps:$4 sm:$0xff]  }
  0x97   :  { %1871 = vmatpush1.bf16.msra.mxu1 %v2816_v60  ;;  %v3721_v60 = vld [vmem:[%s3926_s0 + $0x38] sm:$0xff] }
  0x98   :  { %2083 = vmatpush1.bf16.msra.mxu0 %v2819_v61  ;;  %1872 = vmatprep.subr.bf16.mxu1 %v2824_v62  ;;  %v3726_v61 = vld [vmem:[%s3926_s0 + $0x78] sm:$0xff]  ;;  %v2894_v62 = vld [vmem:[%s3925_s1 + $0x320] ss:$8 sps:$4 sm:$0xff]  }
  0x99   :  { %2084 = vmatprep.subr.bf16.mxu0 %v2827_v63  ;;  %v2897_v63 = vld [vmem:[%s3925_s1 + $0x720] ss:$8 sps:$4 sm:$0xff]  }
  0x9b   :  { %1873 = vmatpush1.bf16.msra.mxu1 %v2822_v0  ;;  %v2902_v0 = vld [vmem:[%s3925_s1 + $0x334] ss:$8 sps:$4 sm:$0xff]  }
  0x9c   :  { %2085 = vmatpush1.bf16.msra.mxu0 %v2825_v1  ;;  %1874 = vmatprep.subr.bf16.mxu1 %v2830_v2  ;;  %v2905_v1 = vld [vmem:[%s3925_s1 + $0x734] ss:$8 sps:$4 sm:$0xff]   ;;  %v2241_v2 = vcombine.high %v3711_v56, %v3716_v59 }
  0x9d   :  { %2086 = vmatprep.subr.bf16.mxu0 %v2833_v3  ;;  %v2249_v3 = vcombine.high %v3721_v60, %v3726_v61 }
  0x9f   :  { %1875 = vmatpush1.bf16.msra.mxu1 %v2828_v4  ;;  %v2900_v4 = vld [vmem:[%s3925_s1 + $0x330] ss:$8 sps:$4 sm:$0xff]  }
  0xa0   :  { %2087 = vmatpush1.bf16.msra.mxu0 %v2831_v5  ;;  %1876 = vmatprep.subr.bf16.mxu1 %v2836_v6  ;;  %v2903_v5 = vld [vmem:[%s3925_s1 + $0x730] ss:$8 sps:$4 sm:$0xff]   ;;  %v2908_v6 = vld [vmem:[%s3925_s1 + $0x344] ss:$8 sps:$4 sm:$0xff]  }
  0xa1   :  { %2088 = vmatprep.subr.bf16.mxu0 %v2839_v7  ;;  %v2911_v7 = vld [vmem:[%s3925_s1 + $0x744] ss:$8 sps:$4 sm:$0xff]  }
  0xa3   :  { %1877 = vmatpush1.bf16.msra.mxu1 %v2834_v8  ;;  %v2906_v8 = vld [vmem:[%s3925_s1 + $0x340] ss:$8 sps:$4 sm:$0xff]  }
  0xa4   :  { %2089 = vmatpush1.bf16.msra.mxu0 %v2837_v9  ;;  %1878 = vmatprep.subr.bf16.mxu1 %v2842_v10  ;;  %v2909_v9 = vld [vmem:[%s3925_s1 + $0x740] ss:$8 sps:$4 sm:$0xff]   ;;  %v2914_v10 = vld [vmem:[%s3925_s1 + $0x354] ss:$8 sps:$4 sm:$0xff]  }
  0xa5   :  { %2090 = vmatprep.subr.bf16.mxu0 %v2845_v11  ;;  %v2917_v11 = vld [vmem:[%s3925_s1 + $0x754] ss:$8 sps:$4 sm:$0xff]  }
  0xa7   :  { %1879 = vmatpush1.bf16.msra.mxu1 %v2840_v12  ;;  %v2912_v12 = vld [vmem:[%s3925_s1 + $0x350] ss:$8 sps:$4 sm:$0xff]  }
  0xa8   :  { %2091 = vmatpush1.bf16.msra.mxu0 %v2843_v13  ;;  %1880 = vmatprep.subr.bf16.mxu1 %v2848_v14  ;;  %v2915_v13 = vld [vmem:[%s3925_s1 + $0x750] ss:$8 sps:$4 sm:$0xff]   ;;  %v2920_v14 = vld [vmem:[%s3925_s1 + $0x364] ss:$8 sps:$4 sm:$0xff]  }
  0xa9   :  { %2092 = vmatprep.subr.bf16.mxu0 %v2851_v15  ;;  %v2923_v15 = vld [vmem:[%s3925_s1 + $0x764] ss:$8 sps:$4 sm:$0xff]  }
  0xab   :  { %1881 = vmatpush1.bf16.msra.mxu1 %v2846_v16  ;;  %v2918_v16 = vld [vmem:[%s3925_s1 + $0x360] ss:$8 sps:$4 sm:$0xff]  }
  0xac   :  { %2093 = vmatpush1.bf16.msra.mxu0 %v2849_v17  ;;  %1882 = vmatprep.subr.bf16.mxu1 %v2854_v18  ;;  %v2921_v17 = vld [vmem:[%s3925_s1 + $0x760] ss:$8 sps:$4 sm:$0xff]   ;;  %v2926_v18 = vld [vmem:[%s3925_s1 + $0x374] ss:$8 sps:$4 sm:$0xff]  }
  0xad   :  { %2094 = vmatprep.subr.bf16.mxu0 %v2857_v19  ;;  %v2929_v19 = vld [vmem:[%s3925_s1 + $0x774] ss:$8 sps:$4 sm:$0xff]  }
  0xaf   :  { %1883 = vmatpush1.bf16.msra.mxu1 %v2852_v20  ;;  %v2924_v20 = vld [vmem:[%s3925_s1 + $0x370] ss:$8 sps:$4 sm:$0xff]  }
  0xb0   :  { %2095 = vmatpush1.bf16.msra.mxu0 %v2855_v21  ;;  %1884 = vmatprep.subr.bf16.mxu1 %v2860_v22  ;;  %v2927_v21 = vld [vmem:[%s3925_s1 + $0x770] ss:$8 sps:$4 sm:$0xff]   ;;  %v2932_v22 = vld [vmem:[%s3925_s1 + $0x384] ss:$8 sps:$4 sm:$0xff]  }
  0xb1   :  { %2096 = vmatprep.subr.bf16.mxu0 %v2863_v23  ;;  %v2935_v23 = vld [vmem:[%s3925_s1 + $0x784] ss:$8 sps:$4 sm:$0xff]  }
  0xb3   :  { %1885 = vmatpush1.bf16.msra.mxu1 %v2858_v24  ;;  %v2930_v24 = vld [vmem:[%s3925_s1 + $0x380] ss:$8 sps:$4 sm:$0xff]  }
  0xb4   :  { %2097 = vmatpush1.bf16.msra.mxu0 %v2861_v25  ;;  %1886 = vmatprep.subr.bf16.mxu1 %v2866_v26  ;;  %v2933_v25 = vld [vmem:[%s3925_s1 + $0x780] ss:$8 sps:$4 sm:$0xff]   ;;  %v2938_v26 = vld [vmem:[%s3925_s1 + $0x394] ss:$8 sps:$4 sm:$0xff]  }
  0xb5   :  { %2098 = vmatprep.subr.bf16.mxu0 %v2869_v27  ;;  %v2941_v27 = vld [vmem:[%s3925_s1 + $0x794] ss:$8 sps:$4 sm:$0xff]  }
  0xb7   :  { %1887 = vmatpush1.bf16.msra.mxu1 %v2864_v28  ;;  %v2936_v28 = vld [vmem:[%s3925_s1 + $0x390] ss:$8 sps:$4 sm:$0xff]  }
  0xb8   :  { %2099 = vmatpush1.bf16.msra.mxu0 %v2867_v29  ;;  %1888 = vmatprep.subr.bf16.mxu1 %v2872_v30  ;;  %v2939_v29 = vld [vmem:[%s3925_s1 + $0x790] ss:$8 sps:$4 sm:$0xff]   ;;  %v2944_v30 = vld [vmem:[%s3925_s1 + $0x3a4] ss:$8 sps:$4 sm:$0xff]  }
  0xb9   :  { %2100 = vmatprep.subr.bf16.mxu0 %v2875_v31  ;;  %v2947_v31 = vld [vmem:[%s3925_s1 + $0x7a4] ss:$8 sps:$4 sm:$0xff]  }
  0xbb   :  { %1889 = vmatpush1.bf16.msra.mxu1 %v2870_v32  ;;  %v2942_v32 = vld [vmem:[%s3925_s1 + $0x3a0] ss:$8 sps:$4 sm:$0xff]  }
  0xbc   :  { %2101 = vmatpush1.bf16.msra.mxu0 %v2873_v33  ;;  %1890 = vmatprep.subr.bf16.mxu1 %v2878_v34  ;;  %v2945_v33 = vld [vmem:[%s3925_s1 + $0x7a0] ss:$8 sps:$4 sm:$0xff]   ;;  %v2950_v34 = vld [vmem:[%s3925_s1 + $0x3b4] ss:$8 sps:$4 sm:$0xff]  }
  0xbd   :  { %2102 = vmatprep.subr.bf16.mxu0 %v2881_v35  ;;  %v2953_v35 = vld [vmem:[%s3925_s1 + $0x7b4] ss:$8 sps:$4 sm:$0xff]  }
  0xbf   :  { %1891 = vmatpush1.bf16.msra.mxu1 %v2876_v36  ;;  %v2948_v36 = vld [vmem:[%s3925_s1 + $0x3b0] ss:$8 sps:$4 sm:$0xff]  }
  0xc0   :  { %2103 = vmatpush1.bf16.msra.mxu0 %v2879_v37  ;;  %1913 = vmatprep.subr.bf16.mxu1 %v2884_v38  ;;  %v2951_v37 = vld [vmem:[%s3925_s1 + $0x7b0] ss:$8 sps:$4 sm:$0xff]   ;;  %v2956_v38 = vld [vmem:[%s3925_s1 + $0x3c4] ss:$8 sps:$4 sm:$0xff]  }
  0xc1   :  { %2125 = vmatprep.subr.bf16.mxu0 %v2887_v39  ;;  %v2959_v39 = vld [vmem:[%s3925_s1 + $0x7c4] ss:$8 sps:$4 sm:$0xff]  }
  0xc2   :  { %1893 = vmatmul.mubr.bf16.vlgmr.msra.gmra.mrb[0].mxu1 %v2238_v41  ;;  %v2957_v41 = vld [vmem:[%s3925_s1 + $0x7c0] ss:$8 sps:$4 sm:$0xff]  }
  0xc3   :  { %2105 = vmatmul.mubr.bf16.vlgmr.msra.gmra.mrb[0].mxu0 %v2246_v43  ;;  %1914 = vmatpush1.bf16.msra.mxu1 %v2882_v42  ;;  %v2962_v43 = vld [vmem:[%s3925_s1 + $0x3d4] ss:$8 sps:$4 sm:$0xff]   ;;  %v2968_v42 = vld [vmem:[%s3925_s1 + $0x3e4] ss:$8 sps:$4 sm:$0xff]  }
  0xc4   :  { %2126 = vmatpush1.bf16.msra.mxu0 %v2885_v45  ;;  %1915 = vmatprep.subr.bf16.mxu1 %v2890_v46  ;;  %v2971_v45 = vld [vmem:[%s3925_s1 + $0x7e4] ss:$8 sps:$4 sm:$0xff]   ;;  %v2966_v46 = vld [vmem:[%s3925_s1 + $0x3e0] ss:$8 sps:$4 sm:$0xff]  }
  0xc5   :  { %2127 = vmatprep.subr.bf16.mxu0 %v2893_v47  ;;  %1902 = vmatprep.mubr.bf16.mxu1 %v2255_v50  ;;  %v2969_v47 = vld [vmem:[%s3925_s1 + $0x7e0] ss:$8 sps:$4 sm:$0xff]   ;;  %v2974_v50 = vld [vmem:[%s3925_s1 + $0x3f4] ss:$8 sps:$4 sm:$0xff]  }
  0xc6   :  { %2114 = vmatprep.mubr.bf16.mxu0 %v2263_v51  ;;  %v2977_v51 = vld [vmem:[%s3925_s1 + $0x7f4] ss:$8 sps:$4 sm:$0xff]  }
  0xc7   :  { %1916 = vmatpush1.bf16.msra.mxu1 %v2888_v52  ;;  %v2972_v52 = vld [vmem:[%s3925_s1 + $0x3f0] ss:$8 sps:$4 sm:$0xff]  }
  0xc8   :  { %2128 = vmatpush1.bf16.msra.mxu0 %v2891_v53  ;;  %1917 = vmatprep.subr.bf16.mxu1 %v2896_v54  ;;  %v2975_v53 = vld [vmem:[%s3925_s1 + $0x7f0] ss:$8 sps:$4 sm:$0xff]  }
  0xc9   :  { %2129 = vmatprep.subr.bf16.mxu0 %v2899_v55  ;;  %v33_v54 = vld [vmem:[%s3926_s0 + $0x98] sm:$0xff] }
  0xca   :  { %1903 = vmatmul.mubr.bf16.gmra.mrb[4].mxu1 %v2254_v57  ;;  %v41_v55 = vld [vmem:[%s3926_s0 + $0xd8] sm:$0xff] }
  0xcb   :  { %2115 = vmatmul.mubr.bf16.gmra.mrb[4].mxu0 %v2262_v58  ;;  %1918 = vmatpush1.bf16.msra.mxu1 %v2894_v62  ;;  %v37_v57 = vld [vmem:[%s3926_s0 + $0xb8] sm:$0xff]  ;;  %v2240_v62 = vcombine.low %v3711_v56, %v3716_v59  ;;  %v302_v56 = vld [vmem:[%s3927_s2] sm:$0x3] }
  0xcc   :  { %2130 = vmatpush1.bf16.msra.mxu0 %v2897_v63  ;;  %1919 = vmatprep.subr.bf16.mxu1 %v2902_v0  ;;  %v45_v58 = vld [vmem:[%s3926_s0 + $0xf8] sm:$0xff]  ;;  %v2248_v63 = vcombine.low %v3721_v60, %v3726_v61  ;;  %v2257_v0 = vcombine.high %v33_v54, %v41_v55 }
  0xcd   :  { %2131 = vmatprep.subr.bf16.mxu0 %v2905_v1  ;;  %1945 = vmatprep.mubr.bf16.mxu1 %v2241_v2  ;;  %v2265_v1 = vcombine.high %v37_v57, %v45_v58  ;;  %v2256_v2 = vcombine.low %v33_v54, %v41_v55 }
  0xce   :  { %2157 = vmatprep.mubr.bf16.mxu0 %v2249_v3  ;;  %v2264_v3 = vcombine.low %v37_v57, %v45_v58 }
  0xcf   :  { %1920 = vmatpush1.bf16.msra.mxu1 %v2900_v4  ;;  %v304_v4 = vlaneseq }
  0xd0   :  { %2132 = vmatpush1.bf16.msra.mxu0 %v2903_v5  ;;  %1921 = vmatprep.subr.bf16.mxu1 %v2908_v6 }
  0xd1   :  { %2133 = vmatprep.subr.bf16.mxu0 %v2911_v7  ;;  %v305_v5 = vshrl.u32 %v304_v4, 7 }
  0xd3   :  { %1922 = vmatpush1.bf16.msra.mxu1 %v2906_v8  ;;  %v306_v6 = vsub.s32 0, %v305_v5  ;;  %v310_v59 = vsub.s32 1, %v305_v5 }
  0xd4   :  { %2134 = vmatpush1.bf16.msra.mxu0 %v2909_v9  ;;  %1923 = vmatprep.subr.bf16.mxu1 %v2914_v10 }
  0xd5   :  { %2135 = vmatprep.subr.bf16.mxu0 %v2917_v11  ;;  %v307_v60 = vrot.slane %v302_v56, %v306_v6  ;;  %v311_v61 = vrot.slane %v302_v56, %v310_v59 }
  0xd7   :  { %1924 = vmatpush1.bf16.msra.mxu1 %v2912_v12 }
  0xd8   :  { %2136 = vmatpush1.bf16.msra.mxu0 %v2915_v13  ;;  %1925 = vmatprep.subr.bf16.mxu1 %v2920_v14 }
  0xd9   :  { %2137 = vmatprep.subr.bf16.mxu0 %v2923_v15 }
  0xdb   :  { %1926 = vmatpush1.bf16.msra.mxu1 %v2918_v16 }
  0xdc   :  { %2138 = vmatpush1.bf16.msra.mxu0 %v2921_v17  ;;  %1927 = vmatprep.subr.bf16.mxu1 %v2926_v18 }
  0xdd   :  { %2139 = vmatprep.subr.bf16.mxu0 %v2929_v19 }
  0xdf   :  { %1928 = vmatpush1.bf16.msra.mxu1 %v2924_v20 }
  0xe0   :  { %2140 = vmatpush1.bf16.msra.mxu0 %v2927_v21  ;;  %1929 = vmatprep.subr.bf16.mxu1 %v2932_v22 }
  0xe1   :  { %2141 = vmatprep.subr.bf16.mxu0 %v2935_v23 }
  0xe3   :  { %1930 = vmatpush1.bf16.msra.mxu1 %v2930_v24 }
  0xe4   :  { %2142 = vmatpush1.bf16.msra.mxu0 %v2933_v25  ;;  %1931 = vmatprep.subr.bf16.mxu1 %v2938_v26 }
  0xe5   :  { %2143 = vmatprep.subr.bf16.mxu0 %v2941_v27 }
  0xe7   :  { %1932 = vmatpush1.bf16.msra.mxu1 %v2936_v28 }
  0xe8   :  { %2144 = vmatpush1.bf16.msra.mxu0 %v2939_v29  ;;  %1933 = vmatprep.subr.bf16.mxu1 %v2944_v30 }
  0xe9   :  { %2145 = vmatprep.subr.bf16.mxu0 %v2947_v31 }
  0xeb   :  { %1934 = vmatpush1.bf16.msra.mxu1 %v2942_v32 }
  0xec   :  { %2146 = vmatpush1.bf16.msra.mxu0 %v2945_v33  ;;  %1935 = vmatprep.subr.bf16.mxu1 %v2950_v34 }
  0xed   :  { %2147 = vmatprep.subr.bf16.mxu0 %v2953_v35 }
  0xef   :  { %1936 = vmatpush1.bf16.msra.mxu1 %v2948_v36 }
  0xf0   :  { %2148 = vmatpush1.bf16.msra.mxu0 %v2951_v37  ;;  %1937 = vmatprep.subr.bf16.mxu1 %v2956_v38 }
  0xf1   :  { %2149 = vmatprep.subr.bf16.mxu0 %v2959_v39 }
  0xf3   :  { %1938 = vmatpush1.bf16.msra.mxu1 %v2954_v40 }
  0xf4   :  { %2150 = vmatpush1.bf16.msra.mxu0 %v2957_v41  ;;  %1939 = vmatprep.subr.bf16.mxu1 %v2962_v43 }
  0xf5   :  { %2151 = vmatprep.subr.bf16.mxu0 %v2965_v44 }
  0xf7   :  { %1940 = vmatpush1.bf16.msra.mxu1 %v2960_v48 }
  0xf8   :  { %2152 = vmatpush1.bf16.msra.mxu0 %v2963_v49  ;;  %1941 = vmatprep.subr.bf16.mxu1 %v2968_v42 }
  0xf9   :  { %2153 = vmatprep.subr.bf16.mxu0 %v2971_v45 }
  0xfb   :  { %1942 = vmatpush1.bf16.msra.mxu1 %v2966_v46 }
  0xfc   :  { %2154 = vmatpush1.bf16.msra.mxu0 %v2969_v47  ;;  %1943 = vmatprep.subr.bf16.mxu1 %v2974_v50 }
  0xfd   :  { %2155 = vmatprep.subr.bf16.mxu0 %v2977_v51 }
  0xff   :  { %1944 = vmatpush1.bf16.msra.mxu1 %v2972_v52 }
 0x100   :  { %2156 = vmatpush1.bf16.msra.mxu0 %v2975_v53 }
 0x102   :  { %1946 = vmatmul.mubr.bf16.vlgmr.msra.gmra.mrb[0].mxu1 %v2240_v62 }
 0x103   :  { %2158 = vmatmul.mubr.bf16.vlgmr.msra.gmra.mrb[0].mxu0 %v2248_v63  ;;  %1955 = vmatprep.mubr.bf16.mxu1 %v2257_v0 }
 0x104   :  { %2167 = vmatprep.mubr.bf16.mxu0 %v2265_v1 }
 0x10a   :  { %1956 = vmatmul.mubr.bf16.gmra.mrb[4].mxu1 %v2256_v2 }
 0x10b   :  { %2168 = vmatmul.mubr.bf16.gmra.mrb[4].mxu0 %v2264_v3 }
 0x1d5   :  { %v1947_v7 = vpop.f32.mrb[0].mxu1 }
 0x1d6   :  { %v2159_v8 = vpop.f32.mrb[0].mxu0  ;;  %v2530_v9 = vadd.f32 %v1947_v7, %v307_v60  ;;  %v1949_v10 = vpop.f32.mrb[1].mxu1 }
 0x1d7   :  { %v2161_v11 = vpop.f32.mrb[1].mxu0  ;;  %v2532_v12 = vadd.f32 %v1949_v10, %v311_v61  ;;  %v1951_v13 = vpop.f32.mrb[2].mxu1 }
 0x1d8   :  { %v2163_v14 = vpop.f32.mrb[2].mxu0  ;;  %v2531_v15 = vadd.f32 %v2530_v9, %v2159_v8  ;;  %v2534_v16 = vadd.f32 %v1951_v13, %v307_v60  ;;  %v1953_v17 = vpop.f32.mrb[3].mxu1 }
 0x1d9   :  { %v2165_v18 = vpop.f32.mrb[3].mxu0  ;;  %v2533_v19 = vadd.f32 %v2532_v12, %v2161_v11  ;;  %v2536_v20 = vadd.f32 %v1953_v17, %v311_v61 }
 0x1da   :  { %vm2178_vm0 = vcmp.gt.f32.partialorder %v2531_v15, 0.0  ;;  %v2186_v21 = vmul.f32 0.2, %v2531_v15  ;;  %v2535_v22 = vadd.f32 %v2534_v16, %v2163_v14 }
 0x1db   :  { %vm2179_vm1 = vcmp.gt.f32.partialorder %v2533_v19, 0.0  ;;  %v2187_v23 = vmul.f32 0.2, %v2533_v19  ;;  %v2537_v24 = vadd.f32 %v2536_v20, %v2165_v18 }
 0x1dc   :  { %v2194_v25 = vsel %vm2178_vm0, %v2531_v15, %v2186_v21  ;;  %vm2180_vm2 = vcmp.gt.f32.partialorder %v2535_v22, 0.0  ;;  %v2188_v26 = vmul.f32 0.2, %v2535_v22 }
 0x1dd   :  { %v2195_v27 = vsel %vm2179_vm1, %v2533_v19, %v2187_v23  ;;  %vm2181_vm3 = vcmp.gt.f32.partialorder %v2537_v24, 0.0  ;;  %v2189_v28 = vmul.f32 0.2, %v2537_v24  ;;  %v1957_v29 = vpop.f32.mrb[4].mxu1 }
 0x1de   :  { %v2169_v30 = vpop.f32.mrb[4].mxu0  ;;  %v2526_v31 = vpack.c.bf16 %v2195_v27, %v2194_v25  ;;  %v2196_v32 = vsel %vm2180_vm2, %v2535_v22, %v2188_v26  ;;  %v2538_v33 = vadd.f32 %v1957_v29, %v307_v60  ;;  %v1959_v34 = vpop.f32.mrb[5].mxu1 }
 0x1df   :  { %v2171_v35 = vpop.f32.mrb[5].mxu0  ;;  %v2197_v36 = vsel %vm2181_vm3, %v2537_v24, %v2189_v28  ;;  %v2540_v37 = vadd.f32 %v1959_v34, %v311_v61  ;;  %v1961_v38 = vpop.f32.mrb[6].mxu1 }
 0x1e0   :  { %v2173_v39 = vpop.f32.mrb[6].mxu0  ;;  %2226 = vst [vmem:[%s3928_s3] sm:$0xff] %v2526_v31  ;;  %v2527_v40 = vpack.c.bf16 %v2197_v36, %v2196_v32  ;;  %v2539_v41 = vadd.f32 %v2538_v33, %v2169_v30  ;;  %v2542_v43 = vadd.f32 %v1961_v38, %v307_v60  ;;  %v1963_v44 = vpop.f32.mrb[7].mxu1 }
 0x1e1   :  { %v2175_v48 = vpop.f32.mrb[7].mxu0  ;;  %v2541_v49 = vadd.f32 %v2540_v37, %v2171_v35  ;;  %v2544_v42 = vadd.f32 %v1963_v44, %v311_v61 }
 0x1e2   :  { %2227 = vst [vmem:[%s3928_s3 + $0x8] sm:$0xff] %v2527_v40  ;;  %vm2182_vm4 = vcmp.gt.f32.partialorder %v2539_v41, 0.0  ;;  %v2190_v45 = vmul.f32 0.2, %v2539_v41  ;;  %v2543_v46 = vadd.f32 %v2542_v43, %v2173_v39 }
 0x1e3   :  { %vm2183_vm5 = vcmp.gt.f32.partialorder %v2541_v49, 0.0  ;;  %v2191_v47 = vmul.f32 0.2, %v2541_v49  ;;  %v2545_v50 = vadd.f32 %v2544_v42, %v2175_v48 }
 0x1e4   :  { %v2198_v51 = vsel %vm2182_vm4, %v2539_v41, %v2190_v45  ;;  %vm2184_vm6 = vcmp.gt.f32.partialorder %v2543_v46, 0.0  ;;  %v2192_v52 = vmul.f32 0.2, %v2543_v46 }
 0x1e5   :  { %v2199_v53 = vsel %vm2183_vm5, %v2541_v49, %v2191_v47  ;;  %vm2185_vm7 = vcmp.gt.f32.partialorder %v2545_v50, 0.0  ;;  %v2193_v54 = vmul.f32 0.2, %v2545_v50 }
 0x1e6   :  { %v2528_v55 = vpack.c.bf16 %v2199_v53, %v2198_v51  ;;  %v2200_v57 = vsel %vm2184_vm6, %v2543_v46, %v2192_v52 }
 0x1e7   :  { %v2201_v58 = vsel %vm2185_vm7, %v2545_v50, %v2193_v54 }
 0x1e8   :  { %2228 = vst [vmem:[%s3928_s3 + $0x10] sm:$0xff] %v2528_v55  ;;  %v2529_v62 = vpack.c.bf16 %v2201_v58, %v2200_v57 }
 0x1ea   :  { %2229 = vst [vmem:[%s3928_s3 + $0x18] sm:$0xff] %v2529_v62 }

// kernel: discriminator_forward.7
= control target key start
LH: loop header
LB: loop body
LE: loop exit
PB: predicated region body
PF: predicated region fallthrough
CT: control target
= control target key end

     0   :  { %vm2935_vm1 = vcmask 80896   ;;  %vm2942_vm3 = vcmask 7168   ;;  %s4753_s1 = inlined_call_operand.vmem [shape: bf16[4096,10], index: 1, kind: input, shape index: {}]   ;;  %s4754_s0 = inlined_call_operand.vmem [shape: bf16[16,4096], index: 0, kind: input, shape index: {}]   ;;  %s4755_s2 = inlined_call_operand.vmem [shape: f32[1,10], index: 2, kind: input, shape index: {}]   ;;  %s4756_s3 = inlined_call_operand.vmem [shape: s32[16,1], index: 3, kind: input, shape index: {}]   ;;  %s4757_s4 = inlined_call_operand.vmem [shape: f32[16,1], index: 4, kind: output, shape index: {}]  }
   0x1   :  { %v3592_v0 = vld [vmem:[%s4753_s1 + $0x40] sm:$0xff]   ;;  %v3596_v4 = vld [vmem:[%s4753_s1 + $0x48] sm:$0xff]   ;;  %v3600_v8 = vld [vmem:[%s4753_s1 + $0x50] sm:$0xff]  }
   0x2   :  { %v3593_v1 = vld [vmem:[%s4753_s1 + $0xc0] sm:$0xff]   ;;  %3238 = vmatprep.subr.bf16.mxu0 %v3592_v0  ;;  %v3597_v5 = vld [vmem:[%s4753_s1 + $0xc8] sm:$0xff]   ;;  %v3601_v9 = vld [vmem:[%s4753_s1 + $0xd0] sm:$0xff]  }
   0x3   :  { %v3594_v2 = vld [vmem:[%s4753_s1] sm:$0xff]   ;;  %3260 = vmatprep.subr.bf16.mxu1 %v3593_v1  ;;  %v3598_v6 = vld [vmem:[%s4753_s1 + $0x8] sm:$0xff]   ;;  %v3602_v10 = vld [vmem:[%s4753_s1 + $0x10] sm:$0xff]  }
   0x4   :  { %v3595_v3 = vld [vmem:[%s4753_s1 + $0x80] sm:$0xff]   ;;  %3239 = vmatpush3.bf16.msra.mxu0 %v3594_v2  ;;  %v3599_v7 = vld [vmem:[%s4753_s1 + $0x88] sm:$0xff]   ;;  %v3603_v11 = vld [vmem:[%s4753_s1 + $0x90] sm:$0xff]  }
   0x5   :  { %3261 = vmatpush3.bf16.msra.mxu1 %v3595_v3  ;;  %3240 = vmatprep.subr.bf16.mxu0 %v3596_v4  ;;  %v3604_v12 = vld [vmem:[%s4753_s1 + $0x58] sm:$0xff]   ;;  %v3608_v16 = vld [vmem:[%s4753_s1 + $0x60] sm:$0xff]   ;;  %v3612_v20 = vld [vmem:[%s4753_s1 + $0x68] sm:$0xff]  }
   0x6   :  { %3262 = vmatprep.subr.bf16.mxu1 %v3597_v5  ;;  %v3605_v13 = vld [vmem:[%s4753_s1 + $0xd8] sm:$0xff]   ;;  %v3609_v17 = vld [vmem:[%s4753_s1 + $0xe0] sm:$0xff]   ;;  %v3613_v21 = vld [vmem:[%s4753_s1 + $0xe8] sm:$0xff]  }
   0x7   :  { %v3606_v14 = vld [vmem:[%s4753_s1 + $0x18] sm:$0xff]   ;;  %v3610_v18 = vld [vmem:[%s4753_s1 + $0x20] sm:$0xff]   ;;  %v3614_v22 = vld [vmem:[%s4753_s1 + $0x28] sm:$0xff]  }
   0x8   :  { %3241 = vmatpush3.bf16.msra.mxu0 %v3598_v6  ;;  %v3607_v15 = vld [vmem:[%s4753_s1 + $0x98] sm:$0xff]   ;;  %v3611_v19 = vld [vmem:[%s4753_s1 + $0xa0] sm:$0xff]   ;;  %v3615_v23 = vld [vmem:[%s4753_s1 + $0xa8] sm:$0xff]  }
   0x9   :  { %3263 = vmatpush3.bf16.msra.mxu1 %v3599_v7  ;;  %3242 = vmatprep.subr.bf16.mxu0 %v3600_v8  ;;  %v3616_v24 = vld [vmem:[%s4753_s1 + $0x70] sm:$0xff]   ;;  %v3620_v28 = vld [vmem:[%s4753_s1 + $0x78] sm:$0xff]   ;;  %v18_v32 = vld [vmem:[%s4754_s0] sm:$0xff] }
   0xa   :  { %3264 = vmatprep.subr.bf16.mxu1 %v3601_v9  ;;  %v3617_v25 = vld [vmem:[%s4753_s1 + $0xf0] sm:$0xff]   ;;  %v3621_v29 = vld [vmem:[%s4753_s1 + $0xf8] sm:$0xff]   ;;  %v34_v33 = vld [vmem:[%s4754_s0 + $0x80] sm:$0xff] }
   0xb   :  { %v3618_v26 = vld [vmem:[%s4753_s1 + $0x30] sm:$0xff]   ;;  %v3622_v30 = vld [vmem:[%s4753_s1 + $0x38] sm:$0xff]   ;;  %v19_v34 = vld [vmem:[%s4754_s0 + $0x8] sm:$0xff]  ;;  %v2950_v35 = vcombine.low %v18_v32, %v34_v33  ;;  %v2951_v36 = vcombine.high %v18_v32, %v34_v33 }
   0xc   :  { %3243 = vmatpush3.bf16.msra.mxu0 %v3602_v10  ;;  %v3619_v27 = vld [vmem:[%s4753_s1 + $0xb0] sm:$0xff]   ;;  %v3623_v31 = vld [vmem:[%s4753_s1 + $0xb8] sm:$0xff]   ;;  %v35_v37 = vld [vmem:[%s4754_s0 + $0x88] sm:$0xff] }
   0xd   :  { %3265 = vmatpush3.bf16.msra.mxu1 %v3603_v11  ;;  %3244 = vmatprep.subr.bf16.mxu0 %v3604_v12  ;;  %v2952_v38 = vcombine.low %v19_v34, %v35_v37  ;;  %v2953_v39 = vcombine.high %v19_v34, %v35_v37  ;;  %v3624_v40 = vld [vmem:[%s4753_s1 + $0x140] sm:$0xff]   ;;  %v3628_v44 = vld [vmem:[%s4753_s1 + $0x148] sm:$0xff]   ;;  %v3632_v48 = vld [vmem:[%s4753_s1 + $0x150] sm:$0xff]  }
   0xe   :  { %3266 = vmatprep.subr.bf16.mxu1 %v3605_v13  ;;  %2297 = vmatprep.mubr.bf16.mxu0 %v2951_v36  ;;  %v3625_v41 = vld [vmem:[%s4753_s1 + $0x1c0] sm:$0xff]   ;;  %v3629_v45 = vld [vmem:[%s4753_s1 + $0x1c8] sm:$0xff]   ;;  %v3633_v49 = vld [vmem:[%s4753_s1 + $0x1d0] sm:$0xff]  }
   0xf   :  { %2338 = vmatprep.mubr.bf16.mxu1 %v2953_v39  ;;  %v3626_v42 = vld [vmem:[%s4753_s1 + $0x100] sm:$0xff]   ;;  %v3630_v46 = vld [vmem:[%s4753_s1 + $0x108] sm:$0xff]   ;;  %v3634_v50 = vld [vmem:[%s4753_s1 + $0x110] sm:$0xff]  }
  0x10   :  { %3245 = vmatpush3.bf16.msra.mxu0 %v3606_v14  ;;  %v3627_v43 = vld [vmem:[%s4753_s1 + $0x180] sm:$0xff]   ;;  %v3631_v47 = vld [vmem:[%s4753_s1 + $0x188] sm:$0xff]   ;;  %v3635_v51 = vld [vmem:[%s4753_s1 + $0x190] sm:$0xff]  }
  0x11   :  { %3267 = vmatpush3.bf16.msra.mxu1 %v3607_v15  ;;  %3246 = vmatprep.subr.bf16.mxu0 %v3608_v16  ;;  %v3636_v52 = vld [vmem:[%s4753_s1 + $0x158] sm:$0xff]   ;;  %v3640_v56 = vld [vmem:[%s4753_s1 + $0x160] sm:$0xff]   ;;  %v3644_v60 = vld [vmem:[%s4753_s1 + $0x168] sm:$0xff]  }
  0x12   :  { %3268 = vmatprep.subr.bf16.mxu1 %v3609_v17  ;;  %v3637_v53 = vld [vmem:[%s4753_s1 + $0x1d8] sm:$0xff]   ;;  %v3641_v57 = vld [vmem:[%s4753_s1 + $0x1e0] sm:$0xff]   ;;  %v3645_v61 = vld [vmem:[%s4753_s1 + $0x1e8] sm:$0xff]  }
  0x13   :  { %v3638_v54 = vld [vmem:[%s4753_s1 + $0x118] sm:$0xff]   ;;  %v3642_v58 = vld [vmem:[%s4753_s1 + $0x120] sm:$0xff]   ;;  %v3646_v62 = vld [vmem:[%s4753_s1 + $0x128] sm:$0xff]  }
  0x14   :  { %3247 = vmatpush3.bf16.msra.mxu0 %v3610_v18  ;;  %v3639_v55 = vld [vmem:[%s4753_s1 + $0x198] sm:$0xff]   ;;  %v3643_v59 = vld [vmem:[%s4753_s1 + $0x1a0] sm:$0xff]   ;;  %v3647_v63 = vld [vmem:[%s4753_s1 + $0x1a8] sm:$0xff]  }
  0x15   :  { %3269 = vmatpush3.bf16.msra.mxu1 %v3611_v19  ;;  %3248 = vmatprep.subr.bf16.mxu0 %v3612_v20  ;;  %v3648_v0 = vld [vmem:[%s4753_s1 + $0x170] sm:$0xff]   ;;  %v3652_v4 = vld [vmem:[%s4753_s1 + $0x178] sm:$0xff]   ;;  %v3656_v16 = vld [vmem:[%s4753_s1 + $0x240] sm:$0xff]  }
  0x16   :  { %3270 = vmatprep.subr.bf16.mxu1 %v3613_v21  ;;  %v3649_v1 = vld [vmem:[%s4753_s1 + $0x1f0] sm:$0xff]   ;;  %v3653_v5 = vld [vmem:[%s4753_s1 + $0x1f8] sm:$0xff]   ;;  %v3657_v17 = vld [vmem:[%s4753_s1 + $0x2c0] sm:$0xff]  }
  0x17   :  { %v3650_v2 = vld [vmem:[%s4753_s1 + $0x130] sm:$0xff]   ;;  %v3654_v6 = vld [vmem:[%s4753_s1 + $0x138] sm:$0xff]   ;;  %v3658_v18 = vld [vmem:[%s4753_s1 + $0x200] sm:$0xff]  }
  0x18   :  { %3249 = vmatpush3.bf16.msra.mxu0 %v3614_v22  ;;  %v3651_v3 = vld [vmem:[%s4753_s1 + $0x1b0] sm:$0xff]   ;;  %v3655_v7 = vld [vmem:[%s4753_s1 + $0x1b8] sm:$0xff]   ;;  %v3659_v19 = vld [vmem:[%s4753_s1 + $0x280] sm:$0xff]  }
  0x19   :  { %3271 = vmatpush3.bf16.msra.mxu1 %v3615_v23  ;;  %3250 = vmatprep.subr.bf16.mxu0 %v3616_v24  ;;  %v20_v8 = vld [vmem:[%s4754_s0 + $0x10] sm:$0xff]  ;;  %v21_v12 = vld [vmem:[%s4754_s0 + $0x18] sm:$0xff]  ;;  %v3660_v20 = vld [vmem:[%s4753_s1 + $0x248] sm:$0xff]  }
  0x1a   :  { %3272 = vmatprep.subr.bf16.mxu1 %v3617_v25  ;;  %v36_v9 = vld [vmem:[%s4754_s0 + $0x90] sm:$0xff]  ;;  %v37_v13 = vld [vmem:[%s4754_s0 + $0x98] sm:$0xff]  ;;  %v3661_v21 = vld [vmem:[%s4753_s1 + $0x2c8] sm:$0xff]  }
  0x1b   :  { %v2954_v10 = vcombine.low %v20_v8, %v36_v9  ;;  %v2955_v11 = vcombine.high %v20_v8, %v36_v9  ;;  %v2956_v14 = vcombine.low %v21_v12, %v37_v13  ;;  %v2957_v15 = vcombine.high %v21_v12, %v37_v13  ;;  %v3662_v22 = vld [vmem:[%s4753_s1 + $0x208] sm:$0xff]   ;;  %v3664_v24 = vld [vmem:[%s4753_s1 + $0x250] sm:$0xff]   ;;  %v3672_v32 = vld [vmem:[%s4753_s1 + $0x260] sm:$0xff]  }
  0x1c   :  { %3251 = vmatpush3.bf16.msra.mxu0 %v3618_v26  ;;  %v3663_v23 = vld [vmem:[%s4753_s1 + $0x288] sm:$0xff]   ;;  %v3665_v25 = vld [vmem:[%s4753_s1 + $0x2d0] sm:$0xff]   ;;  %v3673_v33 = vld [vmem:[%s4753_s1 + $0x2e0] sm:$0xff]  }
  0x1d   :  { %3273 = vmatpush3.bf16.msra.mxu1 %v3619_v27  ;;  %3252 = vmatprep.subr.bf16.mxu0 %v3620_v28  ;;  %v3666_v26 = vld [vmem:[%s4753_s1 + $0x210] sm:$0xff]   ;;  %v3668_v28 = vld [vmem:[%s4753_s1 + $0x258] sm:$0xff]   ;;  %v3674_v34 = vld [vmem:[%s4753_s1 + $0x220] sm:$0xff]  }
  0x1e   :  { %3274 = vmatprep.subr.bf16.mxu1 %v3621_v29  ;;  %v3667_v27 = vld [vmem:[%s4753_s1 + $0x290] sm:$0xff]   ;;  %v3669_v29 = vld [vmem:[%s4753_s1 + $0x2d8] sm:$0xff]   ;;  %v3676_v36 = vld [vmem:[%s4753_s1 + $0x268] sm:$0xff]  }
  0x1f   :  { %v3677_v37 = vld [vmem:[%s4753_s1 + $0x2e8] sm:$0xff]   ;;  %v3704_v8 = vld [vmem:[%s4753_s1 + $0x360] sm:$0xff]  }
  0x20   :  { %3253 = vmatpush3.bf16.msra.mxu0 %v3622_v30  ;;  %v3670_v30 = vld [vmem:[%s4753_s1 + $0x218] sm:$0xff]   ;;  %v3679_v39 = vld [vmem:[%s4753_s1 + $0x2a8] sm:$0xff]   ;;  %v3705_v9 = vld [vmem:[%s4753_s1 + $0x3e0] sm:$0xff]  }
  0x21   :  { %3275 = vmatpush3.bf16.msra.mxu1 %v3623_v31  ;;  %3282 = vmatprep.subr.bf16.mxu0 %v3624_v40  ;;  %v3671_v31 = vld [vmem:[%s4753_s1 + $0x298] sm:$0xff]   ;;  %v3680_v40 = vld [vmem:[%s4753_s1 + $0x270] sm:$0xff]   ;;  %v3708_v12 = vld [vmem:[%s4753_s1 + $0x368] sm:$0xff]  }
  0x22   :  { %3304 = vmatprep.subr.bf16.mxu1 %v3625_v41  ;;  %v3681_v41 = vld [vmem:[%s4753_s1 + $0x2f0] sm:$0xff]   ;;  %v3709_v13 = vld [vmem:[%s4753_s1 + $0x3e8] sm:$0xff]  }
  0x23   :  { %2298 = vmatmul.mubr.bf16.vlgmr.msra.gmra.mrb[0].mxu0 %v2950_v35  ;;  %v3675_v35 = vld [vmem:[%s4753_s1 + $0x2a0] sm:$0xff]  }
  0x24   :  { %2339 = vmatmul.mubr.bf16.vlgmr.msra.gmra.mrb[0].mxu1 %v2952_v38  ;;  %3283 = vmatpush3.bf16.msra.mxu0 %v3626_v42  ;;  %v3678_v38 = vld [vmem:[%s4753_s1 + $0x228] sm:$0xff]   ;;  %v3682_v42 = vld [vmem:[%s4753_s1 + $0x230] sm:$0xff]  }
  0x25   :  { %3305 = vmatpush3.bf16.msra.mxu1 %v3627_v43  ;;  %3284 = vmatprep.subr.bf16.mxu0 %v3628_v44  ;;  %v3683_v43 = vld [vmem:[%s4753_s1 + $0x2b0] sm:$0xff]   ;;  %v3684_v44 = vld [vmem:[%s4753_s1 + $0x278] sm:$0xff]  }
  0x26   :  { %3306 = vmatprep.subr.bf16.mxu1 %v3629_v45  ;;  %2379 = vmatprep.mubr.bf16.mxu0 %v2955_v11  ;;  %v3685_v45 = vld [vmem:[%s4753_s1 + $0x2f8] sm:$0xff]   ;;  %v3707_v11 = vld [vmem:[%s4753_s1 + $0x3a0] sm:$0xff]  }
  0x27   :  { %2420 = vmatprep.mubr.bf16.mxu1 %v2957_v15  ;;  %v3711_v15 = vld [vmem:[%s4753_s1 + $0x3a8] sm:$0xff]  }
  0x28   :  { %3285 = vmatpush3.bf16.msra.mxu0 %v3630_v46  ;;  %v3686_v46 = vld [vmem:[%s4753_s1 + $0x238] sm:$0xff]  }
  0x29   :  { %3307 = vmatpush3.bf16.msra.mxu1 %v3631_v47  ;;  %3286 = vmatprep.subr.bf16.mxu0 %v3632_v48  ;;  %v3687_v47 = vld [vmem:[%s4753_s1 + $0x2b8] sm:$0xff]   ;;  %v22_v48 = vld [vmem:[%s4754_s0 + $0x20] sm:$0xff] }
  0x2a   :  { %3308 = vmatprep.subr.bf16.mxu1 %v3633_v49  ;;  %v38_v49 = vld [vmem:[%s4754_s0 + $0xa0] sm:$0xff] }
  0x2c   :  { %3287 = vmatpush3.bf16.msra.mxu0 %v3634_v50  ;;  %v23_v50 = vld [vmem:[%s4754_s0 + $0x28] sm:$0xff] }
  0x2d   :  { %3309 = vmatpush3.bf16.msra.mxu1 %v3635_v51  ;;  %3288 = vmatprep.subr.bf16.mxu0 %v3636_v52  ;;  %v39_v51 = vld [vmem:[%s4754_s0 + $0xa8] sm:$0xff]  ;;  %v2958_v52 = vcombine.low %v22_v48, %v38_v49 }
  0x2e   :  { %3310 = vmatprep.subr.bf16.mxu1 %v3637_v53  ;;  %v2959_v53 = vcombine.high %v22_v48, %v38_v49  ;;  %v3736_v48 = vld [vmem:[%s4753_s1 + $0x460] sm:$0xff]  }
  0x2f   :  { %v3737_v49 = vld [vmem:[%s4753_s1 + $0x4e0] sm:$0xff]  }
  0x30   :  { %3289 = vmatpush3.bf16.msra.mxu0 %v3638_v54  ;;  %v2960_v54 = vcombine.low %v23_v50, %v39_v51 }
  0x31   :  { %3311 = vmatpush3.bf16.msra.mxu1 %v3639_v55  ;;  %3290 = vmatprep.subr.bf16.mxu0 %v3640_v56  ;;  %v2961_v55 = vcombine.high %v23_v50, %v39_v51  ;;  %v3688_v56 = vld [vmem:[%s4753_s1 + $0x340] sm:$0xff]  }
  0x32   :  { %3312 = vmatprep.subr.bf16.mxu1 %v3641_v57  ;;  %v3689_v57 = vld [vmem:[%s4753_s1 + $0x3c0] sm:$0xff]  }
  0x33   :  { %v3738_v50 = vld [vmem:[%s4753_s1 + $0x420] sm:$0xff]  }
  0x34   :  { %3291 = vmatpush3.bf16.msra.mxu0 %v3642_v58  ;;  %v3690_v58 = vld [vmem:[%s4753_s1 + $0x300] sm:$0xff]  }
  0x35   :  { %3313 = vmatpush3.bf16.msra.mxu1 %v3643_v59  ;;  %3292 = vmatprep.subr.bf16.mxu0 %v3644_v60  ;;  %v3691_v59 = vld [vmem:[%s4753_s1 + $0x380] sm:$0xff]   ;;  %v3692_v60 = vld [vmem:[%s4753_s1 + $0x348] sm:$0xff]  }
  0x36   :  { %3314 = vmatprep.subr.bf16.mxu1 %v3645_v61  ;;  %v3693_v61 = vld [vmem:[%s4753_s1 + $0x3c8] sm:$0xff]   ;;  %v3739_v51 = vld [vmem:[%s4753_s1 + $0x4a0] sm:$0xff]  }
  0x38   :  { %3293 = vmatpush3.bf16.msra.mxu0 %v3646_v62  ;;  %v3694_v62 = vld [vmem:[%s4753_s1 + $0x308] sm:$0xff]  }
  0x39   :  { %3315 = vmatpush3.bf16.msra.mxu1 %v3647_v63  ;;  %3294 = vmatprep.subr.bf16.mxu0 %v3648_v0  ;;  %v3695_v63 = vld [vmem:[%s4753_s1 + $0x388] sm:$0xff]   ;;  %v3696_v0 = vld [vmem:[%s4753_s1 + $0x350] sm:$0xff]  }
  0x3a   :  { %3316 = vmatprep.subr.bf16.mxu1 %v3649_v1  ;;  %v3697_v1 = vld [vmem:[%s4753_s1 + $0x3d0] sm:$0xff]  }
  0x3c   :  { %3295 = vmatpush3.bf16.msra.mxu0 %v3650_v2  ;;  %v3698_v2 = vld [vmem:[%s4753_s1 + $0x310] sm:$0xff]  }
  0x3d   :  { %3317 = vmatpush3.bf16.msra.mxu1 %v3651_v3  ;;  %3296 = vmatprep.subr.bf16.mxu0 %v3652_v4  ;;  %v3699_v3 = vld [vmem:[%s4753_s1 + $0x390] sm:$0xff]   ;;  %v3700_v4 = vld [vmem:[%s4753_s1 + $0x358] sm:$0xff]  }
  0x3e   :  { %3318 = vmatprep.subr.bf16.mxu1 %v3653_v5  ;;  %v3701_v5 = vld [vmem:[%s4753_s1 + $0x3d8] sm:$0xff]  }
  0x40   :  { %3297 = vmatpush3.bf16.msra.mxu0 %v3654_v6  ;;  %v3702_v6 = vld [vmem:[%s4753_s1 + $0x318] sm:$0xff]  }
  0x41   :  { %3319 = vmatpush3.bf16.msra.mxu1 %v3655_v7  ;;  %3326 = vmatprep.subr.bf16.mxu0 %v3656_v16  ;;  %v3703_v7 = vld [vmem:[%s4753_s1 + $0x398] sm:$0xff]   ;;  %v3712_v16 = vld [vmem:[%s4753_s1 + $0x370] sm:$0xff]  }
  0x42   :  { %3348 = vmatprep.subr.bf16.mxu1 %v3657_v17  ;;  %v3713_v17 = vld [vmem:[%s4753_s1 + $0x3f0] sm:$0xff]  }
  0x43   :  { %2380 = vmatmul.mubr.bf16.vlgmr.msra.gmra.mrb[4].mxu0 %v2954_v10  ;;  %v3706_v10 = vld [vmem:[%s4753_s1 + $0x320] sm:$0xff]  }
  0x44   :  { %2421 = vmatmul.mubr.bf16.vlgmr.msra.gmra.mrb[4].mxu1 %v2956_v14  ;;  %3327 = vmatpush3.bf16.msra.mxu0 %v3658_v18  ;;  %v3710_v14 = vld [vmem:[%s4753_s1 + $0x328] sm:$0xff]   ;;  %v3714_v18 = vld [vmem:[%s4753_s1 + $0x330] sm:$0xff]  }
  0x45   :  { %3349 = vmatpush3.bf16.msra.mxu1 %v3659_v19  ;;  %3328 = vmatprep.subr.bf16.mxu0 %v3660_v20  ;;  %v3715_v19 = vld [vmem:[%s4753_s1 + $0x3b0] sm:$0xff]   ;;  %v3716_v20 = vld [vmem:[%s4753_s1 + $0x378] sm:$0xff]  }
  0x46   :  { %3350 = vmatprep.subr.bf16.mxu1 %v3661_v21  ;;  %2461 = vmatprep.mubr.bf16.mxu0 %v2959_v53  ;;  %v3717_v21 = vld [vmem:[%s4753_s1 + $0x3f8] sm:$0xff]   ;;  %v3741_v53 = vld [vmem:[%s4753_s1 + $0x4e8] sm:$0xff]  }
  0x47   :  { %2502 = vmatprep.mubr.bf16.mxu1 %v2961_v55  ;;  %v3743_v55 = vld [vmem:[%s4753_s1 + $0x4a8] sm:$0xff]  }
  0x48   :  { %3329 = vmatpush3.bf16.msra.mxu0 %v3662_v22  ;;  %v3718_v22 = vld [vmem:[%s4753_s1 + $0x338] sm:$0xff]  }
  0x49   :  { %3351 = vmatpush3.bf16.msra.mxu1 %v3663_v23  ;;  %3330 = vmatprep.subr.bf16.mxu0 %v3664_v24  ;;  %v3719_v23 = vld [vmem:[%s4753_s1 + $0x3b8] sm:$0xff]   ;;  %v24_v24 = vld [vmem:[%s4754_s0 + $0x30] sm:$0xff] }
  0x4a   :  { %3352 = vmatprep.subr.bf16.mxu1 %v3665_v25  ;;  %v40_v25 = vld [vmem:[%s4754_s0 + $0xb0] sm:$0xff] }
  0x4c   :  { %3331 = vmatpush3.bf16.msra.mxu0 %v3666_v26  ;;  %v25_v26 = vld [vmem:[%s4754_s0 + $0x38] sm:$0xff] }
  0x4d   :  { %3353 = vmatpush3.bf16.msra.mxu1 %v3667_v27  ;;  %3332 = vmatprep.subr.bf16.mxu0 %v3668_v28  ;;  %v2962_v27 = vcombine.low %v24_v24, %v40_v25  ;;  %v2963_v28 = vcombine.high %v24_v24, %v40_v25  ;;  %v3768_v24 = vld [vmem:[%s4753_s1 + $0x560] sm:$0xff]  }
  0x4e   :  { %3354 = vmatprep.subr.bf16.mxu1 %v3669_v29  ;;  %v41_v29 = vld [vmem:[%s4754_s0 + $0xb8] sm:$0xff]  ;;  %v3769_v25 = vld [vmem:[%s4753_s1 + $0x5e0] sm:$0xff]  }
  0x50   :  { %3333 = vmatpush3.bf16.msra.mxu0 %v3670_v30  ;;  %v2964_v30 = vcombine.low %v25_v26, %v41_v29 }
  0x51   :  { %3355 = vmatpush3.bf16.msra.mxu1 %v3671_v31  ;;  %3334 = vmatprep.subr.bf16.mxu0 %v3672_v32  ;;  %v2965_v31 = vcombine.high %v25_v26, %v41_v29  ;;  %v3720_v32 = vld [vmem:[%s4753_s1 + $0x440] sm:$0xff]   ;;  %v3773_v29 = vld [vmem:[%s4753_s1 + $0x5e8] sm:$0xff]  }
  0x52   :  { %3356 = vmatprep.subr.bf16.mxu1 %v3673_v33  ;;  %v3721_v33 = vld [vmem:[%s4753_s1 + $0x4c0] sm:$0xff]  }
  0x53   :  { %v3770_v26 = vld [vmem:[%s4753_s1 + $0x520] sm:$0xff]  }
  0x54   :  { %3335 = vmatpush3.bf16.msra.mxu0 %v3674_v34  ;;  %v3722_v34 = vld [vmem:[%s4753_s1 + $0x400] sm:$0xff]  }
  0x55   :  { %3357 = vmatpush3.bf16.msra.mxu1 %v3675_v35  ;;  %3336 = vmatprep.subr.bf16.mxu0 %v3676_v36  ;;  %v3723_v35 = vld [vmem:[%s4753_s1 + $0x480] sm:$0xff]   ;;  %v3724_v36 = vld [vmem:[%s4753_s1 + $0x448] sm:$0xff]  }
  0x56   :  { %3358 = vmatprep.subr.bf16.mxu1 %v3677_v37  ;;  %v3725_v37 = vld [vmem:[%s4753_s1 + $0x4c8] sm:$0xff]  }
  0x58   :  { %3337 = vmatpush3.bf16.msra.mxu0 %v3678_v38  ;;  %v3726_v38 = vld [vmem:[%s4753_s1 + $0x408] sm:$0xff]  }
  0x59   :  { %3359 = vmatpush3.bf16.msra.mxu1 %v3679_v39  ;;  %3338 = vmatprep.subr.bf16.mxu0 %v3680_v40  ;;  %v3727_v39 = vld [vmem:[%s4753_s1 + $0x488] sm:$0xff]   ;;  %v3728_v40 = vld [vmem:[%s4753_s1 + $0x450] sm:$0xff]  }
  0x5a   :  { %3360 = vmatprep.subr.bf16.mxu1 %v3681_v41  ;;  %v3729_v41 = vld [vmem:[%s4753_s1 + $0x4d0] sm:$0xff]  }
  0x5c   :  { %3339 = vmatpush3.bf16.msra.mxu0 %v3682_v42  ;;  %v3730_v42 = vld [vmem:[%s4753_s1 + $0x410] sm:$0xff]  }
  0x5d   :  { %3361 = vmatpush3.bf16.msra.mxu1 %v3683_v43  ;;  %3340 = vmatprep.subr.bf16.mxu0 %v3684_v44  ;;  %v3731_v43 = vld [vmem:[%s4753_s1 + $0x490] sm:$0xff]   ;;  %v3732_v44 = vld [vmem:[%s4753_s1 + $0x458] sm:$0xff]  }
  0x5e   :  { %3362 = vmatprep.subr.bf16.mxu1 %v3685_v45  ;;  %v3733_v45 = vld [vmem:[%s4753_s1 + $0x4d8] sm:$0xff]  }
  0x60   :  { %3341 = vmatpush3.bf16.msra.mxu0 %v3686_v46  ;;  %v3734_v46 = vld [vmem:[%s4753_s1 + $0x418] sm:$0xff]  }
  0x61   :  { %3363 = vmatpush3.bf16.msra.mxu1 %v3687_v47  ;;  %3370 = vmatprep.subr.bf16.mxu0 %v3688_v56  ;;  %v3735_v47 = vld [vmem:[%s4753_s1 + $0x498] sm:$0xff]   ;;  %v3744_v56 = vld [vmem:[%s4753_s1 + $0x470] sm:$0xff]  }
  0x62   :  { %3392 = vmatprep.subr.bf16.mxu1 %v3689_v57  ;;  %v3745_v57 = vld [vmem:[%s4753_s1 + $0x4f0] sm:$0xff]  }
  0x63   :  { %2462 = vmatmul.mubr.bf16.vlgmr.msra.gmra.mrb[8].mxu0 %v2958_v52  ;;  %v3740_v52 = vld [vmem:[%s4753_s1 + $0x468] sm:$0xff]  }
  0x64   :  { %2503 = vmatmul.mubr.bf16.vlgmr.msra.gmra.mrb[8].mxu1 %v2960_v54  ;;  %3371 = vmatpush3.bf16.msra.mxu0 %v3690_v58  ;;  %v3742_v54 = vld [vmem:[%s4753_s1 + $0x428] sm:$0xff]   ;;  %v3746_v58 = vld [vmem:[%s4753_s1 + $0x430] sm:$0xff]  }
  0x65   :  { %3393 = vmatpush3.bf16.msra.mxu1 %v3691_v59  ;;  %3372 = vmatprep.subr.bf16.mxu0 %v3692_v60  ;;  %v3747_v59 = vld [vmem:[%s4753_s1 + $0x4b0] sm:$0xff]   ;;  %v3748_v60 = vld [vmem:[%s4753_s1 + $0x478] sm:$0xff]  }
  0x66   :  { %3394 = vmatprep.subr.bf16.mxu1 %v3693_v61  ;;  %2543 = vmatprep.mubr.bf16.mxu0 %v2963_v28  ;;  %v3749_v61 = vld [vmem:[%s4753_s1 + $0x4f8] sm:$0xff]   ;;  %v3772_v28 = vld [vmem:[%s4753_s1 + $0x568] sm:$0xff]  }
  0x67   :  { %2584 = vmatprep.mubr.bf16.mxu1 %v2965_v31  ;;  %v3775_v31 = vld [vmem:[%s4753_s1 + $0x5a8] sm:$0xff]  }
  0x68   :  { %3373 = vmatpush3.bf16.msra.mxu0 %v3694_v62  ;;  %v3750_v62 = vld [vmem:[%s4753_s1 + $0x438] sm:$0xff]  }
  0x69   :  { %3395 = vmatpush3.bf16.msra.mxu1 %v3695_v63  ;;  %3374 = vmatprep.subr.bf16.mxu0 %v3696_v0  ;;  %v3751_v63 = vld [vmem:[%s4753_s1 + $0x4b8] sm:$0xff]   ;;  %v26_v0 = vld [vmem:[%s4754_s0 + $0x40] sm:$0xff] }
  0x6a   :  { %3396 = vmatprep.subr.bf16.mxu1 %v3697_v1  ;;  %v42_v1 = vld [vmem:[%s4754_s0 + $0xc0] sm:$0xff] }
  0x6c   :  { %3375 = vmatpush3.bf16.msra.mxu0 %v3698_v2  ;;  %v2966_v2 = vcombine.low %v26_v0, %v42_v1 }
  0x6d   :  { %3397 = vmatpush3.bf16.msra.mxu1 %v3699_v3  ;;  %3376 = vmatprep.subr.bf16.mxu0 %v3700_v4  ;;  %v2967_v3 = vcombine.high %v26_v0, %v42_v1  ;;  %v27_v4 = vld [vmem:[%s4754_s0 + $0x48] sm:$0xff]  ;;  %v3800_v0 = vld [vmem:[%s4753_s1 + $0x660] sm:$0xff]  }
  0x6e   :  { %3398 = vmatprep.subr.bf16.mxu1 %v3701_v5  ;;  %v43_v5 = vld [vmem:[%s4754_s0 + $0xc8] sm:$0xff]  ;;  %v3801_v1 = vld [vmem:[%s4753_s1 + $0x6e0] sm:$0xff]  }
  0x70   :  { %3377 = vmatpush3.bf16.msra.mxu0 %v3702_v6  ;;  %v2968_v6 = vcombine.low %v27_v4, %v43_v5 }
  0x71   :  { %3399 = vmatpush3.bf16.msra.mxu1 %v3703_v7  ;;  %3378 = vmatprep.subr.bf16.mxu0 %v3704_v8  ;;  %v2969_v7 = vcombine.high %v27_v4, %v43_v5  ;;  %v3752_v8 = vld [vmem:[%s4753_s1 + $0x540] sm:$0xff]   ;;  %v3804_v4 = vld [vmem:[%s4753_s1 + $0x668] sm:$0xff]  }
  0x72   :  { %3400 = vmatprep.subr.bf16.mxu1 %v3705_v9  ;;  %v3753_v9 = vld [vmem:[%s4753_s1 + $0x5c0] sm:$0xff]   ;;  %v3805_v5 = vld [vmem:[%s4753_s1 + $0x6e8] sm:$0xff]  }
  0x74   :  { %3379 = vmatpush3.bf16.msra.mxu0 %v3706_v10  ;;  %v3754_v10 = vld [vmem:[%s4753_s1 + $0x500] sm:$0xff]  }
  0x75   :  { %3401 = vmatpush3.bf16.msra.mxu1 %v3707_v11  ;;  %3380 = vmatprep.subr.bf16.mxu0 %v3708_v12  ;;  %v3755_v11 = vld [vmem:[%s4753_s1 + $0x580] sm:$0xff]   ;;  %v3756_v12 = vld [vmem:[%s4753_s1 + $0x548] sm:$0xff]  }
  0x76   :  { %3402 = vmatprep.subr.bf16.mxu1 %v3709_v13  ;;  %v3757_v13 = vld [vmem:[%s4753_s1 + $0x5c8] sm:$0xff]  }
  0x78   :  { %3381 = vmatpush3.bf16.msra.mxu0 %v3710_v14  ;;  %v3758_v14 = vld [vmem:[%s4753_s1 + $0x508] sm:$0xff]  }
  0x79   :  { %3403 = vmatpush3.bf16.msra.mxu1 %v3711_v15  ;;  %3382 = vmatprep.subr.bf16.mxu0 %v3712_v16  ;;  %v3759_v15 = vld [vmem:[%s4753_s1 + $0x588] sm:$0xff]   ;;  %v3760_v16 = vld [vmem:[%s4753_s1 + $0x550] sm:$0xff]  }
  0x7a   :  { %3404 = vmatprep.subr.bf16.mxu1 %v3713_v17  ;;  %v3761_v17 = vld [vmem:[%s4753_s1 + $0x5d0] sm:$0xff]  }
  0x7c   :  { %3383 = vmatpush3.bf16.msra.mxu0 %v3714_v18  ;;  %v3762_v18 = vld [vmem:[%s4753_s1 + $0x510] sm:$0xff]  }
  0x7d   :  { %3405 = vmatpush3.bf16.msra.mxu1 %v3715_v19  ;;  %3384 = vmatprep.subr.bf16.mxu0 %v3716_v20  ;;  %v3763_v19 = vld [vmem:[%s4753_s1 + $0x590] sm:$0xff]   ;;  %v3764_v20 = vld [vmem:[%s4753_s1 + $0x558] sm:$0xff]  }
  0x7e   :  { %3406 = vmatprep.subr.bf16.mxu1 %v3717_v21  ;;  %v3765_v21 = vld [vmem:[%s4753_s1 + $0x5d8] sm:$0xff]  }
  0x80   :  { %3385 = vmatpush3.bf16.msra.mxu0 %v3718_v22  ;;  %v3766_v22 = vld [vmem:[%s4753_s1 + $0x518] sm:$0xff]  }
  0x81   :  { %3407 = vmatpush3.bf16.msra.mxu1 %v3719_v23  ;;  %3414 = vmatprep.subr.bf16.mxu0 %v3720_v32  ;;  %v3767_v23 = vld [vmem:[%s4753_s1 + $0x598] sm:$0xff]   ;;  %v3776_v32 = vld [vmem:[%s4753_s1 + $0x570] sm:$0xff]  }
  0x82   :  { %3436 = vmatprep.subr.bf16.mxu1 %v3721_v33  ;;  %v3777_v33 = vld [vmem:[%s4753_s1 + $0x5f0] sm:$0xff]  }
  0x83   :  { %2544 = vmatmul.mubr.bf16.vlgmr.msra.gmra.mrb[12].mxu0 %v2962_v27  ;;  %v3771_v27 = vld [vmem:[%s4753_s1 + $0x5a0] sm:$0xff]  }
  0x84   :  { %2585 = vmatmul.mubr.bf16.vlgmr.msra.gmra.mrb[12].mxu1 %v2964_v30  ;;  %3415 = vmatpush3.bf16.msra.mxu0 %v3722_v34  ;;  %v3774_v30 = vld [vmem:[%s4753_s1 + $0x528] sm:$0xff]   ;;  %v3778_v34 = vld [vmem:[%s4753_s1 + $0x530] sm:$0xff]  }
  0x85   :  { %3437 = vmatpush3.bf16.msra.mxu1 %v3723_v35  ;;  %3416 = vmatprep.subr.bf16.mxu0 %v3724_v36  ;;  %v3779_v35 = vld [vmem:[%s4753_s1 + $0x5b0] sm:$0xff]   ;;  %v3780_v36 = vld [vmem:[%s4753_s1 + $0x578] sm:$0xff]  }
  0x86   :  { %3438 = vmatprep.subr.bf16.mxu1 %v3725_v37  ;;  %2625 = vmatprep.mubr.bf16.mxu0 %v2967_v3  ;;  %v3781_v37 = vld [vmem:[%s4753_s1 + $0x5f8] sm:$0xff]   ;;  %v3803_v3 = vld [vmem:[%s4753_s1 + $0x6a0] sm:$0xff]  }
  0x87   :  { %2666 = vmatprep.mubr.bf16.mxu1 %v2969_v7  ;;  %v3807_v7 = vld [vmem:[%s4753_s1 + $0x6a8] sm:$0xff]  }
  0x88   :  { %3417 = vmatpush3.bf16.msra.mxu0 %v3726_v38  ;;  %v3782_v38 = vld [vmem:[%s4753_s1 + $0x538] sm:$0xff]  }
  0x89   :  { %3439 = vmatpush3.bf16.msra.mxu1 %v3727_v39  ;;  %3418 = vmatprep.subr.bf16.mxu0 %v3728_v40  ;;  %v3783_v39 = vld [vmem:[%s4753_s1 + $0x5b8] sm:$0xff]   ;;  %v28_v40 = vld [vmem:[%s4754_s0 + $0x50] sm:$0xff] }
  0x8a   :  { %3440 = vmatprep.subr.bf16.mxu1 %v3729_v41  ;;  %v44_v41 = vld [vmem:[%s4754_s0 + $0xd0] sm:$0xff] }
  0x8c   :  { %3419 = vmatpush3.bf16.msra.mxu0 %v3730_v42  ;;  %v29_v42 = vld [vmem:[%s4754_s0 + $0x58] sm:$0xff] }
  0x8d   :  { %3441 = vmatpush3.bf16.msra.mxu1 %v3731_v43  ;;  %3420 = vmatprep.subr.bf16.mxu0 %v3732_v44  ;;  %v45_v43 = vld [vmem:[%s4754_s0 + $0xd8] sm:$0xff]  ;;  %v2970_v44 = vcombine.low %v28_v40, %v44_v41 }
  0x8e   :  { %3442 = vmatprep.subr.bf16.mxu1 %v3733_v45  ;;  %v2971_v45 = vcombine.high %v28_v40, %v44_v41  ;;  %v3830_v40 = vld [vmem:[%s4753_s1 + $0x718] sm:$0xff]  }
  0x90   :  { %3421 = vmatpush3.bf16.msra.mxu0 %v3734_v46  ;;  %v2972_v46 = vcombine.low %v29_v42, %v45_v43 }
  0x91   :  { %3443 = vmatpush3.bf16.msra.mxu1 %v3735_v47  ;;  %3422 = vmatprep.subr.bf16.mxu0 %v3736_v48  ;;  %v2973_v47 = vcombine.high %v29_v42, %v45_v43  ;;  %v3784_v48 = vld [vmem:[%s4753_s1 + $0x640] sm:$0xff]   ;;  %v3831_v42 = vld [vmem:[%s4753_s1 + $0x798] sm:$0xff]  }
  0x92   :  { %3444 = vmatprep.subr.bf16.mxu1 %v3737_v49  ;;  %v3785_v49 = vld [vmem:[%s4753_s1 + $0x6c0] sm:$0xff]  }
  0x94   :  { %3423 = vmatpush3.bf16.msra.mxu0 %v3738_v50  ;;  %v3786_v50 = vld [vmem:[%s4753_s1 + $0x600] sm:$0xff]  }
  0x95   :  { %3445 = vmatpush3.bf16.msra.mxu1 %v3739_v51  ;;  %3424 = vmatprep.subr.bf16.mxu0 %v3740_v52  ;;  %v3787_v51 = vld [vmem:[%s4753_s1 + $0x680] sm:$0xff]   ;;  %v3788_v52 = vld [vmem:[%s4753_s1 + $0x648] sm:$0xff]  }
  0x96   :  { %3446 = vmatprep.subr.bf16.mxu1 %v3741_v53  ;;  %v3789_v53 = vld [vmem:[%s4753_s1 + $0x6c8] sm:$0xff]  }
  0x98   :  { %3425 = vmatpush3.bf16.msra.mxu0 %v3742_v54  ;;  %v3790_v54 = vld [vmem:[%s4753_s1 + $0x608] sm:$0xff]  }
  0x99   :  { %3447 = vmatpush3.bf16.msra.mxu1 %v3743_v55  ;;  %3426 = vmatprep.subr.bf16.mxu0 %v3744_v56  ;;  %v3791_v55 = vld [vmem:[%s4753_s1 + $0x688] sm:$0xff]   ;;  %v3792_v56 = vld [vmem:[%s4753_s1 + $0x650] sm:$0xff]  }
  0x9a   :  { %3448 = vmatprep.subr.bf16.mxu1 %v3745_v57  ;;  %v3793_v57 = vld [vmem:[%s4753_s1 + $0x6d0] sm:$0xff]  }
  0x9c   :  { %3427 = vmatpush3.bf16.msra.mxu0 %v3746_v58  ;;  %v3794_v58 = vld [vmem:[%s4753_s1 + $0x610] sm:$0xff]  }
  0x9d   :  { %3449 = vmatpush3.bf16.msra.mxu1 %v3747_v59  ;;  %3428 = vmatprep.subr.bf16.mxu0 %v3748_v60  ;;  %v3795_v59 = vld [vmem:[%s4753_s1 + $0x690] sm:$0xff]   ;;  %v3796_v60 = vld [vmem:[%s4753_s1 + $0x658] sm:$0xff]  }
  0x9e   :  { %3450 = vmatprep.subr.bf16.mxu1 %v3749_v61  ;;  %v3797_v61 = vld [vmem:[%s4753_s1 + $0x6d8] sm:$0xff]  }
  0xa0   :  { %3429 = vmatpush3.bf16.msra.mxu0 %v3750_v62  ;;  %v3798_v62 = vld [vmem:[%s4753_s1 + $0x618] sm:$0xff]  }
  0xa1   :  { %3451 = vmatpush3.bf16.msra.mxu1 %v3751_v63  ;;  %3458 = vmatprep.subr.bf16.mxu0 %v3752_v8  ;;  %v3799_v63 = vld [vmem:[%s4753_s1 + $0x698] sm:$0xff]   ;;  %v3808_v8 = vld [vmem:[%s4753_s1 + $0x670] sm:$0xff]  }
  0xa2   :  { %3480 = vmatprep.subr.bf16.mxu1 %v3753_v9  ;;  %v3809_v9 = vld [vmem:[%s4753_s1 + $0x6f0] sm:$0xff]  }
  0xa3   :  { %2626 = vmatmul.mubr.bf16.vlgmr.msra.gmra.mrb[16].mxu0 %v2966_v2  ;;  %v3802_v2 = vld [vmem:[%s4753_s1 + $0x620] sm:$0xff]  }
  0xa4   :  { %2667 = vmatmul.mubr.bf16.vlgmr.msra.gmra.mrb[16].mxu1 %v2968_v6  ;;  %3459 = vmatpush3.bf16.msra.mxu0 %v3754_v10  ;;  %v3806_v6 = vld [vmem:[%s4753_s1 + $0x628] sm:$0xff]   ;;  %v3810_v10 = vld [vmem:[%s4753_s1 + $0x630] sm:$0xff]  }
  0xa5   :  { %3481 = vmatpush3.bf16.msra.mxu1 %v3755_v11  ;;  %3460 = vmatprep.subr.bf16.mxu0 %v3756_v12  ;;  %v3848_v11 = vmov 0   ;;  %v3811_v12 = vld [vmem:[%s4753_s1 + $0x6b0] sm:$0xff]  }
  0xa6   :  { %3482 = vmatprep.subr.bf16.mxu1 %v3757_v13  ;;  %2707 = vmatprep.mubr.bf16.mxu0 %v2971_v45  ;;  %v3812_v13 = vld [vmem:[%s4753_s1 + $0x678] sm:$0xff]  }
  0xa7   :  { %2748 = vmatprep.mubr.bf16.mxu1 %v2973_v47  ;;  %3591 = vset.pattern.permute.xlu0 %v3848_v11  ;;  %v3833_v47 = vld [vmem:[%s4753_s1 + $0x7e0] sm:$0xff]   ;;  %v48_v11 = vld [vmem:[%s4754_s0 + $0xf0] sm:$0xff] }
  0xa8   :  { %3461 = vmatpush3.bf16.msra.mxu0 %v3758_v14  ;;  %v3813_v14 = vld [vmem:[%s4753_s1 + $0x6f8] sm:$0xff]  }
  0xa9   :  { %3483 = vmatpush3.bf16.msra.mxu1 %v3759_v15  ;;  %3462 = vmatprep.subr.bf16.mxu0 %v3760_v16  ;;  %v3814_v15 = vld [vmem:[%s4753_s1 + $0x638] sm:$0xff]  }
  0xaa   :  { %3484 = vmatprep.subr.bf16.mxu1 %v3761_v17  ;;  %v3815_v16 = vld [vmem:[%s4753_s1 + $0x6b8] sm:$0xff]   ;;  %v30_v17 = vld [vmem:[%s4754_s0 + $0x60] sm:$0xff] }
  0xac   :  { %3463 = vmatpush3.bf16.msra.mxu0 %v3762_v18  ;;  %v46_v18 = vld [vmem:[%s4754_s0 + $0xe0] sm:$0xff] }
  0xad   :  { %3485 = vmatpush3.bf16.msra.mxu1 %v3763_v19  ;;  %3464 = vmatprep.subr.bf16.mxu0 %v3764_v20  ;;  %v31_v19 = vld [vmem:[%s4754_s0 + $0x68] sm:$0xff]  ;;  %v2974_v20 = vcombine.low %v30_v17, %v46_v18 }
  0xae   :  { %3486 = vmatprep.subr.bf16.mxu1 %v3765_v21  ;;  %v2975_v21 = vcombine.high %v30_v17, %v46_v18  ;;  %v2923_v18 = vld [vmem:[%s4756_s3] sm:$0xff] }
  0xaf   :  { %2926 = vperm.xlu0 %3591, %v2923_v18  }
  0xb0   :  { %3465 = vmatpush3.bf16.msra.mxu0 %v3766_v22  ;;  %v47_v22 = vld [vmem:[%s4754_s0 + $0xe8] sm:$0xff] }
  0xb1   :  { %3487 = vmatpush3.bf16.msra.mxu1 %v3767_v23  ;;  %3466 = vmatprep.subr.bf16.mxu0 %v3768_v24  ;;  %v2976_v23 = vcombine.low %v31_v19, %v47_v22  ;;  %v2977_v24 = vcombine.high %v31_v19, %v47_v22  ;;  %v2924_v19 = vld [vmem:[%s4756_s3 + $0x8] sm:$0xff] }
  0xb2   :  { %3488 = vmatprep.subr.bf16.mxu1 %v3769_v25  ;;  %v3816_v25 = vld [vmem:[%s4753_s1 + $0x740] sm:$0xff]  }
  0xb3   :  { %2929 = vperm.xlu0 %3591, %v2924_v19  }
  0xb4   :  { %3467 = vmatpush3.bf16.msra.mxu0 %v3770_v26  ;;  %v3817_v26 = vld [vmem:[%s4753_s1 + $0x7c0] sm:$0xff]  }
  0xb5   :  { %3489 = vmatpush3.bf16.msra.mxu1 %v3771_v27  ;;  %3468 = vmatprep.subr.bf16.mxu0 %v3772_v28  ;;  %v3818_v27 = vld [vmem:[%s4753_s1 + $0x700] sm:$0xff]  }
  0xb6   :  { %3490 = vmatprep.subr.bf16.mxu1 %v3773_v29  ;;  %v3819_v28 = vld [vmem:[%s4753_s1 + $0x780] sm:$0xff]   ;;  %v3820_v29 = vld [vmem:[%s4753_s1 + $0x748] sm:$0xff]  }
  0xb8   :  { %3469 = vmatpush3.bf16.msra.mxu0 %v3774_v30  ;;  %v3821_v30 = vld [vmem:[%s4753_s1 + $0x7c8] sm:$0xff]  }
  0xb9   :  { %3491 = vmatpush3.bf16.msra.mxu1 %v3775_v31  ;;  %3470 = vmatprep.subr.bf16.mxu0 %v3776_v32  ;;  %v3822_v31 = vld [vmem:[%s4753_s1 + $0x708] sm:$0xff]  }
  0xba   :  { %3492 = vmatprep.subr.bf16.mxu1 %v3777_v33  ;;  %v3823_v32 = vld [vmem:[%s4753_s1 + $0x788] sm:$0xff]   ;;  %v3824_v33 = vld [vmem:[%s4753_s1 + $0x750] sm:$0xff]  }
  0xbc   :  { %3471 = vmatpush3.bf16.msra.mxu0 %v3778_v34  ;;  %v3825_v34 = vld [vmem:[%s4753_s1 + $0x7d0] sm:$0xff]  }
  0xbd   :  { %3493 = vmatpush3.bf16.msra.mxu1 %v3779_v35  ;;  %3472 = vmatprep.subr.bf16.mxu0 %v3780_v36  ;;  %v3826_v35 = vld [vmem:[%s4753_s1 + $0x710] sm:$0xff]  }
  0xbe   :  { %3494 = vmatprep.subr.bf16.mxu1 %v3781_v37  ;;  %v3827_v36 = vld [vmem:[%s4753_s1 + $0x790] sm:$0xff]   ;;  %v3828_v37 = vld [vmem:[%s4753_s1 + $0x758] sm:$0xff]  }
  0xc0   :  { %3473 = vmatpush3.bf16.msra.mxu0 %v3782_v38  ;;  %v3829_v38 = vld [vmem:[%s4753_s1 + $0x7d8] sm:$0xff]  }
  0xc1   :  { %3495 = vmatpush3.bf16.msra.mxu1 %v3783_v39  ;;  %3502 = vmatprep.subr.bf16.mxu0 %v3784_v48 }
  0xc2   :  { %3524 = vmatprep.subr.bf16.mxu1 %v3785_v49 }
  0xc3   :  { %2708 = vmatmul.mubr.bf16.vlgmr.msra.gmra.mrb[20].mxu0 %v2970_v44  ;;  %v3832_v44 = vld [vmem:[%s4753_s1 + $0x760] sm:$0xff]  }
  0xc4   :  { %2749 = vmatmul.mubr.bf16.vlgmr.msra.gmra.mrb[20].mxu1 %v2972_v46  ;;  %3503 = vmatpush3.bf16.msra.mxu0 %v3786_v50  ;;  %v3834_v50 = vld [vmem:[%s4753_s1 + $0x720] sm:$0xff]  }
  0xc5   :  { %3525 = vmatpush3.bf16.msra.mxu1 %v3787_v51  ;;  %3504 = vmatprep.subr.bf16.mxu0 %v3788_v52  ;;  %v3835_v52 = vld [vmem:[%s4753_s1 + $0x7a0] sm:$0xff]  }
  0xc6   :  { %3526 = vmatprep.subr.bf16.mxu1 %v3789_v53  ;;  %2789 = vmatprep.mubr.bf16.mxu0 %v2975_v21  ;;  %v2949_v53 = vld [vmem:[%s4755_s2] ss:$0 sm:$0xff] }
  0xc7   :  { %2830 = vmatprep.mubr.bf16.mxu1 %v2977_v24 }
  0xc8   :  { %3505 = vmatpush3.bf16.msra.mxu0 %v3790_v54 }
  0xc9   :  { %3527 = vmatpush3.bf16.msra.mxu1 %v3791_v55  ;;  %3506 = vmatprep.subr.bf16.mxu0 %v3792_v56  ;;  %v3836_v56 = vld [vmem:[%s4753_s1 + $0x768] sm:$0xff]  }
  0xca   :  { %3528 = vmatprep.subr.bf16.mxu1 %v3793_v57 }
  0xcc   :  { %3507 = vmatpush3.bf16.msra.mxu0 %v3794_v58 }
  0xcd   :  { %3529 = vmatpush3.bf16.msra.mxu1 %v3795_v59  ;;  %3508 = vmatprep.subr.bf16.mxu0 %v3796_v60  ;;  %v3837_v59 = vld [vmem:[%s4753_s1 + $0x7e8] sm:$0xff]  }
  0xce   :  { %3530 = vmatprep.subr.bf16.mxu1 %v3797_v61 }
  0xd0   :  { %3509 = vmatpush3.bf16.msra.mxu0 %v3798_v62  ;;  %v3838_v62 = vld [vmem:[%s4753_s1 + $0x728] sm:$0xff]  }
  0xd1   :  { %3531 = vmatpush3.bf16.msra.mxu1 %v3799_v63  ;;  %3510 = vmatprep.subr.bf16.mxu0 %v3800_v0  ;;  %v3839_v0 = vld [vmem:[%s4753_s1 + $0x7a8] sm:$0xff]  }
  0xd2   :  { %3532 = vmatprep.subr.bf16.mxu1 %v3801_v1 }
  0xd4   :  { %3511 = vmatpush3.bf16.msra.mxu0 %v3802_v2  ;;  %v3840_v2 = vld [vmem:[%s4753_s1 + $0x770] sm:$0xff]  }
  0xd5   :  { %3533 = vmatpush3.bf16.msra.mxu1 %v3803_v3  ;;  %3512 = vmatprep.subr.bf16.mxu0 %v3804_v4  ;;  %v3841_v3 = vld [vmem:[%s4753_s1 + $0x7f0] sm:$0xff]  }
  0xd6   :  { %3534 = vmatprep.subr.bf16.mxu1 %v3805_v5  ;;  %v3842_v4 = vld [vmem:[%s4753_s1 + $0x730] sm:$0xff]  }
  0xd7   :  { %v3843_v5 = vld [vmem:[%s4753_s1 + $0x7b0] sm:$0xff]  }
  0xd8   :  { %3513 = vmatpush3.bf16.msra.mxu0 %v3806_v6  ;;  %v3844_v6 = vld [vmem:[%s4753_s1 + $0x778] sm:$0xff]  }
  0xd9   :  { %3535 = vmatpush3.bf16.msra.mxu1 %v3807_v7  ;;  %3514 = vmatprep.subr.bf16.mxu0 %v3808_v8  ;;  %v3845_v7 = vld [vmem:[%s4753_s1 + $0x7f8] sm:$0xff]  }
  0xda   :  { %3536 = vmatprep.subr.bf16.mxu1 %v3809_v9  ;;  %v3846_v8 = vld [vmem:[%s4753_s1 + $0x738] sm:$0xff]  }
  0xdb   :  { %v3847_v9 = vld [vmem:[%s4753_s1 + $0x7b8] sm:$0xff]  }
  0xdc   :  { %3515 = vmatpush3.bf16.msra.mxu0 %v3810_v10  ;;  %v32_v10 = vld [vmem:[%s4754_s0 + $0x70] sm:$0xff] }
  0xdd   :  { %3537 = vmatpush3.bf16.msra.mxu1 %v3811_v12  ;;  %3516 = vmatprep.subr.bf16.mxu0 %v3812_v13  ;;  %v33_v12 = vld [vmem:[%s4754_s0 + $0x78] sm:$0xff] }
  0xde   :  { %3538 = vmatprep.subr.bf16.mxu1 %v3813_v14  ;;  %v49_v13 = vld [vmem:[%s4754_s0 + $0xf8] sm:$0xff]  ;;  %v2978_v14 = vcombine.low %v32_v10, %v48_v11 }
  0xdf   :  { %v2981_v17 = vcombine.high %v33_v12, %v49_v13 }
  0xe0   :  { %3517 = vmatpush3.bf16.msra.mxu0 %v3814_v15  ;;  %v2979_v15 = vcombine.high %v32_v10, %v48_v11 }
  0xe1   :  { %3539 = vmatpush3.bf16.msra.mxu1 %v3815_v16  ;;  %3546 = vmatprep.subr.bf16.mxu0 %v3816_v25  ;;  %v2980_v16 = vcombine.low %v33_v12, %v49_v13 }
  0xe2   :  { %3568 = vmatprep.subr.bf16.mxu1 %v3817_v26 }
  0xe3   :  { %2790 = vmatmul.mubr.bf16.vlgmr.msra.gmra.mrb[24].mxu0 %v2974_v20 }
  0xe4   :  { %2831 = vmatmul.mubr.bf16.vlgmr.msra.gmra.mrb[24].mxu1 %v2976_v23  ;;  %3547 = vmatpush3.bf16.msra.mxu0 %v3818_v27 }
  0xe5   :  { %3569 = vmatpush3.bf16.msra.mxu1 %v3819_v28  ;;  %3548 = vmatprep.subr.bf16.mxu0 %v3820_v29 }
  0xe6   :  { %3570 = vmatprep.subr.bf16.mxu1 %v3821_v30  ;;  %2871 = vmatprep.mubr.bf16.mxu0 %v2979_v15 }
  0xe7   :  { %2912 = vmatprep.mubr.bf16.mxu1 %v2981_v17 }
  0xe8   :  { %3549 = vmatpush3.bf16.msra.mxu0 %v3822_v31 }
  0xe9   :  { %3571 = vmatpush3.bf16.msra.mxu1 %v3823_v32  ;;  %3550 = vmatprep.subr.bf16.mxu0 %v3824_v33 }
  0xea   :  { %3572 = vmatprep.subr.bf16.mxu1 %v3825_v34 }
  0xec   :  { %3551 = vmatpush3.bf16.msra.mxu0 %v3826_v35 }
  0xed   :  { %3573 = vmatpush3.bf16.msra.mxu1 %v3827_v36  ;;  %3552 = vmatprep.subr.bf16.mxu0 %v3828_v37 }
  0xee   :  { %3574 = vmatprep.subr.bf16.mxu1 %v3829_v38 }
  0xf0   :  { %3553 = vmatpush3.bf16.msra.mxu0 %v3830_v40 }
  0xf1   :  { %3575 = vmatpush3.bf16.msra.mxu1 %v3831_v42  ;;  %3554 = vmatprep.subr.bf16.mxu0 %v3832_v44 }
  0xf2   :  { %3576 = vmatprep.subr.bf16.mxu1 %v3833_v47 }
  0xf4   :  { %3555 = vmatpush3.bf16.msra.mxu0 %v3834_v50 }
  0xf5   :  { %3577 = vmatpush3.bf16.msra.mxu1 %v3835_v52  ;;  %3556 = vmatprep.subr.bf16.mxu0 %v3836_v56 }
  0xf6   :  { %v3254_v39 = vpop.f32.mrb[0].mxu0  ;;  %3578 = vmatprep.subr.bf16.mxu1 %v3837_v59 }
  0xf7   :  { %v3276_v41 = vpop.f32.mrb[0].mxu1  ;;  %v3255_v43 = vpop.f32.mrb[1].mxu0 }
  0xf8   :  { %v3256_v45 = vadd.f32 %v3255_v43, %v3254_v39  ;;  %v3277_v46 = vpop.f32.mrb[1].mxu1  ;;  %v3257_v49 = vpop.f32.mrb[2].mxu0  ;;  %3557 = vmatpush3.bf16.msra.mxu0 %v3838_v62 }
  0xf9   :  { %v3278_v48 = vadd.f32 %v3277_v46, %v3276_v41  ;;  %v3279_v51 = vpop.f32.mrb[2].mxu1  ;;  %v3258_v54 = vpop.f32.mrb[3].mxu0  ;;  %3579 = vmatpush3.bf16.msra.mxu1 %v3839_v0  ;;  %3558 = vmatprep.subr.bf16.mxu0 %v3840_v2 }
  0xfa   :  { %v2300_v55 = vadd.f32 %v3256_v45, %v2949_v53  ;;  %v3259_v57 = vadd.f32 %v3258_v54, %v3257_v49  ;;  %v3280_v58 = vpop.f32.mrb[3].mxu1  ;;  %3580 = vmatprep.subr.bf16.mxu1 %v3841_v3 }
  0xfb   :  { %v3281_v60 = vadd.f32 %v3280_v58, %v3279_v51 }
  0xfc   :  { %v2341_v61 = vadd.f32 %v3278_v48, %v2300_v55  ;;  %v2303_v63 = vadd.f32 %v3259_v57, %v2949_v53  ;;  %3559 = vmatpush3.bf16.msra.mxu0 %v3842_v4 }
  0xfd   :  { %3581 = vmatpush3.bf16.msra.mxu1 %v3843_v5  ;;  %3560 = vmatprep.subr.bf16.mxu0 %v3844_v6 }
  0xfe   :  { %v2344_v1 = vadd.f32 %v3281_v60, %v2303_v63  ;;  %3582 = vmatprep.subr.bf16.mxu1 %v3845_v7 }
 0x100   :  { %3561 = vmatpush3.bf16.msra.mxu0 %v3846_v8 }
 0x101   :  { %3583 = vmatpush3.bf16.msra.mxu1 %v3847_v9 }
 0x103   :  { %2872 = vmatmul.mubr.bf16.vlgmr.msra.gmra.mrb[28].mxu0 %v2978_v14 }
 0x104   :  { %2913 = vmatmul.mubr.bf16.vlgmr.msra.gmra.mrb[28].mxu1 %v2980_v16 }
 0x116   :  { %v3298_v20 = vpop.f32.mrb[4].mxu0 }
 0x117   :  { %v3320_v21 = vpop.f32.mrb[4].mxu1  ;;  %v3299_v22 = vpop.f32.mrb[5].mxu0 }
 0x118   :  { %v3300_v23 = vadd.f32 %v3299_v22, %v3298_v20  ;;  %v3321_v24 = vpop.f32.mrb[5].mxu1  ;;  %v3301_v25 = vpop.f32.mrb[6].mxu0 }
 0x119   :  { %v3322_v26 = vadd.f32 %v3321_v24, %v3320_v21  ;;  %v3323_v27 = vpop.f32.mrb[6].mxu1  ;;  %v3302_v28 = vpop.f32.mrb[7].mxu0 }
 0x11a   :  { %v2382_v29 = vadd.f32 %v3300_v23, %v2341_v61  ;;  %v3303_v30 = vadd.f32 %v3302_v28, %v3301_v25  ;;  %v3324_v31 = vpop.f32.mrb[7].mxu1 }
 0x11b   :  { %v3325_v32 = vadd.f32 %v3324_v31, %v3323_v27 }
 0x11c   :  { %v2423_v33 = vadd.f32 %v3322_v26, %v2382_v29  ;;  %v2385_v34 = vadd.f32 %v3303_v30, %v2344_v1 }
 0x11e   :  { %v2426_v35 = vadd.f32 %v3325_v32, %v2385_v34 }
 0x136   :  { %v3342_v36 = vpop.f32.mrb[8].mxu0 }
 0x137   :  { %v3364_v37 = vpop.f32.mrb[8].mxu1  ;;  %v3343_v38 = vpop.f32.mrb[9].mxu0 }
 0x138   :  { %v3365_v39 = vpop.f32.mrb[9].mxu1  ;;  %v3344_v40 = vadd.f32 %v3343_v38, %v3342_v36  ;;  %v3345_v42 = vpop.f32.mrb[10].mxu0 }
 0x139   :  { %v3366_v41 = vadd.f32 %v3365_v39, %v3364_v37  ;;  %v3367_v43 = vpop.f32.mrb[10].mxu1  ;;  %v3346_v44 = vpop.f32.mrb[11].mxu0 }
 0x13a   :  { %v3368_v45 = vpop.f32.mrb[11].mxu1  ;;  %v2464_v46 = vadd.f32 %v3344_v40, %v2423_v33  ;;  %v3347_v47 = vadd.f32 %v3346_v44, %v3345_v42 }
 0x13b   :  { %v3369_v48 = vadd.f32 %v3368_v45, %v3367_v43 }
 0x13c   :  { %v2505_v49 = vadd.f32 %v3366_v41, %v2464_v46  ;;  %v2467_v50 = vadd.f32 %v3347_v47, %v2426_v35 }
 0x13e   :  { %v2508_v51 = vadd.f32 %v3369_v48, %v2467_v50 }
 0x156   :  { %v3386_v52 = vpop.f32.mrb[12].mxu0 }
 0x157   :  { %v3408_v53 = vpop.f32.mrb[12].mxu1  ;;  %v3387_v54 = vpop.f32.mrb[13].mxu0 }
 0x158   :  { %v3388_v55 = vadd.f32 %v3387_v54, %v3386_v52  ;;  %v3409_v56 = vpop.f32.mrb[13].mxu1  ;;  %v3389_v57 = vpop.f32.mrb[14].mxu0  ;;  %v2921_v52 = vlaneseq }
 0x159   :  { %v3410_v58 = vadd.f32 %v3409_v56, %v3408_v53  ;;  %v3411_v59 = vpop.f32.mrb[14].mxu1  ;;  %v3390_v60 = vpop.f32.mrb[15].mxu0 }
 0x15a   :  { %v2546_v61 = vadd.f32 %v3388_v55, %v2505_v49  ;;  %v3391_v62 = vadd.f32 %v3390_v60, %v3389_v57  ;;  %v3412_v63 = vpop.f32.mrb[15].mxu1  ;;  %v2927_v53 = vpop.permute.xlu0 %2926 }
 0x15b   :  { %v3413_v0 = vadd.f32 %v3412_v63, %v3411_v59 }
 0x15c   :  { %v2587_v1 = vadd.f32 %v3410_v58, %v2546_v61  ;;  %v2549_v2 = vadd.f32 %v3391_v62, %v2508_v51  ;;  %v2922_v58 = vand.u32 127, %v2921_v52 }
 0x15e   :  { %v2590_v3 = vadd.f32 %v3413_v0, %v2549_v2  ;;  %vm2931_vm0 = vcmp.eq.s32.totalorder %v2922_v58, %v2927_v53 }
 0x176   :  { %v3430_v4 = vpop.f32.mrb[16].mxu0 }
 0x177   :  { %v3452_v5 = vpop.f32.mrb[16].mxu1  ;;  %v3431_v6 = vpop.f32.mrb[17].mxu0 }
 0x178   :  { %v3432_v7 = vadd.f32 %v3431_v6, %v3430_v4  ;;  %v3453_v8 = vpop.f32.mrb[17].mxu1  ;;  %v3433_v9 = vpop.f32.mrb[18].mxu0 }
 0x179   :  { %v3454_v10 = vadd.f32 %v3453_v8, %v3452_v5  ;;  %v3455_v11 = vpop.f32.mrb[18].mxu1  ;;  %v3434_v12 = vpop.f32.mrb[19].mxu0 }
 0x17a   :  { %v2628_v13 = vadd.f32 %v3432_v7, %v2587_v1  ;;  %v3435_v14 = vadd.f32 %v3434_v12, %v3433_v9  ;;  %v3456_v15 = vpop.f32.mrb[19].mxu1  ;;  %v2930_v6 = vpop.permute.xlu0 %2929 }
 0x17b   :  { %v3457_v16 = vadd.f32 %v3456_v15, %v3455_v11  ;;  %vm2932_vm2 = vcmp.eq.s32.totalorder %v2922_v58, %v2930_v6 }
 0x17c   :  { %v2669_v17 = vadd.f32 %v3454_v10, %v2628_v13  ;;  %v2631_v18 = vadd.f32 %v3435_v14, %v2590_v3 }
 0x17e   :  { %v2672_v19 = vadd.f32 %v3457_v16, %v2631_v18 }
 0x196   :  { %v3474_v20 = vpop.f32.mrb[20].mxu0 }
 0x197   :  { %v3496_v21 = vpop.f32.mrb[20].mxu1  ;;  %v3475_v22 = vpop.f32.mrb[21].mxu0 }
 0x198   :  { %v3497_v23 = vpop.f32.mrb[21].mxu1  ;;  %v3476_v24 = vadd.f32 %v3475_v22, %v3474_v20  ;;  %v3477_v26 = vpop.f32.mrb[22].mxu0 }
 0x199   :  { %v3498_v25 = vadd.f32 %v3497_v23, %v3496_v21  ;;  %v3499_v27 = vpop.f32.mrb[22].mxu1  ;;  %v3478_v28 = vpop.f32.mrb[23].mxu0 }
 0x19a   :  { %v3500_v29 = vpop.f32.mrb[23].mxu1  ;;  %v2710_v30 = vadd.f32 %v3476_v24, %v2669_v17  ;;  %v3479_v31 = vadd.f32 %v3478_v28, %v3477_v26 }
 0x19b   :  { %v3501_v32 = vadd.f32 %v3500_v29, %v3499_v27 }
 0x19c   :  { %v2751_v33 = vadd.f32 %v3498_v25, %v2710_v30  ;;  %v2713_v34 = vadd.f32 %v3479_v31, %v2672_v19 }
 0x19e   :  { %v2754_v35 = vadd.f32 %v3501_v32, %v2713_v34 }
 0x1b6   :  { %v3518_v36 = vpop.f32.mrb[24].mxu0 }
 0x1b7   :  { %v3540_v37 = vpop.f32.mrb[24].mxu1  ;;  %v3519_v38 = vpop.f32.mrb[25].mxu0 }
 0x1b8   :  { %v3520_v39 = vadd.f32 %v3519_v38, %v3518_v36  ;;  %v3541_v40 = vpop.f32.mrb[25].mxu1  ;;  %v3521_v41 = vpop.f32.mrb[26].mxu0 }
 0x1b9   :  { %v3542_v42 = vadd.f32 %v3541_v40, %v3540_v37  ;;  %v3543_v43 = vpop.f32.mrb[26].mxu1  ;;  %v3522_v44 = vpop.f32.mrb[27].mxu0 }
 0x1ba   :  { %v2792_v45 = vadd.f32 %v3520_v39, %v2751_v33  ;;  %v3523_v46 = vadd.f32 %v3522_v44, %v3521_v41  ;;  %v3544_v47 = vpop.f32.mrb[27].mxu1 }
 0x1bb   :  { %v3545_v48 = vadd.f32 %v3544_v47, %v3543_v43 }
 0x1bc   :  { %v2833_v49 = vadd.f32 %v3542_v42, %v2792_v45  ;;  %v2795_v50 = vadd.f32 %v3523_v46, %v2754_v35 }
 0x1be   :  { %v2836_v51 = vadd.f32 %v3545_v48, %v2795_v50 }
 0x1d6   :  { %v3562_v54 = vpop.f32.mrb[28].mxu0 }
 0x1d7   :  { %v3584_v55 = vpop.f32.mrb[28].mxu1  ;;  %v3563_v56 = vpop.f32.mrb[29].mxu0 }
 0x1d8   :  { %v3585_v57 = vpop.f32.mrb[29].mxu1  ;;  %v3564_v59 = vadd.f32 %v3563_v56, %v3562_v54  ;;  %v3565_v61 = vpop.f32.mrb[30].mxu0 }
 0x1d9   :  { %v3586_v60 = vadd.f32 %v3585_v57, %v3584_v55  ;;  %v3587_v62 = vpop.f32.mrb[30].mxu1  ;;  %v3566_v63 = vpop.f32.mrb[31].mxu0 }
 0x1da   :  { %v3588_v0 = vpop.f32.mrb[31].mxu1  ;;  %v2874_v1 = vadd.f32 %v3564_v59, %v2833_v49  ;;  %v3567_v2 = vadd.f32 %v3566_v63, %v3565_v61 }
 0x1db   :  { %v3589_v3 = vadd.f32 %v3588_v0, %v3587_v62 }
 0x1dc   :  { %v2915_v4 = vadd.f32 %v3586_v60, %v2874_v1  ;;  %v2877_v5 = vadd.f32 %v3567_v2, %v2836_v51 }
 0x1de   :  { %v2918_v7 = vadd.f32 %v3589_v3, %v2877_v5  ;;  %v2933_v8 = vsel %vm2931_vm0, %v2915_v4, 0.0 }
 0x1df   :  { %v2936_v9 = vsel %vm2935_vm1, %v2933_v8, 0.0 }
 0x1e0   :  { %2937 = vadd.xlane.f32.xlu1 %v2936_v9  ;;  %v2934_v10 = vsel %vm2932_vm2, %v2918_v7, 0.0 }
 0x1e1   :  { %v2939_v11 = vsel %vm2935_vm1, %v2934_v10, 0.0 }
 0x1e4   :  { %2940 = vadd.xlane.f32.xlu1 %v2939_v11 }
 0x26d   :  { %v2938_v12 = vpop.xlane.xlu1 %2937 }
 0x26e   :  { %2943 = vst.msk [vmem:[%s4757_s4] sm:$0xff] %vm2942_vm3, %v2938_v12 }
 0x271   :  { %v2941_v13 = vpop.xlane.xlu1 %2940 }
 0x272   :  { %2944 = vst.msk [vmem:[%s4757_s4 + $0x8] sm:$0xff] %vm2942_vm3, %v2941_v13 }

</bundles_post_ra>
